<compile_context>
chip_gen: v7x
topology: tpu7x:2x2x1
jax: 0.10.0
libtpu: 0.0.40
codegen_flags: <defaults>
</compile_context>

<pallas_src>
import functools

import jax
import jax.numpy as jnp
from jax import lax
from jax.experimental import pallas as pl
from jax.experimental.pallas import tpu as pltpu

EPS = 1e-5
PRELU_ALPHA = 0.25  # torch.nn.PReLU() default init (untrained module)
LANE = 128


@functools.lru_cache(maxsize=None)
def _vmem_limit_bytes():
    cap = 64 * 1024 * 1024          # conservative fallback (v7x physical VMEM)
    try:
        cap = int(pltpu.get_tpu_info().vmem_capacity_bytes)
    except Exception:
        pass
    # ~75% of physical, capped; leaves headroom for Mosaic-internal scratch.
    return max(32 * 1024 * 1024, min((cap * 3) // 4, 112 * 1024 * 1024))


def _compiler_params(dimension_semantics):
    return pltpu.CompilerParams(
        dimension_semantics=dimension_semantics,
        vmem_limit_bytes=_vmem_limit_bytes(),
    )


# ---------------------------------------------------------------------------
# Fused encoder: framing matmul + ReLU + channel-wise LayerNorm + proj conv1x1
# ---------------------------------------------------------------------------
def _encoder_kernel_factory(Tp):
    def kernel(xht_ref, we_ref, ev_ref, wp_ref, bp_ref, w_out_ref, p_out_ref):
        xht = xht_ref[...]                                # (stride, Tp+1) half-frames
        # frame t = [half t ; half t+1] -> single (N, L) @ (L, Tp) MXU dot
        frames = jnp.concatenate([xht[:, :Tp], xht[:, 1:Tp + 1]], axis=0)
        enc = jnp.dot(we_ref[...], frames, preferred_element_type=jnp.float32)
        enc = jnp.maximum(enc + ev_ref[:, 0:1], 0.0)      # bias + ReLU, (N, Tp)
        w_out_ref[...] = enc
        # channel-wise LayerNorm (over channels, per time step); rsqrt + folded gain
        mean = jnp.mean(enc, axis=0, keepdims=True)
        var = jnp.mean((enc - mean) ** 2, axis=0, keepdims=True)
        y = (enc - mean) * lax.rsqrt(var + EPS)
        y = y * ev_ref[:, 1:2] + ev_ref[:, 2:3]
        # projection 1x1 conv N -> B
        p_out_ref[...] = (jnp.dot(wp_ref[...], y, preferred_element_type=jnp.float32)
                          + bp_ref[...])
    return kernel


def encoder_cln_proj(xht, enc_w, enc_v, proj_w, proj_b, *, Tp):
    Bb, stride, _ = xht.shape
    N, L = enc_w.shape
    Bch = proj_w.shape[0]
    return pl.pallas_call(
        _encoder_kernel_factory(Tp),
        out_shape=(jax.ShapeDtypeStruct((Bb, N, Tp), jnp.float32),
                   jax.ShapeDtypeStruct((Bb, Bch, Tp), jnp.float32)),
        grid=(Bb,),
        in_specs=[
            pl.BlockSpec((None, stride, Tp + 1), lambda i: (i, 0, 0)),
            pl.BlockSpec((N, L), lambda i: (0, 0)),
            pl.BlockSpec((N, 3), lambda i: (0, 0)),      # [enc_b | cLN gamma | cLN beta]
            pl.BlockSpec((Bch, N), lambda i: (0, 0)),
            pl.BlockSpec((Bch, 1), lambda i: (0, 0)),
        ],
        out_specs=(pl.BlockSpec((None, N, Tp), lambda i: (i, 0, 0)),
                   pl.BlockSpec((None, Bch, Tp), lambda i: (i, 0, 0))),
        compiler_params=_compiler_params(("parallel",)),
    )(xht, enc_w, enc_v, proj_w, proj_b)


# ---------------------------------------------------------------------------
# Fused TCN stack: ONE pallas_call, grid=(batch, num_blocks)
#   per block: conv1x1 -> PReLU+gLN -> dilated depthwise conv -> PReLU+gLN
#              -> merged residual/skip 1x1 conv (+residual add, +skip accum)
# ---------------------------------------------------------------------------
def _tcn_kernel_factory(X, K, T_valid, Tp, P, H, Bch, alpha):
    inv_n = 1.0 / float(H * T_valid)
    need_mask = Tp != T_valid

    def gln(y, mask, g, be):
        ym = y * mask if need_mask else y
        m = jnp.sum(ym) * inv_n
        v = jnp.maximum(jnp.sum(ym * ym) * inv_n - m * m, 0.0)   # clamp: no NaN
        scale = g * lax.rsqrt(v + EPS)
        return (y - m) * scale + be

    def kernel(x_ref, w1_ref, wd_ref, wrs_ref, hv_ref, bv_ref,
               skip_ref, out_acc, dpad_ref):
        j = pl.program_id(1)

        @pl.when(j == 0)
        def _init():
            out_acc[...] = x_ref[...]                    # running residual `output`
            skip_ref[...] = jnp.zeros(skip_ref.shape, jnp.float32)
            dpad_ref[...] = jnp.zeros(dpad_ref.shape, jnp.float32)  # zero halos once

        if need_mask:
            col = lax.broadcasted_iota(jnp.int32, (1, Tp), 1)
            mask = (col < T_valid).astype(jnp.float32)
        else:
            mask = None

        x = out_acc[...]                                 # (Bch, Tp)
        hv = hv_ref[...]                                 # (H, 6): b1,g1,be1,bd,g2,be2

        # 1x1 conv (Bch -> H) + PReLU + gLN
        y = jnp.dot(w1_ref[...], x, preferred_element_type=jnp.float32) + hv[:, 0:1]
        y = jnp.where(y >= 0, y, alpha * y)
        y = gln(y, mask, hv[:, 1:2], hv[:, 2:3])
        if need_mask:
            y = y * mask                                 # halo must read true zeros

        # dilated depthwise conv; only the center of the halo buffer is written
        dpad_ref[:, P:P + Tp] = y
        xp = dpad_ref[...]
        wd = wd_ref[...]                                 # (H, K)

        def dconv(d):                                    # static dilation -> static slices
            pad = d * (K - 1) // 2
            acc = wd[:, 0:1] * xp[:, P - pad:P - pad + Tp]
            for k in range(1, K):
                off = P - pad + k * d
                acc = acc + wd[:, k:k + 1] * xp[:, off:off + Tp]
            return acc

        jmod = j % X                                     # dilation = 2**(j % X)

        def select(i):
            if i == X - 1:
                return dconv(2 ** i)
            return lax.cond(jmod == i, lambda: dconv(2 ** i), lambda: select(i + 1))

        y = select(0) + hv[:, 3:4]

        # PReLU + gLN
        y = jnp.where(y >= 0, y, alpha * y)
        y = gln(y, mask, hv[:, 4:5], hv[:, 5:6])

        # merged residual+skip 1x1 convs: one (2*Bch, H) @ (H, Tp) matmul
        rs = jnp.dot(wrs_ref[...], y, preferred_element_type=jnp.float32) + bv_ref[...]
        out_acc[...] = x + rs[:Bch, :]                   # residual add (VMEM resident)
        skip_ref[...] = skip_ref[...] + rs[Bch:, :]      # skip accumulation (output ref)
    return kernel


def tcn_stack(x, params, *, X, T_valid, Tp):
    Bb, Bch, _ = x.shape
    nb, H, K = params['wd'].shape
    d_max = 2 ** (X - 1)
    P = d_max * (K - 1) // 2                             # halo width (K odd)
    kernel = _tcn_kernel_factory(X, K, T_valid, Tp, P, H, Bch, PRELU_ALPHA)
    return pl.pallas_call(
        kernel,
        out_shape=jax.ShapeDtypeStruct((Bb, Bch, Tp), jnp.float32),
        grid=(Bb, nb),
        in_specs=[
            pl.BlockSpec((None, Bch, Tp), lambda b, j: (b, 0, 0)),       # proj output
            pl.BlockSpec((None, H, Bch), lambda b, j: (j, 0, 0)),        # w1
            pl.BlockSpec((None, H, K), lambda b, j: (j, 0, 0)),          # depthwise taps
            pl.BlockSpec((None, 2 * Bch, H), lambda b, j: (j, 0, 0)),    # [ws ; wk]
            pl.BlockSpec((None, H, 6), lambda b, j: (j, 0, 0)),          # packed H vectors
            pl.BlockSpec((None, 2 * Bch, 1), lambda b, j: (j, 0, 0)),    # [bs ; bk]
        ],
        out_specs=pl.BlockSpec((None, Bch, Tp), lambda b, j: (b, 0, 0)), # skip accumulator
        scratch_shapes=[
            pltpu.VMEM((Bch, Tp), jnp.float32),          # running residual `output`
            pltpu.VMEM((H, Tp + 2 * P), jnp.float32),    # depthwise halo buffer
        ],
        compiler_params=_compiler_params(("parallel", "arbitrary")),
    )(x, params['w1'], params['wd'], params['wrs'], params['hv'], params['bv'])


# ---------------------------------------------------------------------------
# Fused mask (PReLU -> 1x1 conv -> ReLU -> * encoder) + decoder frame matmul
# ---------------------------------------------------------------------------
def _mask_decoder_kernel_factory(alpha):
    def kernel(skip_ref, w_ref, mw_ref, mb_ref, dwt_ref, s0_ref, f_ref):
        sk = skip_ref[...]
        sk = jnp.where(sk >= 0, sk, alpha * sk)                        # PReLU
        e0 = jnp.dot(mw_ref[...], sk, preferred_element_type=jnp.float32) + mb_ref[...]
        s0 = jnp.maximum(e0, 0.0) * w_ref[...]                         # ReLU mask * enc
        s0_ref[...] = s0
        # decoder frames: (L, Tp) = dec_w^T @ s0 (dec_w pre-transposed to (L, N))
        f_ref[...] = jnp.dot(dwt_ref[...], s0, preferred_element_type=jnp.float32)
    return kernel


def mask_and_decode(skip, w, mw0, mb0, dec_wt):
    Bb, S, Tp = skip.shape
    N = mw0.shape[0]
    L = dec_wt.shape[0]
    return pl.pallas_call(
        _mask_decoder_kernel_factory(PRELU_ALPHA),
        out_shape=(jax.ShapeDtypeStruct((Bb, N, Tp), jnp.float32),
                   jax.ShapeDtypeStruct((Bb, L, Tp), jnp.float32)),
        grid=(Bb,),
        in_specs=[
            pl.BlockSpec((None, S, Tp), lambda i: (i, 0, 0)),
            pl.BlockSpec((None, N, Tp), lambda i: (i, 0, 0)),
            pl.BlockSpec((N, S), lambda i: (0, 0)),
            pl.BlockSpec((N, 1), lambda i: (0, 0)),
            pl.BlockSpec((L, N), lambda i: (0, 0)),
        ],
        out_specs=(pl.BlockSpec((None, N, Tp), lambda i: (i, 0, 0)),
                   pl.BlockSpec((None, L, Tp), lambda i: (i, 0, 0))),
        compiler_params=_compiler_params(("parallel",)),
    )(skip, w, mw0, mb0, dec_wt)


# ---------------------------------------------------------------------------
# ConvTasNet forward (glue in plain JAX under jit, compute in Pallas kernels)
# ---------------------------------------------------------------------------
@functools.partial(jax.jit, static_argnames=("L", "N", "X", "num_spks"))
def conv_tasnet_forward(x, params, *, L, N, X, num_spks):
    del num_spks                       # module's forward() only returns speaker 0
    stride = L // 2
    batch, samples = x.shape
    T = (samples - L) // stride + 1
    used = (T + 1) * stride
    Tp = ((T + LANE - 1) // LANE) * LANE              # lane-dense padded frame count

    # encoder framing without gather: stride == L/2 -> every frame is two
    # consecutive half-frames; reshape + transpose, padded to Tp frames.
    xh = x[:, :used].reshape(batch, T + 1, stride)
    xht = jnp.transpose(xh, (0, 2, 1))                # (B, stride, T+1)
    xht = jnp.pad(xht, ((0, 0), (0, 0), (0, Tp - T)))

    Bch = params['proj_w'].shape[0]
    w_act, output = encoder_cln_proj(
        xht, params['enc_w'], params['enc_v'],
        params['proj_w'], params['proj_b'].reshape(Bch, 1), Tp=Tp)

    # entire TCN (all R*X blocks) in one fused pallas_call
    skip = tcn_stack(output, params, X=X, T_valid=T, Tp=Tp)

    # mask (only speaker 0 is consumed downstream) + decoder matmul
    mw0 = params['mask_w'][:N]
    mb0 = params['mask_b'][:N].reshape(N, 1)
    dec_wt = params['dec_w'].T                        # (L, N): MXU-natural orientation
    s0, frames = mask_and_decode(skip, w_act, mw0, mb0, dec_wt)

    s0 = s0[:, :, :T]
    frames = frames[:, :, :T]

    # overlap-add (stride == L/2): output half-frame h = Fa[:, h] + Fb[:, h-1]
    fa = jnp.transpose(frames[:, :stride, :], (0, 2, 1))   # (B, T, stride)
    fb = jnp.transpose(frames[:, stride:, :], (0, 2, 1))
    zero = jnp.zeros((batch, 1, stride), jnp.float32)
    out = (jnp.concatenate([fa, zero], axis=1) +
           jnp.concatenate([zero, fb], axis=1)).reshape(batch, used)
    out = out + params['dec_b']                       # scalar bias, single out channel
    return out, s0


# ---------------------------------------------------------------------------
# Deterministic parameter construction (pre-stacked / packed layouts)
# ---------------------------------------------------------------------------
def init_params(key, *, L, N, X, R, B, H, S, P, num_spks):
    assert S == B, "skip_conv emits in_channels (B); the mask conv consumes S == B"
    keys = iter(jax.random.split(key, 32))

    def rnd(shape, scale=0.1):
        return (scale * jax.random.normal(next(keys), shape)).astype(jnp.float32)

    nb = R * X
    b1 = rnd((nb, H), 0.01)
    bd = rnd((nb, H), 0.01)
    ones_h = jnp.ones((nb, H), jnp.float32)
    zeros_h = jnp.zeros((nb, H), jnp.float32)
    ws = rnd((nb, B, H))
    wk = rnd((nb, B, H))
    bs = rnd((nb, B), 0.01)
    bk = rnd((nb, B), 0.01)
    params = {
        'enc_w': rnd((N, L)),
        'enc_v': jnp.stack([rnd((N,), 0.01),                 # encoder bias
                            jnp.ones((N,), jnp.float32),     # cLN gamma
                            jnp.zeros((N,), jnp.float32)],   # cLN beta
                           axis=1),                          # (N, 3)
        'proj_w': rnd((B, N)), 'proj_b': rnd((B,), 0.01),
        'w1': rnd((nb, H, B)),
        'wd': rnd((nb, H, P)),
        'wrs': jnp.concatenate([ws, wk], axis=1),            # (nb, 2B, H)
        'hv': jnp.stack([b1, ones_h, zeros_h, bd, ones_h, zeros_h], axis=-1),  # (nb,H,6)
        'bv': jnp.concatenate([bs, bk], axis=1)[..., None],                    # (nb,2B,1)
        'mask_w': rnd((num_spks * N, S)), 'mask_b': rnd((num_spks * N,), 0.01),
        'dec_w': rnd((N, L)), 'dec_b': jnp.float32(0.01),
    }
    return params


if __name__ == "__main__":
    # Small config consistent with the module (scaled-down defaults)
    L, N, X, R, B, H, S, P = 16, 64, 2, 1, 32, 64, 32, 3
    num_spks = 2
    batch, samples = 2, 136            # -> T = 16 encoder frames, decoder emits 136

    key = jax.random.PRNGKey(0)
    k_x, k_p = jax.random.split(key)
    x = jax.random.normal(k_x, (batch, samples), dtype=jnp.float32)
    params = init_params(k_p, L=L, N=N, X=X, R=R, B=B, H=H, S=S, P=P,
                         num_spks=num_spks)

    out, s0 = conv_tasnet_forward(x, params, L=L, N=N, X=X, num_spks=num_spks)
    jax.block_until_ready(out)
    jax.block_until_ready(s0)

    T = (samples - L) // (L // 2) + 1
    assert out.shape == (batch, samples), out.shape
    assert s0.shape == (batch, N, T), s0.shape
    assert bool(jnp.all(jnp.isfinite(out))) and bool(jnp.all(jnp.isfinite(s0)))
    print("KERNEL_OK")
</pallas_src>

<mosaic_0001>
module attributes {stable_mosaic.version = 11 : i64} {
  func.func @kernel(%arg0: i32, %arg1: memref<1x32x128xf32, #tpu.memory_space<vmem>>, %arg2: memref<1x64x128xf32, #tpu.memory_space<vmem>>, %arg3: memref<64x32xf32, #tpu.memory_space<vmem>>, %arg4: memref<64x1xf32, #tpu.memory_space<vmem>>, %arg5: memref<16x64xf32, #tpu.memory_space<vmem>>, %arg6: memref<1x64x128xf32, #tpu.memory_space<vmem>>, %arg7: memref<1x16x128xf32, #tpu.memory_space<vmem>>) attributes {dimension_semantics = [#tpu.dimension_semantics<parallel>], iteration_bounds = array<i64: 2>, scalar_prefetch = 0 : i64, scratch_operands = 0 : i64, tpu.core_type = #tpu.core_type<tc>, window_params = [{transform_indices = @transform_0, window_bounds = array<i64: 1, 32, 128>}, {transform_indices = @transform_1, window_bounds = array<i64: 1, 64, 128>}, {pipeline_mode = #tpu.pipeline_mode<synchronous>, transform_indices = @transform_2, window_bounds = array<i64: 64, 32>}, {pipeline_mode = #tpu.pipeline_mode<synchronous>, transform_indices = @transform_3, window_bounds = array<i64: 64, 1>}, {pipeline_mode = #tpu.pipeline_mode<synchronous>, transform_indices = @transform_4, window_bounds = array<i64: 16, 64>}, {transform_indices = @transform_5, window_bounds = array<i64: 1, 64, 128>}, {transform_indices = @transform_6, window_bounds = array<i64: 1, 16, 128>}]} {
    %c0 = arith.constant 0 : index
    %c0_0 = arith.constant 0 : index
    %c0_1 = arith.constant 0 : index
    %0 = vector.load %arg1[%c0, %c0_0, %c0_1] : memref<1x32x128xf32, #tpu.memory_space<vmem>>, vector<1x32x128xf32>
    %1 = vector.shape_cast %0 : vector<1x32x128xf32> to vector<32x128xf32>
    %cst = arith.constant 0.000000e+00 : f32
    %2 = vector.broadcast %cst : f32 to vector<32x128xf32>
    %3 = arith.cmpf oge, %1, %2 : vector<32x128xf32>
    %cst_2 = arith.constant 2.500000e-01 : f32
    %4 = vector.broadcast %cst_2 : f32 to vector<32x128xf32>
    %5 = arith.mulf %4, %1 : vector<32x128xf32>
    %6 = arith.select %3, %1, %5 : vector<32x128xi1>, vector<32x128xf32>
    %c0_3 = arith.constant 0 : index
    %c0_4 = arith.constant 0 : index
    %7 = vector.load %arg3[%c0_3, %c0_4] : memref<64x32xf32, #tpu.memory_space<vmem>>, vector<64x32xf32>
    %cst_5 = arith.constant dense<0.000000e+00> : vector<64x128xf32>
    %8 = tpu.matmul %7, %6, %cst_5 {dimension_numbers = #tpu.dot_dimension_numbers<[1], [0], [0], [1], [0, 0, 1, 1], [], []>} : vector<64x32xf32>, vector<32x128xf32>, vector<64x128xf32> -> vector<64x128xf32>
    %c0_6 = arith.constant 0 : index
    %c0_7 = arith.constant 0 : index
    %9 = vector.load %arg4[%c0_6, %c0_7] : memref<64x1xf32, #tpu.memory_space<vmem>>, vector<64x1xf32>
    %10 = vector.broadcast %9 : vector<64x1xf32> to vector<64x128xf32>
    %11 = arith.addf %8, %10 : vector<64x128xf32>
    %cst_8 = arith.constant 0.000000e+00 : f32
    %12 = vector.broadcast %cst_8 : f32 to vector<64x128xf32>
    %13 = arith.maximumf %11, %12 : vector<64x128xf32>
    %c0_9 = arith.constant 0 : index
    %c0_10 = arith.constant 0 : index
    %c0_11 = arith.constant 0 : index
    %14 = vector.load %arg2[%c0_9, %c0_10, %c0_11] : memref<1x64x128xf32, #tpu.memory_space<vmem>>, vector<1x64x128xf32>
    %15 = vector.shape_cast %14 : vector<1x64x128xf32> to vector<64x128xf32>
    %16 = arith.mulf %13, %15 : vector<64x128xf32>
    %c0_12 = arith.constant 0 : index
    %c0_13 = arith.constant 0 : index
    %c0_14 = arith.constant 0 : index
    %17 = vector.load %arg6[%c0_12, %c0_13, %c0_14] : memref<1x64x128xf32, #tpu.memory_space<vmem>>, vector<1x64x128xf32>
    %18 = vector.shape_cast %17 : vector<1x64x128xf32> to vector<64x128xf32>
    %19 = vector.shape_cast %16 : vector<64x128xf32> to vector<1x64x128xf32>
    tpu.vector_store %arg6[%c0_12, %c0_13, %c0_14], %19 {strides = array<i32>} : memref<1x64x128xf32, #tpu.memory_space<vmem>>, vector<1x64x128xf32>,
    %c0_15 = arith.constant 0 : index
    %c0_16 = arith.constant 0 : index
    %20 = vector.load %arg5[%c0_15, %c0_16] : memref<16x64xf32, #tpu.memory_space<vmem>>, vector<16x64xf32>
    %cst_17 = arith.constant dense<0.000000e+00> : vector<16x128xf32>
    %21 = tpu.matmul %20, %16, %cst_17 {dimension_numbers = #tpu.dot_dimension_numbers<[1], [0], [0], [1], [0, 0, 1, 1], [], []>} : vector<16x64xf32>, vector<64x128xf32>, vector<16x128xf32> -> vector<16x128xf32>
    %c0_18 = arith.constant 0 : index
    %c0_19 = arith.constant 0 : index
    %c0_20 = arith.constant 0 : index
    %22 = vector.load %arg7[%c0_18, %c0_19, %c0_20] : memref<1x16x128xf32, #tpu.memory_space<vmem>>, vector<1x16x128xf32>
    %23 = vector.shape_cast %22 : vector<1x16x128xf32> to vector<16x128xf32>
    %24 = vector.shape_cast %21 : vector<16x128xf32> to vector<1x16x128xf32>
    tpu.vector_store %arg7[%c0_18, %c0_19, %c0_20], %24 {strides = array<i32>} : memref<1x16x128xf32, #tpu.memory_space<vmem>>, vector<1x16x128xf32>,
    return
  }
  func.func @transform_0(%arg0: i32) -> (i32, i32, i32) {
    %c0_i32 = arith.constant 0 : i32
    %c0_i32_0 = arith.constant 0 : i32
    %c0_i32_1 = arith.constant 0 : i32
    return %arg0, %c0_i32, %c0_i32_0 : i32, i32, i32
  }
  func.func @transform_1(%arg0: i32) -> (i32, i32, i32) {
    %c0_i32 = arith.constant 0 : i32
    %c0_i32_0 = arith.constant 0 : i32
    %c0_i32_1 = arith.constant 0 : i32
    return %arg0, %c0_i32, %c0_i32_0 : i32, i32, i32
  }
  func.func @transform_2(%arg0: i32) -> (i32, i32) {
    %c0_i32 = arith.constant 0 : i32
    %c0_i32_0 = arith.constant 0 : i32
    %c0_i32_1 = arith.constant 0 : i32
    return %c0_i32, %c0_i32_0 : i32, i32
  }
  func.func @transform_3(%arg0: i32) -> (i32, i32) {
    %c0_i32 = arith.constant 0 : i32
    %c0_i32_0 = arith.constant 0 : i32
    %c0_i32_1 = arith.constant 0 : i32
    return %c0_i32, %c0_i32_0 : i32, i32
  }
  func.func @transform_4(%arg0: i32) -> (i32, i32) {
    %c0_i32 = arith.constant 0 : i32
    %c0_i32_0 = arith.constant 0 : i32
    %c0_i32_1 = arith.constant 0 : i32
    return %c0_i32, %c0_i32_0 : i32, i32
  }
  func.func @transform_5(%arg0: i32) -> (i32, i32, i32) {
    %c0_i32 = arith.constant 0 : i32
    %c0_i32_0 = arith.constant 0 : i32
    %c0_i32_1 = arith.constant 0 : i32
    return %arg0, %c0_i32, %c0_i32_0 : i32, i32, i32
  }
  func.func @transform_6(%arg0: i32) -> (i32, i32, i32) {
    %c0_i32 = arith.constant 0 : i32
    %c0_i32_0 = arith.constant 0 : i32
    %c0_i32_1 = arith.constant 0 : i32
    return %arg0, %c0_i32, %c0_i32_0 : i32, i32, i32
  }
}

module attributes {stable_mosaic.version = 11 : i64} {
  func.func @kernel(%arg0: i32, %arg1: memref<1x8x129xf32, #tpu.memory_space<vmem>>, %arg2: memref<64x16xf32, #tpu.memory_space<vmem>>, %arg3: memref<64x3xf32, #tpu.memory_space<vmem>>, %arg4: memref<32x64xf32, #tpu.memory_space<vmem>>, %arg5: memref<32x1xf32, #tpu.memory_space<vmem>>, %arg6: memref<1x64x128xf32, #tpu.memory_space<vmem>>, %arg7: memref<1x32x128xf32, #tpu.memory_space<vmem>>) attributes {dimension_semantics = [#tpu.dimension_semantics<parallel>], iteration_bounds = array<i64: 2>, scalar_prefetch = 0 : i64, scratch_operands = 0 : i64, tpu.core_type = #tpu.core_type<tc>, window_params = [{transform_indices = @transform_0, window_bounds = array<i64: 1, 8, 129>}, {pipeline_mode = #tpu.pipeline_mode<synchronous>, transform_indices = @transform_1, window_bounds = array<i64: 64, 16>}, {pipeline_mode = #tpu.pipeline_mode<synchronous>, transform_indices = @transform_2, window_bounds = array<i64: 64, 3>}, {pipeline_mode = #tpu.pipeline_mode<synchronous>, transform_indices = @transform_3, window_bounds = array<i64: 32, 64>}, {pipeline_mode = #tpu.pipeline_mode<synchronous>, transform_indices = @transform_4, window_bounds = array<i64: 32, 1>}, {transform_indices = @transform_5, window_bounds = array<i64: 1, 64, 128>}, {transform_indices = @transform_6, window_bounds = array<i64: 1, 32, 128>}]} {
    %c0 = arith.constant 0 : index
    %c0_0 = arith.constant 0 : index
    %c0_1 = arith.constant 0 : index
    %0 = vector.load %arg1[%c0, %c0_0, %c0_1] : memref<1x8x129xf32, #tpu.memory_space<vmem>>, vector<1x8x129xf32>
    %1 = vector.shape_cast %0 : vector<1x8x129xf32> to vector<8x129xf32>
    %2 = vector.extract_strided_slice %1 {offsets = [0, 0], sizes = [8, 128], strides = [1, 1]} : vector<8x129xf32> to vector<8x128xf32>
    %3 = vector.extract_strided_slice %1 {offsets = [0, 1], sizes = [8, 128], strides = [1, 1]} : vector<8x129xf32> to vector<8x128xf32>
    %4 = tpu.concatenate %2, %3 in 0 : vector<8x128xf32>, vector<8x128xf32> -> vector<16x128xf32>
    %c0_2 = arith.constant 0 : index
    %c0_3 = arith.constant 0 : index
    %5 = vector.load %arg2[%c0_2, %c0_3] : memref<64x16xf32, #tpu.memory_space<vmem>>, vector<64x16xf32>
    %cst = arith.constant dense<0.000000e+00> : vector<64x128xf32>
    %6 = tpu.matmul %5, %4, %cst {dimension_numbers = #tpu.dot_dimension_numbers<[1], [0], [0], [1], [0, 0, 1, 1], [], []>} : vector<64x16xf32>, vector<16x128xf32>, vector<64x128xf32> -> vector<64x128xf32>
    %c0_4 = arith.constant 0 : index
    %c0_5 = arith.constant 0 : index
    %7 = vector.load %arg3[%c0_4, %c0_5] : memref<64x3xf32, #tpu.memory_space<vmem>>, vector<64x1xf32>
    %8 = vector.broadcast %7 : vector<64x1xf32> to vector<64x128xf32>
    %9 = arith.addf %6, %8 : vector<64x128xf32>
    %cst_6 = arith.constant 0.000000e+00 : f32
    %10 = vector.broadcast %cst_6 : f32 to vector<64x128xf32>
    %11 = arith.maximumf %9, %10 : vector<64x128xf32>
    %c0_7 = arith.constant 0 : index
    %c0_8 = arith.constant 0 : index
    %c0_9 = arith.constant 0 : index
    %12 = vector.load %arg6[%c0_7, %c0_8, %c0_9] : memref<1x64x128xf32, #tpu.memory_space<vmem>>, vector<1x64x128xf32>
    %13 = vector.shape_cast %12 : vector<1x64x128xf32> to vector<64x128xf32>
    %14 = vector.shape_cast %11 : vector<64x128xf32> to vector<1x64x128xf32>
    tpu.vector_store %arg6[%c0_7, %c0_8, %c0_9], %14 {strides = array<i32>} : memref<1x64x128xf32, #tpu.memory_space<vmem>>, vector<1x64x128xf32>,
    %cst_10 = arith.constant dense<0.000000e+00> : vector<128xf32>
    %15 = vector.multi_reduction <add>, %11, %cst_10 [0] : vector<64x128xf32> to vector<128xf32>
    %16 = vector.shape_cast %15 : vector<128xf32> to vector<1x128xf32>
    %cst_11 = arith.constant 6.400000e+01 : f32
    %17 = vector.broadcast %cst_11 : f32 to vector<1x128xf32>
    %18 = arith.divf %16, %17 : vector<1x128xf32>
    %19 = vector.broadcast %18 : vector<1x128xf32> to vector<64x128xf32>
    %20 = arith.subf %11, %19 : vector<64x128xf32>
    %21 = arith.mulf %20, %20 : vector<64x128xf32>
    %cst_12 = arith.constant dense<0.000000e+00> : vector<128xf32>
    %22 = vector.multi_reduction <add>, %21, %cst_12 [0] : vector<64x128xf32> to vector<128xf32>
    %23 = vector.shape_cast %22 : vector<128xf32> to vector<1x128xf32>
    %cst_13 = arith.constant 6.400000e+01 : f32
    %24 = vector.broadcast %cst_13 : f32 to vector<1x128xf32>
    %25 = arith.divf %23, %24 : vector<1x128xf32>
    %26 = vector.broadcast %18 : vector<1x128xf32> to vector<64x128xf32>
    %27 = arith.subf %11, %26 : vector<64x128xf32>
    %cst_14 = arith.constant 9.99999974E-6 : f32
    %28 = vector.broadcast %cst_14 : f32 to vector<1x128xf32>
    %29 = arith.addf %25, %28 : vector<1x128xf32>
    %30 = math.rsqrt %29 : vector<1x128xf32>
    %31 = vector.broadcast %30 : vector<1x128xf32> to vector<64x128xf32>
    %32 = arith.mulf %27, %31 : vector<64x128xf32>
    %c0_15 = arith.constant 0 : index
    %c1 = arith.constant 1 : index
    %33 = vector.load %arg3[%c0_15, %c1] : memref<64x3xf32, #tpu.memory_space<vmem>>, vector<64x1xf32>
    %34 = vector.broadcast %33 : vector<64x1xf32> to vector<64x128xf32>
    %35 = arith.mulf %32, %34 : vector<64x128xf32>
    %c0_16 = arith.constant 0 : index
    %c2 = arith.constant 2 : index
    %36 = vector.load %arg3[%c0_16, %c2] : memref<64x3xf32, #tpu.memory_space<vmem>>, vector<64x1xf32>
    %37 = vector.broadcast %36 : vector<64x1xf32> to vector<64x128xf32>
    %38 = arith.addf %35, %37 : vector<64x128xf32>
    %c0_17 = arith.constant 0 : index
    %c0_18 = arith.constant 0 : index
    %39 = vector.load %arg4[%c0_17, %c0_18] : memref<32x64xf32, #tpu.memory_space<vmem>>, vector<32x64xf32>
    %cst_19 = arith.constant dense<0.000000e+00> : vector<32x128xf32>
    %40 = tpu.matmul %39, %38, %cst_19 {dimension_numbers = #tpu.dot_dimension_numbers<[1], [0], [0], [1], [0, 0, 1, 1], [], []>} : vector<32x64xf32>, vector<64x128xf32>, vector<32x128xf32> -> vector<32x128xf32>
    %c0_20 = arith.constant 0 : index
    %c0_21 = arith.constant 0 : index
    %41 = vector.load %arg5[%c0_20, %c0_21] : memref<32x1xf32, #tpu.memory_space<vmem>>, vector<32x1xf32>
    %42 = vector.broadcast %41 : vector<32x1xf32> to vector<32x128xf32>
    %43 = arith.addf %40, %42 : vector<32x128xf32>
    %c0_22 = arith.constant 0 : index
    %c0_23 = arith.constant 0 : index
    %c0_24 = arith.constant 0 : index
    %44 = vector.load %arg7[%c0_22, %c0_23, %c0_24] : memref<1x32x128xf32, #tpu.memory_space<vmem>>, vector<1x32x128xf32>
    %45 = vector.shape_cast %44 : vector<1x32x128xf32> to vector<32x128xf32>
    %46 = vector.shape_cast %43 : vector<32x128xf32> to vector<1x32x128xf32>
    tpu.vector_store %arg7[%c0_22, %c0_23, %c0_24], %46 {strides = array<i32>} : memref<1x32x128xf32, #tpu.memory_space<vmem>>, vector<1x32x128xf32>,
    return
  }
  func.func @transform_0(%arg0: i32) -> (i32, i32, i32) {
    %c0_i32 = arith.constant 0 : i32
    %c0_i32_0 = arith.constant 0 : i32
    %c0_i32_1 = arith.constant 0 : i32
    return %arg0, %c0_i32, %c0_i32_0 : i32, i32, i32
  }
  func.func @transform_1(%arg0: i32) -> (i32, i32) {
    %c0_i32 = arith.constant 0 : i32
    %c0_i32_0 = arith.constant 0 : i32
    %c0_i32_1 = arith.constant 0 : i32
    return %c0_i32, %c0_i32_0 : i32, i32
  }
  func.func @transform_2(%arg0: i32) -> (i32, i32) {
    %c0_i32 = arith.constant 0 : i32
    %c0_i32_0 = arith.constant 0 : i32
    %c0_i32_1 = arith.constant 0 : i32
    return %c0_i32, %c0_i32_0 : i32, i32
  }
  func.func @transform_3(%arg0: i32) -> (i32, i32) {
    %c0_i32 = arith.constant 0 : i32
    %c0_i32_0 = arith.constant 0 : i32
    %c0_i32_1 = arith.constant 0 : i32
    return %c0_i32, %c0_i32_0 : i32, i32
  }
  func.func @transform_4(%arg0: i32) -> (i32, i32) {
    %c0_i32 = arith.constant 0 : i32
    %c0_i32_0 = arith.constant 0 : i32
    %c0_i32_1 = arith.constant 0 : i32
    return %c0_i32, %c0_i32_0 : i32, i32
  }
  func.func @transform_5(%arg0: i32) -> (i32, i32, i32) {
    %c0_i32 = arith.constant 0 : i32
    %c0_i32_0 = arith.constant 0 : i32
    %c0_i32_1 = arith.constant 0 : i32
    return %arg0, %c0_i32, %c0_i32_0 : i32, i32, i32
  }
  func.func @transform_6(%arg0: i32) -> (i32, i32, i32) {
    %c0_i32 = arith.constant 0 : i32
    %c0_i32_0 = arith.constant 0 : i32
    %c0_i32_1 = arith.constant 0 : i32
    return %arg0, %c0_i32, %c0_i32_0 : i32, i32, i32
  }
}

module attributes {stable_mosaic.version = 11 : i64} {
  func.func @kernel(%arg0: i32, %arg1: i32, %arg2: memref<1x32x128xf32, #tpu.memory_space<vmem>>, %arg3: memref<1x64x32xf32, #tpu.memory_space<vmem>>, %arg4: memref<1x64x3xf32, #tpu.memory_space<vmem>>, %arg5: memref<1x64x64xf32, #tpu.memory_space<vmem>>, %arg6: memref<1x64x6xf32, #tpu.memory_space<vmem>>, %arg7: memref<1x64x1xf32, #tpu.memory_space<vmem>>, %arg8: memref<1x32x128xf32, #tpu.memory_space<vmem>>, %arg9: memref<32x128xf32, #tpu.memory_space<vmem>>, %arg10: memref<64x132xf32, #tpu.memory_space<vmem>>) attributes {dimension_semantics = [#tpu.dimension_semantics<parallel>, #tpu.dimension_semantics<arbitrary>], iteration_bounds = array<i64: 2, 2>, scalar_prefetch = 0 : i64, scratch_operands = 2 : i64, tpu.core_type = #tpu.core_type<tc>, window_params = [{transform_indices = @transform_0, window_bounds = array<i64: 1, 32, 128>}, {transform_indices = @transform_1, window_bounds = array<i64: 1, 64, 32>}, {transform_indices = @transform_2, window_bounds = array<i64: 1, 64, 3>}, {transform_indices = @transform_3, window_bounds = array<i64: 1, 64, 64>}, {transform_indices = @transform_4, window_bounds = array<i64: 1, 64, 6>}, {transform_indices = @transform_5, window_bounds = array<i64: 1, 64, 1>}, {transform_indices = @transform_6, window_bounds = array<i64: 1, 32, 128>}]} {
    %c0_i32 = arith.constant 0 : i32
    %0 = arith.cmpi eq, %arg1, %c0_i32 : i32
    %1 = arith.extui %0 : i1 to i32
    %c0_i32_0 = arith.constant 0 : i32
    %2 = arith.cmpi ne, %1, %c0_i32_0 : i32
    scf.if %2 {
      %c0_51 = arith.constant 0 : index
      %c0_52 = arith.constant 0 : index
      %c0_53 = arith.constant 0 : index
      %123 = vector.load %arg2[%c0_51, %c0_52, %c0_53] : memref<1x32x128xf32, #tpu.memory_space<vmem>>, vector<1x32x128xf32>
      %124 = vector.shape_cast %123 : vector<1x32x128xf32> to vector<32x128xf32>
      %c0_54 = arith.constant 0 : index
      %c0_55 = arith.constant 0 : index
      %125 = vector.load %arg9[%c0_54, %c0_55] : memref<32x128xf32, #tpu.memory_space<vmem>>, vector<32x128xf32>
      tpu.vector_store %arg9[%c0_54, %c0_55], %124 {strides = array<i32>} : memref<32x128xf32, #tpu.memory_space<vmem>>, vector<32x128xf32>,
      %cst_56 = arith.constant 0.000000e+00 : f32
      %126 = vector.broadcast %cst_56 : f32 to vector<32x128xf32>
      %c0_57 = arith.constant 0 : index
      %c0_58 = arith.constant 0 : index
      %c0_59 = arith.constant 0 : index
      %127 = vector.load %arg8[%c0_57, %c0_58, %c0_59] : memref<1x32x128xf32, #tpu.memory_space<vmem>>, vector<1x32x128xf32>
      %128 = vector.shape_cast %127 : vector<1x32x128xf32> to vector<32x128xf32>
      %129 = vector.shape_cast %126 : vector<32x128xf32> to vector<1x32x128xf32>
      tpu.vector_store %arg8[%c0_57, %c0_58, %c0_59], %129 {strides = array<i32>} : memref<1x32x128xf32, #tpu.memory_space<vmem>>, vector<1x32x128xf32>,
      %cst_60 = arith.constant 0.000000e+00 : f32
      %130 = vector.broadcast %cst_60 : f32 to vector<64x132xf32>
      %c0_61 = arith.constant 0 : index
      %c0_62 = arith.constant 0 : index
      %131 = vector.load %arg10[%c0_61, %c0_62] : memref<64x132xf32, #tpu.memory_space<vmem>>, vector<64x132xf32>
      tpu.vector_store %arg10[%c0_61, %c0_62], %130 {strides = array<i32>} : memref<64x132xf32, #tpu.memory_space<vmem>>, vector<64x132xf32>,
    } else {
    }
    %3 = tpu.iota {dimensions = array<i32: 1>} : vector<1x128xi32>
    %c16_i32 = arith.constant 16 : i32
    %4 = vector.broadcast %c16_i32 : i32 to vector<1x128xi32>
    %5 = arith.cmpi slt, %3, %4 : vector<1x128xi32>
    %6 = arith.extui %5 : vector<1x128xi1> to vector<1x128xi32>
    %7 = arith.sitofp %6 : vector<1x128xi32> to vector<1x128xf32>
    %c0 = arith.constant 0 : index
    %c0_1 = arith.constant 0 : index
    %8 = vector.load %arg9[%c0, %c0_1] : memref<32x128xf32, #tpu.memory_space<vmem>>, vector<32x128xf32>
    %c0_2 = arith.constant 0 : index
    %c0_3 = arith.constant 0 : index
    %c0_4 = arith.constant 0 : index
    %9 = vector.load %arg6[%c0_2, %c0_3, %c0_4] : memref<1x64x6xf32, #tpu.memory_space<vmem>>, vector<1x64x6xf32>
    %10 = vector.shape_cast %9 : vector<1x64x6xf32> to vector<64x6xf32>
    %c0_5 = arith.constant 0 : index
    %c0_6 = arith.constant 0 : index
    %c0_7 = arith.constant 0 : index
    %11 = vector.load %arg3[%c0_5, %c0_6, %c0_7] : memref<1x64x32xf32, #tpu.memory_space<vmem>>, vector<1x64x32xf32>
    %12 = vector.shape_cast %11 : vector<1x64x32xf32> to vector<64x32xf32>
    %cst = arith.constant dense<0.000000e+00> : vector<64x128xf32>
    %13 = tpu.matmul %12, %8, %cst {dimension_numbers = #tpu.dot_dimension_numbers<[1], [0], [0], [1], [0, 0, 1, 1], [], []>} : vector<64x32xf32>, vector<32x128xf32>, vector<64x128xf32> -> vector<64x128xf32>
    %14 = vector.extract_strided_slice %10 {offsets = [0, 0], sizes = [64, 1], strides = [1, 1]} : vector<64x6xf32> to vector<64x1xf32>
    %15 = vector.broadcast %14 : vector<64x1xf32> to vector<64x128xf32>
    %16 = arith.addf %13, %15 : vector<64x128xf32>
    %cst_8 = arith.constant 0.000000e+00 : f32
    %17 = vector.broadcast %cst_8 : f32 to vector<64x128xf32>
    %18 = arith.cmpf oge, %16, %17 : vector<64x128xf32>
    %cst_9 = arith.constant 2.500000e-01 : f32
    %19 = vector.broadcast %cst_9 : f32 to vector<64x128xf32>
    %20 = arith.mulf %19, %16 : vector<64x128xf32>
    %21 = arith.select %18, %16, %20 : vector<64x128xi1>, vector<64x128xf32>
    %22 = vector.extract_strided_slice %10 {offsets = [0, 1], sizes = [64, 1], strides = [1, 1]} : vector<64x6xf32> to vector<64x1xf32>
    %23 = vector.extract_strided_slice %10 {offsets = [0, 2], sizes = [64, 1], strides = [1, 1]} : vector<64x6xf32> to vector<64x1xf32>
    %24 = vector.broadcast %7 : vector<1x128xf32> to vector<64x128xf32>
    %25 = arith.mulf %21, %24 : vector<64x128xf32>
    %26 = vector.shape_cast %25 : vector<64x128xf32> to vector<1x64x128xf32>
    %cst_10 = arith.constant dense<0.000000e+00> : vector<1xf32>
    %27 = vector.multi_reduction <add>, %26, %cst_10 [1, 2] : vector<1x64x128xf32> to vector<1xf32>
    %28 = vector.shape_cast %27 : vector<1xf32> to vector<1x1x1xf32>
    %29 = vector.extract %28[0, 0, 0] : f32 from vector<1x1x1xf32>
    %cst_11 = arith.constant 9.765625E-4 : f32
    %30 = arith.mulf %29, %cst_11 : f32
    %31 = arith.mulf %25, %25 : vector<64x128xf32>
    %32 = vector.shape_cast %31 : vector<64x128xf32> to vector<1x64x128xf32>
    %cst_12 = arith.constant dense<0.000000e+00> : vector<1xf32>
    %33 = vector.multi_reduction <add>, %32, %cst_12 [1, 2] : vector<1x64x128xf32> to vector<1xf32>
    %34 = vector.shape_cast %33 : vector<1xf32> to vector<1x1x1xf32>
    %35 = vector.extract %34[0, 0, 0] : f32 from vector<1x1x1xf32>
    %cst_13 = arith.constant 9.765625E-4 : f32
    %36 = arith.mulf %35, %cst_13 : f32
    %37 = arith.mulf %30, %30 : f32
    %38 = arith.subf %36, %37 : f32
    %cst_14 = arith.constant 0.000000e+00 : f32
    %39 = arith.maximumf %38, %cst_14 : f32
    %cst_15 = arith.constant 9.99999974E-6 : f32
    %40 = arith.addf %39, %cst_15 : f32
    %41 = math.rsqrt %40 : f32
    %42 = vector.broadcast %41 : f32 to vector<64x1xf32>
    %43 = arith.mulf %22, %42 : vector<64x1xf32>
    %44 = vector.broadcast %30 : f32 to vector<64x128xf32>
    %45 = arith.subf %21, %44 : vector<64x128xf32>
    %46 = vector.broadcast %43 : vector<64x1xf32> to vector<64x128xf32>
    %47 = arith.mulf %45, %46 : vector<64x128xf32>
    %48 = vector.broadcast %23 : vector<64x1xf32> to vector<64x128xf32>
    %49 = arith.addf %47, %48 : vector<64x128xf32>
    %50 = vector.broadcast %7 : vector<1x128xf32> to vector<64x128xf32>
    %51 = arith.mulf %49, %50 : vector<64x128xf32>
    %c0_16 = arith.constant 0 : index
    %c2 = arith.constant 2 : index
    %52 = vector.load %arg10[%c0_16, %c2] : memref<64x132xf32, #tpu.memory_space<vmem>>, vector<64x128xf32>
    tpu.vector_store %arg10[%c0_16, %c2], %51 {strides = array<i32>} : memref<64x132xf32, #tpu.memory_space<vmem>>, vector<64x128xf32>,
    %c0_17 = arith.constant 0 : index
    %c0_18 = arith.constant 0 : index
    %53 = vector.load %arg10[%c0_17, %c0_18] : memref<64x132xf32, #tpu.memory_space<vmem>>, vector<64x132xf32>
    %c0_19 = arith.constant 0 : index
    %c0_20 = arith.constant 0 : index
    %c0_21 = arith.constant 0 : index
    %54 = vector.load %arg4[%c0_19, %c0_20, %c0_21] : memref<1x64x3xf32, #tpu.memory_space<vmem>>, vector<1x64x3xf32>
    %55 = vector.shape_cast %54 : vector<1x64x3xf32> to vector<64x3xf32>
    %c2_i32 = arith.constant 2 : i32
    %c0_i32_22 = arith.constant 0 : i32
    %56 = arith.cmpi eq, %c2_i32, %c0_i32_22 : i32
    %c1_i32 = arith.constant 1 : i32
    %57 = arith.select %56, %c1_i32, %c2_i32 : i32
    %58 = arith.remsi %arg1, %57 : i32
    %c0_i32_23 = arith.constant 0 : i32
    %59 = arith.cmpi ne, %58, %c0_i32_23 : i32
    %c0_i32_24 = arith.constant 0 : i32
    %60 = arith.cmpi slt, %58, %c0_i32_24 : i32
    %c0_i32_25 = arith.constant 0 : i32
    %61 = arith.cmpi slt, %57, %c0_i32_25 : i32
    %62 = arith.xori %60, %61 : i1
    %63 = arith.andi %62, %59 : i1
    %64 = arith.addi %58, %57 : i32
    %65 = arith.select %63, %64, %58 : i32
    %c0_i32_26 = arith.constant 0 : i32
    %66 = arith.cmpi eq, %65, %c0_i32_26 : i32
    %67 = arith.extui %66 : i1 to i32
    %c0_i32_27 = arith.constant 0 : i32
    %68 = arith.cmpi ne, %67, %c0_i32_27 : i32
    %69 = scf.if %68 -> (vector<64x128xf32>) {
      %123 = vector.extract_strided_slice %55 {offsets = [0, 0], sizes = [64, 1], strides = [1, 1]} : vector<64x3xf32> to vector<64x1xf32>
      %124 = vector.extract_strided_slice %53 {offsets = [0, 1], sizes = [64, 128], strides = [1, 1]} : vector<64x132xf32> to vector<64x128xf32>
      %125 = vector.broadcast %123 : vector<64x1xf32> to vector<64x128xf32>
      %126 = arith.mulf %125, %124 : vector<64x128xf32>
      %127 = vector.extract_strided_slice %55 {offsets = [0, 1], sizes = [64, 1], strides = [1, 1]} : vector<64x3xf32> to vector<64x1xf32>
      %128 = vector.extract_strided_slice %53 {offsets = [0, 2], sizes = [64, 128], strides = [1, 1]} : vector<64x132xf32> to vector<64x128xf32>
      %129 = vector.broadcast %127 : vector<64x1xf32> to vector<64x128xf32>
      %130 = arith.mulf %129, %128 : vector<64x128xf32>
      %131 = arith.addf %126, %130 : vector<64x128xf32>
      %132 = vector.extract_strided_slice %55 {offsets = [0, 2], sizes = [64, 1], strides = [1, 1]} : vector<64x3xf32> to vector<64x1xf32>
      %133 = vector.extract_strided_slice %53 {offsets = [0, 3], sizes = [64, 128], strides = [1, 1]} : vector<64x132xf32> to vector<64x128xf32>
      %134 = vector.broadcast %132 : vector<64x1xf32> to vector<64x128xf32>
      %135 = arith.mulf %134, %133 : vector<64x128xf32>
      %136 = arith.addf %131, %135 : vector<64x128xf32>
      scf.yield %136 : vector<64x128xf32>
    } else {
      %123 = vector.extract_strided_slice %55 {offsets = [0, 0], sizes = [64, 1], strides = [1, 1]} : vector<64x3xf32> to vector<64x1xf32>
      %124 = vector.extract_strided_slice %53 {offsets = [0, 0], sizes = [64, 128], strides = [1, 1]} : vector<64x132xf32> to vector<64x128xf32>
      %125 = vector.broadcast %123 : vector<64x1xf32> to vector<64x128xf32>
      %126 = arith.mulf %125, %124 : vector<64x128xf32>
      %127 = vector.extract_strided_slice %55 {offsets = [0, 1], sizes = [64, 1], strides = [1, 1]} : vector<64x3xf32> to vector<64x1xf32>
      %128 = vector.extract_strided_slice %53 {offsets = [0, 2], sizes = [64, 128], strides = [1, 1]} : vector<64x132xf32> to vector<64x128xf32>
      %129 = vector.broadcast %127 : vector<64x1xf32> to vector<64x128xf32>
      %130 = arith.mulf %129, %128 : vector<64x128xf32>
      %131 = arith.addf %126, %130 : vector<64x128xf32>
      %132 = vector.extract_strided_slice %55 {offsets = [0, 2], sizes = [64, 1], strides = [1, 1]} : vector<64x3xf32> to vector<64x1xf32>
      %133 = vector.extract_strided_slice %53 {offsets = [0, 4], sizes = [64, 128], strides = [1, 1]} : vector<64x132xf32> to vector<64x128xf32>
      %134 = vector.broadcast %132 : vector<64x1xf32> to vector<64x128xf32>
      %135 = arith.mulf %134, %133 : vector<64x128xf32>
      %136 = arith.addf %131, %135 : vector<64x128xf32>
      scf.yield %136 : vector<64x128xf32>
    }
    %70 = vector.extract_strided_slice %10 {offsets = [0, 3], sizes = [64, 1], strides = [1, 1]} : vector<64x6xf32> to vector<64x1xf32>
    %71 = vector.broadcast %70 : vector<64x1xf32> to vector<64x128xf32>
    %72 = arith.addf %69, %71 : vector<64x128xf32>
    %cst_28 = arith.constant 0.000000e+00 : f32
    %73 = vector.broadcast %cst_28 : f32 to vector<64x128xf32>
    %74 = arith.cmpf oge, %72, %73 : vector<64x128xf32>
    %cst_29 = arith.constant 2.500000e-01 : f32
    %75 = vector.broadcast %cst_29 : f32 to vector<64x128xf32>
    %76 = arith.mulf %75, %72 : vector<64x128xf32>
    %77 = arith.select %74, %72, %76 : vector<64x128xi1>, vector<64x128xf32>
    %78 = vector.extract_strided_slice %10 {offsets = [0, 4], sizes = [64, 1], strides = [1, 1]} : vector<64x6xf32> to vector<64x1xf32>
    %79 = vector.extract_strided_slice %10 {offsets = [0, 5], sizes = [64, 1], strides = [1, 1]} : vector<64x6xf32> to vector<64x1xf32>
    %80 = vector.broadcast %7 : vector<1x128xf32> to vector<64x128xf32>
    %81 = arith.mulf %77, %80 : vector<64x128xf32>
    %82 = vector.shape_cast %81 : vector<64x128xf32> to vector<1x64x128xf32>
    %cst_30 = arith.constant dense<0.000000e+00> : vector<1xf32>
    %83 = vector.multi_reduction <add>, %82, %cst_30 [1, 2] : vector<1x64x128xf32> to vector<1xf32>
    %84 = vector.shape_cast %83 : vector<1xf32> to vector<1x1x1xf32>
    %85 = vector.extract %84[0, 0, 0] : f32 from vector<1x1x1xf32>
    %cst_31 = arith.constant 9.765625E-4 : f32
    %86 = arith.mulf %85, %cst_31 : f32
    %87 = arith.mulf %81, %81 : vector<64x128xf32>
    %88 = vector.shape_cast %87 : vector<64x128xf32> to vector<1x64x128xf32>
    %cst_32 = arith.constant dense<0.000000e+00> : vector<1xf32>
    %89 = vector.multi_reduction <add>, %88, %cst_32 [1, 2] : vector<1x64x128xf32> to vector<1xf32>
    %90 = vector.shape_cast %89 : vector<1xf32> to vector<1x1x1xf32>
    %91 = vector.extract %90[0, 0, 0] : f32 from vector<1x1x1xf32>
    %cst_33 = arith.constant 9.765625E-4 : f32
    %92 = arith.mulf %91, %cst_33 : f32
    %93 = arith.mulf %86, %86 : f32
    %94 = arith.subf %92, %93 : f32
    %cst_34 = arith.constant 0.000000e+00 : f32
    %95 = arith.maximumf %94, %cst_34 : f32
    %cst_35 = arith.constant 9.99999974E-6 : f32
    %96 = arith.addf %95, %cst_35 : f32
    %97 = math.rsqrt %96 : f32
    %98 = vector.broadcast %97 : f32 to vector<64x1xf32>
    %99 = arith.mulf %78, %98 : vector<64x1xf32>
    %100 = vector.broadcast %86 : f32 to vector<64x128xf32>
    %101 = arith.subf %77, %100 : vector<64x128xf32>
    %102 = vector.broadcast %99 : vector<64x1xf32> to vector<64x128xf32>
    %103 = arith.mulf %101, %102 : vector<64x128xf32>
    %104 = vector.broadcast %79 : vector<64x1xf32> to vector<64x128xf32>
    %105 = arith.addf %103, %104 : vector<64x128xf32>
    %c0_36 = arith.constant 0 : index
    %c0_37 = arith.constant 0 : index
    %c0_38 = arith.constant 0 : index
    %106 = vector.load %arg5[%c0_36, %c0_37, %c0_38] : memref<1x64x64xf32, #tpu.memory_space<vmem>>, vector<1x64x64xf32>
    %107 = vector.shape_cast %106 : vector<1x64x64xf32> to vector<64x64xf32>
    %cst_39 = arith.constant dense<0.000000e+00> : vector<64x128xf32>
    %108 = tpu.matmul %107, %105, %cst_39 {dimension_numbers = #tpu.dot_dimension_numbers<[1], [0], [0], [1], [0, 0, 1, 1], [], []>} : vector<64x64xf32>, vector<64x128xf32>, vector<64x128xf32> -> vector<64x128xf32>
    %c0_40 = arith.constant 0 : index
    %c0_41 = arith.constant 0 : index
    %c0_42 = arith.constant 0 : index
    %109 = vector.load %arg7[%c0_40, %c0_41, %c0_42] : memref<1x64x1xf32, #tpu.memory_space<vmem>>, vector<1x64x1xf32>
    %110 = vector.shape_cast %109 : vector<1x64x1xf32> to vector<64x1xf32>
    %111 = vector.broadcast %110 : vector<64x1xf32> to vector<64x128xf32>
    %112 = arith.addf %108, %111 : vector<64x128xf32>
    %113 = vector.extract_strided_slice %112 {offsets = [0, 0], sizes = [32, 128], strides = [1, 1]} : vector<64x128xf32> to vector<32x128xf32>
    %114 = arith.addf %8, %113 : vector<32x128xf32>
    %c0_43 = arith.constant 0 : index
    %c0_44 = arith.constant 0 : index
    %115 = vector.load %arg9[%c0_43, %c0_44] : memref<32x128xf32, #tpu.memory_space<vmem>>, vector<32x128xf32>
    tpu.vector_store %arg9[%c0_43, %c0_44], %114 {strides = array<i32>} : memref<32x128xf32, #tpu.memory_space<vmem>>, vector<32x128xf32>,
    %c0_45 = arith.constant 0 : index
    %c0_46 = arith.constant 0 : index
    %c0_47 = arith.constant 0 : index
    %116 = vector.load %arg8[%c0_45, %c0_46, %c0_47] : memref<1x32x128xf32, #tpu.memory_space<vmem>>, vector<1x32x128xf32>
    %117 = vector.shape_cast %116 : vector<1x32x128xf32> to vector<32x128xf32>
    %118 = vector.extract_strided_slice %112 {offsets = [32, 0], sizes = [32, 128], strides = [1, 1]} : vector<64x128xf32> to vector<32x128xf32>
    %119 = arith.addf %117, %118 : vector<32x128xf32>
    %c0_48 = arith.constant 0 : index
    %c0_49 = arith.constant 0 : index
    %c0_50 = arith.constant 0 : index
    %120 = vector.load %arg8[%c0_48, %c0_49, %c0_50] : memref<1x32x128xf32, #tpu.memory_space<vmem>>, vector<1x32x128xf32>
    %121 = vector.shape_cast %120 : vector<1x32x128xf32> to vector<32x128xf32>
    %122 = vector.shape_cast %119 : vector<32x128xf32> to vector<1x32x128xf32>
    tpu.vector_store %arg8[%c0_48, %c0_49, %c0_50], %122 {strides = array<i32>} : memref<1x32x128xf32, #tpu.memory_space<vmem>>, vector<1x32x128xf32>,
    return
  }
  func.func @transform_0(%arg0: i32, %arg1: i32) -> (i32, i32, i32) {
    %c0_i32 = arith.constant 0 : i32
    %c0_i32_0 = arith.constant 0 : i32
    %c0_i32_1 = arith.constant 0 : i32
    return %arg0, %c0_i32, %c0_i32_0 : i32, i32, i32
  }
  func.func @transform_1(%arg0: i32, %arg1: i32) -> (i32, i32, i32) {
    %c0_i32 = arith.constant 0 : i32
    %c0_i32_0 = arith.constant 0 : i32
    %c0_i32_1 = arith.constant 0 : i32
    return %arg1, %c0_i32, %c0_i32_0 : i32, i32, i32
  }
  func.func @transform_2(%arg0: i32, %arg1: i32) -> (i32, i32, i32) {
    %c0_i32 = arith.constant 0 : i32
    %c0_i32_0 = arith.constant 0 : i32
    %c0_i32_1 = arith.constant 0 : i32
    return %arg1, %c0_i32, %c0_i32_0 : i32, i32, i32
  }
  func.func @transform_3(%arg0: i32, %arg1: i32) -> (i32, i32, i32) {
    %c0_i32 = arith.constant 0 : i32
    %c0_i32_0 = arith.constant 0 : i32
    %c0_i32_1 = arith.constant 0 : i32
    return %arg1, %c0_i32, %c0_i32_0 : i32, i32, i32
  }
  func.func @transform_4(%arg0: i32, %arg1: i32) -> (i32, i32, i32) {
    %c0_i32 = arith.constant 0 : i32
    %c0_i32_0 = arith.constant 0 : i32
    %c0_i32_1 = arith.constant 0 : i32
    return %arg1, %c0_i32, %c0_i32_0 : i32, i32, i32
  }
  func.func @transform_5(%arg0: i32, %arg1: i32) -> (i32, i32, i32) {
    %c0_i32 = arith.constant 0 : i32
    %c0_i32_0 = arith.constant 0 : i32
    %c0_i32_1 = arith.constant 0 : i32
    return %arg1, %c0_i32, %c0_i32_0 : i32, i32, i32
  }
  func.func @transform_6(%arg0: i32, %arg1: i32) -> (i32, i32, i32) {
    %c0_i32 = arith.constant 0 : i32
    %c0_i32_0 = arith.constant 0 : i32
    %c0_i32_1 = arith.constant 0 : i32
    return %arg0, %c0_i32, %c0_i32_0 : i32, i32, i32
  }
}

</mosaic_0001>

<bundles_post_ra>
// kernel: conv_tasnet_forward.3
= control target key start
LH: loop header
LB: loop body
LE: loop exit
PB: predicated region body
PF: predicated region fallthrough
CT: control target
= control target key end

     0   :  { %s1035_s21 = smov 0   ;;  %s1154_s0 = inlined_call_operand.vmem [shape: f32[2,8,129], index: 0, kind: input, shape index: {}]   ;;  %s1155_s1 = inlined_call_operand.vmem [shape: f32[64,16], index: 1, kind: input, shape index: {}]   ;;  %s1156_s2 = inlined_call_operand.vmem [shape: f32[64,3], index: 2, kind: input, shape index: {}]   ;;  %s1157_s3 = inlined_call_operand.vmem [shape: f32[32,64], index: 3, kind: input, shape index: {}]   ;;  %s1158_s4 = inlined_call_operand.vmem [shape: f32[32,1], index: 4, kind: input, shape index: {}]   ;;  %s1159_s5 = inlined_call_operand.vmem [shape: f32[2,64,128], index: 5, kind: output, shape index: {0}]   ;;  %s1160_s6 = inlined_call_operand.vmem [shape: f32[2,32,128], index: 6, kind: output, shape index: {1}]  }
   0x1 LB: > { %s847_s22 = sadd.s32 4294967295, %s994_s21   ;;  %p851_p0 = scmp.ge.s32.totalorder %s994_s21, 1  ;;  %s994_s21 = sphi %s1035_s21, %s17_s21  }
   0x2   : > { %p215_p1 = scmp.lt.s32.totalorder %s994_s21, 3 }
   0x4   : > { %p216_p2 = pnand %p851_p0, %p215_p1 }
   0x5   : > { %p250_p3 = scmp.lt.s32.totalorder (!%p216_p2), %s847_s22, 1  ;;  %v276_v0 = vld [vmem:[%s1155_s1] sm:$0xff] (!%p216_p2)  ;;  %vm332_vm0 = vcmask (!%p216_p2), 130048   ;;  %s996_s29 = smov (!%p216_p2), 127   ;;  %v285_v4 = vld [vmem:[%s1156_s2 + $0x8] sm:$0xff] (!%p216_p2)  ;;  %v997_v5 = vmov (!%p216_p2), 0  }
   0x6   : > { %219 = sbr.rel (%p216_p2) target bundleno = 680 (0x2a8), region = 40  ;;  %901 = vmatprep.mubr.msk.f32.mxu0 (!%p216_p2), %vm332_vm0, %v276_v0  ;;  %973 = vset.pattern.permute.xlu1 (!%p216_p2), %v997_v5  ;;  %v284_v6 = vld [vmem:[%s1156_s2] sm:$0xff] (!%p216_p2)  ;;  %v286_v7 = vld [vmem:[%s1156_s2 + $0x10] sm:$0xff] (!%p216_p2)  ;;  %v287_v9 = vld [vmem:[%s1156_s2 + $0x18] sm:$0xff] (!%p216_p2)  ;;  %v998_v12 = vmov (!%p216_p2), 1   ;;  %v999_v14 = vmov (!%p216_p2), 2  }
   0x7   : > { %972 = vset.pattern.permute.xlu0 (!%p216_p2), %v997_v5  ;;  %299 = vperm.xlu1 (!%p216_p2), %973, %v285_v4   ;;  %v288_v8 = vld [vmem:[%s1156_s2 + $0x20] sm:$0xff] (!%p216_p2)  ;;  %v290_v10 = vld [vmem:[%s1156_s2 + $0x30] sm:$0xff] (!%p216_p2)  ;;  %v289_v11 = vld [vmem:[%s1156_s2 + $0x28] sm:$0xff] (!%p216_p2)  ;;  %vm273_vm1 = vcmask (!%p216_p2), 1039360   ;;  %vm657_vm2 = vcmask (!%p216_p2), 523264  }
   0x8   : > { %v291_v13 = vld [vmem:[%s1156_s2 + $0x38] sm:$0xff] (!%p216_p2)  ;;  %v277_v20 = vld [vmem:[%s1155_s1 + $0x8] sm:$0xff] (!%p216_p2)  ;;  %v278_v21 = vld [vmem:[%s1155_s1 + $0x10] sm:$0xff] (!%p216_p2) }
   0x9   : > { %v279_v22 = vld [vmem:[%s1155_s1 + $0x18] sm:$0xff] (!%p216_p2)  ;;  %v280_v23 = vld [vmem:[%s1155_s1 + $0x20] sm:$0xff] (!%p216_p2)  ;;  %v281_v24 = vld [vmem:[%s1155_s1 + $0x28] sm:$0xff] (!%p216_p2) }
   0xa   : > { %v282_v25 = vld [vmem:[%s1155_s1 + $0x30] sm:$0xff] (!%p216_p2)  ;;  %v283_v26 = vld [vmem:[%s1155_s1 + $0x38] sm:$0xff] (!%p216_p2)  ;;  %v629_v27 = vld [vmem:[%s1157_s3] sm:$0xff] (!%p216_p2) }
   0xb   : > { %304 = vperm.xlu1 (!%p216_p2), %973, %v286_v7   ;;  %929 = vmatprep.mubr.msk.f32.mxu1 (!%p216_p2), %vm657_vm2, %v629_v27  ;;  %v634_v28 = vld [vmem:[%s1158_s4 + $0x8] sm:$0xff] (!%p216_p2)  ;;  %v633_v29 = vld [vmem:[%s1158_s4] sm:$0xff] (!%p216_p2)  ;;  %v635_v30 = vld [vmem:[%s1158_s4 + $0x10] sm:$0xff] (!%p216_p2) }
   0xc   : > { %v636_v31 = vld [vmem:[%s1158_s4 + $0x18] sm:$0xff] (!%p216_p2) }
   0xd   : > { %s1162_s22 = smov (!%p250_p3, %s847_s22), 1 }
   0xe   : > { %s872_s25 = sshll.u32 %s1162_s22, 4  ;;  %s873_s26 = sshll.u32 %s1162_s22, 6 }
   0xf   : > { %s254_s28 = scalar_lea.vmem %s1154_s0, %s872_s25  ;;  %309 = vperm.xlu1 %973, %v287_v9   ;;  %s874_s12 = sshll.u32 %s1162_s22, 5 }
  0x10   : > { %v265_v1 = vld [vmem:[%s254_s28] sm:$0xff]  ;;  %v266_v2 = vld [vmem:[%s254_s28 + $0x8] sm:$0xff]  ;;  %s264_s15 = scalar_lea.vmem %s1160_s6, %s874_s12 }
  0x11   : > { %v967_v3 = vpack.i.bf16 %v266_v2, %v265_v1 }
  0x13   : > { %968 = vrot.lane.b32.xlu0 %v967_v3, %s996_s29  ;;  %319 = vperm.xlu1 %973, %v289_v11   ;;  %s1125_s29 = scalar_lea.vmem %s1159_s5, %s873_s26 }
  0x17   : > { %294 = vperm.xlu0 %972, %v284_v6   ;;  %329 = vperm.xlu1 %973, %v291_v13  }
  0x1b   : > { %314 = vperm.xlu0 %972, %v288_v8   ;;  %975 = vset.pattern.permute.xlu1 %v998_v12 }
  0x1c   : > { %548 = vperm.xlu1 %975, %v285_v4  }
  0x1f   : > { %324 = vperm.xlu0 %972, %v290_v10  }
  0x20   : > { %976 = vset.pattern.permute.xlu1 %v999_v14 }
  0x21   : > { %590 = vperm.xlu1 %976, %v284_v6  }
  0x23   : > { %974 = vset.pattern.permute.xlu0 %v998_v12 }
  0x24   : > { %543 = vperm.xlu0 %974, %v284_v6  }
  0x25   : > { %977 = vset.pattern.permute.xlu1 %v998_v12 }
  0x26   : > { %553 = vperm.xlu1 %977, %v286_v7  }
  0x28   : > { %563 = vperm.xlu0 %974, %v288_v8  }
  0x2a   : > { %558 = vperm.xlu1 %977, %v287_v9  }
  0x2c   : > { %979 = vset.pattern.permute.xlu0 %v999_v14 }
  0x2d   : > { %594 = vperm.xlu0 %979, %v285_v4  }
  0x2e   : > { %978 = vset.pattern.permute.xlu1 %v999_v14 }
  0x2f   : > { %602 = vperm.xlu1 %978, %v287_v9  }
  0x31   : > { %598 = vperm.xlu0 %979, %v286_v7  }
  0x33   : > { %980 = vset.pattern.permute.xlu1 %v998_v12 }
  0x34   : > { %568 = vperm.xlu1 %980, %v289_v11  }
  0x35   : > { %610 = vperm.xlu0 %979, %v289_v11  }
  0x38   : > { %981 = vset.pattern.permute.xlu1 %v999_v14 }
  0x39   : > { %614 = vperm.xlu0 %979, %v290_v10   ;;  %606 = vperm.xlu1 %981, %v288_v8  }
  0x3d   : > { %984 = vset.pattern.permute.xlu0 %v997_v5  ;;  %982 = vset.pattern.permute.xlu1 %v998_v12 }
  0x3e   : > { %573 = vperm.xlu1 %982, %v290_v10   ;;  %639 = vperm.xlu0 %984, %v633_v29  }
  0x42   : > { %578 = vperm.xlu1 %982, %v291_v13   ;;  %654 = vperm.xlu0 %984, %v636_v31  }
  0x46   : > { %983 = vset.pattern.permute.xlu1 %v999_v14 }
  0x47   : > { %618 = vperm.xlu1 %983, %v291_v13  }
  0x4b   : > { %985 = vset.pattern.permute.xlu1 %v997_v5 }
  0x4c   : > { %644 = vperm.xlu1 %985, %v634_v28  }
  0x50   : > { %649 = vperm.xlu1 %985, %v635_v30  }
  0x85   : > { %v969_v15 = vpop.permute.xlu0 %968 }
  0x86   : > { %v971_v16 = vunpack.i.h.bf16 %v969_v15  ;;  %v970_v17 = vunpack.i.l.bf16 %v969_v15  ;;  %v300_v32 = vpop.permute.xlu1 %299 }
  0x88   : > { %v274_v18 = vsel %vm273_vm1, %v970_v17, %v971_v16 }
  0x89   : > { %v935_v19 = vpack.c.bf16 %v274_v18, %v265_v1 }
  0x8a   : > { %v305_v33 = vpop.permute.xlu1 %304 }
  0x8b   : > { %936 = vmatprep.subr.bf16.mxu0 %v935_v19 }
  0x8c   : > { %938 = vmatpush3.bf16.msra.mxu0 %v935_v19 }
  0x8e   : > { %v310_v34 = vpop.permute.xlu1 %309 }
  0x8f   : > { %902 = vmatmul.mubr.msk.f32.vlgmr.msra.gmra.mrb[0].mxu0 %vm332_vm0, %v277_v20 }
  0x90   : > { %904 = vmatprep.mubr.msk.f32.mxu0 %vm332_vm0, %v278_v21 }
  0x92   : > { %v320_v45 = vpop.permute.xlu1 %319 }
  0x93   : > { %905 = vmatmul.mubr.msk.f32.gmra.mrb[2].mxu0 %vm332_vm0, %v279_v22 }
  0x94   : > { %907 = vmatprep.mubr.msk.f32.mxu0 %vm332_vm0, %v280_v23 }
  0x96   : > { %v295_v36 = vpop.permute.xlu0 %294  ;;  %v330_v57 = vpop.permute.xlu1 %329 }
  0x97   : > { %908 = vmatmul.mubr.msk.f32.gmra.mrb[4].mxu0 %vm332_vm0, %v281_v24 }
  0x98   : > { %910 = vmatprep.mubr.msk.f32.mxu0 %vm332_vm0, %v282_v25 }
  0x9a   : > { %v315_v48 = vpop.permute.xlu0 %314 }
  0x9b   : > { %911 = vmatmul.mubr.msk.f32.gmra.mrb[6].mxu0 %vm332_vm0, %v283_v26  ;;  %v549_v12 = vpop.permute.xlu1 %548 }
  0x9e   : > { %v325_v61 = vpop.permute.xlu0 %324 }
  0xa0   : > { %v591_v19 = vpop.permute.xlu1 %590 }
  0xa5   : > { %v554_v28 = vpop.permute.xlu1 %553 }
 0x162   : > { %v903_v35 = vpop.f32.mrb[0].mxu0 }
 0x163   : > { %v429_v37 = vadd.f32 %v903_v35, %v300_v32  ;;  %v423_v38 = vpop.f32.mrb[1].mxu0  ;;  %v559_v35 = vpop.permute.xlu1 %558 }
 0x164   : > { %v424_v39 = vadd.f32 %v423_v38, %v295_v36 }
 0x165   : > { %v463_v40 = vmax.f32 %v429_v37, 0.0 }
 0x166   : > { %v462_v41 = vmax.f32 %v424_v39, 0.0  ;;  %v906_v42 = vpop.f32.mrb[2].mxu0 }
 0x167   : > { %471 = vst [vmem:[%s1125_s29 + $0x8] sm:$0xff] %v463_v40  ;;  %v439_v43 = vadd.f32 %v906_v42, %v310_v34  ;;  %v433_v44 = vpop.f32.mrb[3].mxu0 }
 0x168   : > { %470 = vst [vmem:[%s1125_s29] sm:$0xff] %v462_v41  ;;  %v478_v46 = vadd.f32 %v463_v40, %v462_v41  ;;  %v434_v47 = vadd.f32 %v433_v44, %v305_v33 }
 0x169   : > { %v465_v49 = vmax.f32 %v439_v43, 0.0  ;;  %v603_v43 = vpop.permute.xlu1 %602 }
 0x16a   : > { %v464_v50 = vmax.f32 %v434_v47, 0.0  ;;  %v909_v51 = vpop.f32.mrb[4].mxu0 }
 0x16b   : > { %473 = vst [vmem:[%s1125_s29 + $0x18] sm:$0xff] %v465_v49  ;;  %v449_v52 = vadd.f32 %v909_v51, %v320_v45  ;;  %v443_v53 = vpop.f32.mrb[5].mxu0 }
 0x16c   : > { %472 = vst [vmem:[%s1125_s29 + $0x10] sm:$0xff] %v464_v50  ;;  %v479_v54 = vadd.f32 %v478_v46, %v464_v50  ;;  %v444_v55 = vadd.f32 %v443_v53, %v315_v48 }
 0x16d   : > { %v467_v56 = vmax.f32 %v449_v52, 0.0  ;;  %v569_v46 = vpop.permute.xlu1 %568 }
 0x16e   : > { %v466_v58 = vmax.f32 %v444_v55, 0.0  ;;  %v480_v59 = vadd.f32 %v479_v54, %v465_v49  ;;  %v912_v60 = vpop.f32.mrb[6].mxu0 }
 0x16f   : > { %475 = vst [vmem:[%s1125_s29 + $0x28] sm:$0xff] %v467_v56  ;;  %v459_v62 = vadd.f32 %v912_v60, %v330_v57  ;;  %v453_v63 = vpop.f32.mrb[7].mxu0 }
 0x170   : > { %474 = vst [vmem:[%s1125_s29 + $0x20] sm:$0xff] %v466_v58  ;;  %v481_v0 = vadd.f32 %v480_v59, %v466_v58  ;;  %v454_v1 = vadd.f32 %v453_v63, %v325_v61 }
 0x171   : > { %v469_v2 = vmax.f32 %v459_v62, 0.0  ;;  %v607_v51 = vpop.permute.xlu1 %606 }
 0x172   : > { %v468_v3 = vmax.f32 %v454_v1, 0.0  ;;  %v482_v4 = vadd.f32 %v481_v0, %v467_v56 }
 0x173   : > { %477 = vst [vmem:[%s1125_s29 + $0x38] sm:$0xff] %v469_v2 }
 0x174   : > { %476 = vst [vmem:[%s1125_s29 + $0x30] sm:$0xff] %v468_v3  ;;  %v483_v5 = vadd.f32 %v482_v4, %v468_v3 }
 0x175   : > { %v574_v55 = vpop.permute.xlu1 %573 }
 0x176   : > { %v484_v6 = vadd.f32 %v483_v5, %v469_v2 }
 0x178   : > { %v485_v7 = vrot.slane %v484_v6, 4 }
 0x179   : > { %v579_v57 = vpop.permute.xlu1 %578 }
 0x17a   : > { %v486_v8 = vadd.f32 %v485_v7, %v484_v6 }
 0x17c   : > { %v487_v9 = vrot.slane %v486_v8, 2 }
 0x17e   : > { %v488_v10 = vadd.f32 %v487_v9, %v486_v8  ;;  %v619_v8 = vpop.permute.xlu1 %618 }
 0x180   : > { %v489_v11 = vrot.slane %v488_v10, 1 }
 0x182   : > { %v490_v13 = vadd.f32 %v489_v11, %v488_v10 }
 0x184   : > { %v492_v14 = vmul.f32 0.015625, %v490_v13 }
 0x186   : > { %v495_v15 = vsub.f32 %v464_v50, %v492_v14  ;;  %v496_v16 = vsub.f32 %v465_v49, %v492_v14  ;;  %v497_v17 = vsub.f32 %v466_v58, %v492_v14  ;;  %v498_v18 = vsub.f32 %v467_v56, %v492_v14 }
 0x187   : > { %v499_v20 = vsub.f32 %v468_v3, %v492_v14  ;;  %v500_v21 = vsub.f32 %v469_v2, %v492_v14  ;;  %v493_v22 = vsub.f32 %v462_v41, %v492_v14  ;;  %v494_v23 = vsub.f32 %v463_v40, %v492_v14  ;;  %v544_v41 = vpop.permute.xlu0 %543 }
 0x188   : > { %v503_v26 = vmul.f32 %v495_v15, %v495_v15  ;;  %v504_v29 = vmul.f32 %v496_v16, %v496_v16  ;;  %v505_v31 = vmul.f32 %v497_v17, %v497_v17  ;;  %v506_v33 = vmul.f32 %v498_v18, %v498_v18 }
 0x189   : > { %v501_v24 = vmul.f32 %v493_v22, %v493_v22  ;;  %v502_v25 = vmul.f32 %v494_v23, %v494_v23  ;;  %v507_v36 = vmul.f32 %v499_v20, %v499_v20  ;;  %v508_v38 = vmul.f32 %v500_v21, %v500_v21 }
 0x18b   : > { %v509_v27 = vadd.f32 %v502_v25, %v501_v24  ;;  %v564_v47 = vpop.permute.xlu0 %563 }
 0x18d   : > { %v510_v30 = vadd.f32 %v509_v27, %v503_v26  ;;  %v631_v27 = vld [vmem:[%s1157_s3 + $0x10] sm:$0xff] }
 0x18f   : > { %v511_v32 = vadd.f32 %v510_v30, %v504_v29  ;;  %v595_v52 = vpop.permute.xlu0 %594  ;;  %v645_v30 = vpop.permute.xlu1 %644 }
 0x191   : > { %v512_v34 = vadd.f32 %v511_v32, %v505_v31 }
 0x193   : > { %v513_v37 = vadd.f32 %v512_v34, %v506_v33  ;;  %v599_v56 = vpop.permute.xlu0 %598 }
 0x195   : > { %v514_v39 = vadd.f32 %v513_v37, %v507_v36  ;;  %v650_v37 = vpop.permute.xlu1 %649 }
 0x197   : > { %v515_v42 = vadd.f32 %v514_v39, %v508_v38  ;;  %v611_v58 = vpop.permute.xlu0 %610 }
 0x199   : > { %v516_v40 = vrot.slane %v515_v42, 4 }
 0x19b   : > { %v517_v44 = vadd.f32 %v516_v40, %v515_v42  ;;  %v615_v9 = vpop.permute.xlu0 %614 }
 0x19d   : > { %v518_v45 = vrot.slane %v517_v44, 2 }
 0x19f   : > { %v519_v48 = vadd.f32 %v518_v45, %v517_v44  ;;  %v640_v29 = vpop.permute.xlu0 %639 }
 0x1a1   : > { %v520_v49 = vrot.slane %v519_v48, 1 }
 0x1a3   : > { %v521_v50 = vadd.f32 %v520_v49, %v519_v48 }
 0x1a5   : > { %v522_v53 = vmul.f32 0.015625, %v521_v50 }
 0x1a7   : > { %v523_v54 = vadd.f32 1e-05, %v522_v53 }
 0x1a9   : > { %986 = vrsqrt.f32 %v523_v54 }
 0x1b3   : > { %v987_v59 = vpop.eup %986 }
 0x1b4   : > { %v526_v60 = vmul.f32 %v987_v59, %v494_v23  ;;  %v527_v61 = vmul.f32 %v987_v59, %v495_v15  ;;  %v528_v62 = vmul.f32 %v987_v59, %v496_v16  ;;  %v525_v63 = vmul.f32 %v987_v59, %v493_v22 }
 0x1b5   : > { %v530_v0 = vmul.f32 %v987_v59, %v498_v18  ;;  %v529_v1 = vmul.f32 %v987_v59, %v497_v17  ;;  %v531_v2 = vmul.f32 %v987_v59, %v499_v20  ;;  %v532_v3 = vmul.f32 %v987_v59, %v500_v21 }
 0x1b6   : > { %v582_v4 = vmul.f32 %v549_v12, %v526_v60  ;;  %v583_v5 = vmul.f32 %v554_v28, %v527_v61  ;;  %v584_v6 = vmul.f32 %v559_v35, %v528_v62  ;;  %v581_v7 = vmul.f32 %v544_v41, %v525_v63  ;;  %v632_v28 = vld [vmem:[%s1157_s3 + $0x18] sm:$0xff]  ;;  %v655_v35 = vpop.permute.xlu0 %654 }
 0x1b7   : > { %v586_v10 = vmul.f32 %v569_v46, %v530_v0  ;;  %v585_v11 = vmul.f32 %v564_v47, %v529_v1  ;;  %v587_v13 = vmul.f32 %v574_v55, %v531_v2  ;;  %v588_v14 = vmul.f32 %v579_v57, %v532_v3 }
 0x1b8   : > { %v624_v24 = vadd.f32 %v603_v43, %v584_v6  ;;  %v621_v25 = vadd.f32 %v591_v19, %v581_v7  ;;  %v622_v23 = vadd.f32 %v595_v52, %v582_v4  ;;  %v623_v15 = vadd.f32 %v599_v56, %v583_v5  ;;  %v630_v19 = vld [vmem:[%s1157_s3 + $0x8] sm:$0xff] }
 0x1b9   : > { %v625_v16 = vadd.f32 %v607_v51, %v585_v11  ;;  %v626_v22 = vadd.f32 %v611_v58, %v586_v10  ;;  %v628_v18 = vadd.f32 %v619_v8, %v588_v14  ;;  %v627_v17 = vadd.f32 %v615_v9, %v587_v13 }
 0x1ba   : > { %v943_v20 = vpack.c.bf16 %v624_v24, %v623_v15  ;;  %v939_v21 = vpack.c.bf16 %v622_v23, %v621_v25 }
 0x1bb   : > { %v947_v12 = vpack.c.bf16 %v626_v22, %v625_v16  ;;  %v951_v26 = vpack.c.bf16 %v628_v18, %v627_v17 }
 0x1bc   : > { %940 = vmatprep.subr.bf16.mxu1 %v939_v21 }
 0x1bd   : > { %942 = vmatpush3.bf16.msra.mxu1 %v939_v21 }
 0x1be   : > { %944 = vmatprep.subr.bf16.mxu1 %v943_v20 }
 0x1c1   : > { %946 = vmatpush3.bf16.msra.mxu1 %v943_v20 }
 0x1c2   : > { %948 = vmatprep.subr.bf16.mxu1 %v947_v12 }
 0x1c5   : > { %950 = vmatpush3.bf16.msra.mxu1 %v947_v12 }
 0x1c6   : > { %952 = vmatprep.subr.bf16.mxu1 %v951_v26 }
 0x1c9   : > { %954 = vmatpush3.bf16.msra.mxu1 %v951_v26 }
 0x1cc   : > { %930 = vmatmul.mubr.msk.f32.vlgmr.msra.gmra.mrb[0].mxu1 %vm657_vm2, %v630_v19 }
 0x1cd   : > { %932 = vmatprep.mubr.msk.f32.mxu1 %vm657_vm2, %v631_v27 }
 0x1d0   : > { %933 = vmatmul.mubr.msk.f32.gmra.mrb[2].mxu1 %vm657_vm2, %v632_v28 }
 0x29f   : > { %v931_v31 = vpop.f32.mrb[0].mxu1 }
 0x2a0   : > { %v742_v32 = vadd.f32 %v931_v31, %v645_v30  ;;  %v736_v33 = vpop.f32.mrb[1].mxu1 }
 0x2a1   : > { %v737_v34 = vadd.f32 %v736_v33, %v640_v29 }
 0x2a2   : > { %756 = vst [vmem:[%s264_s15 + $0x8] sm:$0xff] %v742_v32 }
 0x2a3   : > { %755 = vst [vmem:[%s264_s15] sm:$0xff] %v737_v34  ;;  %v934_v36 = vpop.f32.mrb[2].mxu1 }
 0x2a4   : > { %v752_v38 = vadd.f32 %v934_v36, %v655_v35  ;;  %v746_v39 = vpop.f32.mrb[3].mxu1 }
 0x2a5   : > { %v747_v42 = vadd.f32 %v746_v39, %v650_v37 }
 0x2a6   : > { %758 = vst [vmem:[%s264_s15 + $0x18] sm:$0xff] %v752_v38 }
 0x2a7   : > { %757 = vst [vmem:[%s264_s15 + $0x10] sm:$0xff] %v747_v42 }
 0x2a8 PF: > { %s17_s21 = sadd.s32 1, %s994_s21  }
 0x2a9   : > { %p14_p4 = scmp.ge.s32.totalorder %s17_s21, 4  }
 0x2ab   :  { %16 = sbr.rel (!%p14_p4) target bundleno = 1 (0x1), region = 82 }

// kernel: conv_tasnet_forward.5
= control target key start
LH: loop header
LB: loop body
LE: loop exit
PB: predicated region body
PF: predicated region fallthrough
CT: control target
= control target key end

     0   :  { %s874_s21 = smov 0   ;;  %s986_s0 = inlined_call_operand.vmem [shape: f32[2,32,128], index: 0, kind: input, shape index: {}]   ;;  %s987_s1 = inlined_call_operand.vmem [shape: f32[2,64,128], index: 1, kind: input, shape index: {}]   ;;  %s988_s2 = inlined_call_operand.vmem [shape: f32[64,32], index: 2, kind: input, shape index: {}]   ;;  %s989_s3 = inlined_call_operand.vmem [shape: f32[64,1], index: 3, kind: input, shape index: {}]   ;;  %s990_s4 = inlined_call_operand.vmem [shape: f32[16,64], index: 4, kind: input, shape index: {}]   ;;  %s991_s5 = inlined_call_operand.vmem [shape: f32[2,64,128], index: 5, kind: output, shape index: {0}]   ;;  %s992_s6 = inlined_call_operand.vmem [shape: f32[2,16,128], index: 6, kind: output, shape index: {1}]  }
   0x1 LB: > { %s705_s22 = sadd.s32 4294967295, %s836_s21   ;;  %p709_p0 = scmp.ge.s32.totalorder %s836_s21, 1  ;;  %s836_s21 = sphi %s874_s21, %s17_s21  }
   0x2   : > { %p225_p1 = scmp.lt.s32.totalorder %s836_s21, 3 }
   0x4   : > { %p226_p2 = pnand %p709_p0, %p225_p1 }
   0x5   : > { %p265_p3 = scmp.lt.s32.totalorder (!%p226_p2), %s705_s22, 1  ;;  %v301_v0 = vld [vmem:[%s988_s2] sm:$0xff] (!%p226_p2)  ;;  %vm357_vm0 = vcmask (!%p226_p2), 261120   ;;  %v838_v1 = vmov (!%p226_p2), 0   ;;  %v311_v3 = vld [vmem:[%s989_s3 + $0x10] sm:$0xff] (!%p226_p2)  ;;  %v310_v4 = vld [vmem:[%s989_s3 + $0x8] sm:$0xff] (!%p226_p2) }
   0x6   : > { %229 = sbr.rel (%p226_p2) target bundleno = 481 (0x1e1), region = 40  ;;  %764 = vmatprep.mubr.msk.f32.mxu0 (!%p226_p2), %vm357_vm0, %v301_v0  ;;  %828 = vset.pattern.permute.xlu0 (!%p226_p2), %v838_v1  ;;  %v309_v2 = vld [vmem:[%s989_s3] sm:$0xff] (!%p226_p2)  ;;  %v312_v5 = vld [vmem:[%s989_s3 + $0x18] sm:$0xff] (!%p226_p2)  ;;  %v314_v17 = vld [vmem:[%s989_s3 + $0x28] sm:$0xff] (!%p226_p2)  ;;  %vm521_vm5 = vcmask (!%p226_p2), 523264  }
   0x7   : > { %829 = vset.pattern.permute.xlu1 (!%p226_p2), %v838_v1  ;;  %319 = vperm.xlu0 (!%p226_p2), %828, %v309_v2   ;;  %v313_v14 = vld [vmem:[%s989_s3 + $0x20] sm:$0xff] (!%p226_p2)  ;;  %v315_v22 = vld [vmem:[%s989_s3 + $0x30] sm:$0xff] (!%p226_p2)  ;;  %v316_v23 = vld [vmem:[%s989_s3 + $0x38] sm:$0xff] (!%p226_p2) }
   0x8   : > { %329 = vperm.xlu1 (!%p226_p2), %829, %v311_v3   ;;  %v302_v24 = vld [vmem:[%s988_s2 + $0x8] sm:$0xff] (!%p226_p2)  ;;  %v303_v25 = vld [vmem:[%s988_s2 + $0x10] sm:$0xff] (!%p226_p2)  ;;  %v304_v26 = vld [vmem:[%s988_s2 + $0x18] sm:$0xff] (!%p226_p2) }
   0x9   : > { %v305_v27 = vld [vmem:[%s988_s2 + $0x20] sm:$0xff] (!%p226_p2)  ;;  %v306_v28 = vld [vmem:[%s988_s2 + $0x28] sm:$0xff] (!%p226_p2)  ;;  %v307_v29 = vld [vmem:[%s988_s2 + $0x30] sm:$0xff] (!%p226_p2) }
   0xa   : > { %v308_v30 = vld [vmem:[%s988_s2 + $0x38] sm:$0xff] (!%p226_p2)  ;;  %v519_v31 = vld [vmem:[%s990_s4] sm:$0xff] (!%p226_p2) }
   0xb   : > { %324 = vperm.xlu0 (!%p226_p2), %828, %v310_v4   ;;  %792 = vmatprep.mubr.msk.f32.mxu1 (!%p226_p2), %vm521_vm5, %v519_v31 }
   0xc   : > { %334 = vperm.xlu1 (!%p226_p2), %829, %v312_v5  }
   0xd   : > { %s994_s22 = smov (!%p265_p3, %s705_s22), 1 }
   0xe   : > { %s730_s29 = sshll.u32 %s994_s22, 5  ;;  %s731_s15 = sshll.u32 %s994_s22, 6 }
   0xf   : > { %s269_s10 = scalar_lea.vmem %s986_s0, %s730_s29  ;;  %339 = vperm.xlu0 %828, %v313_v14   ;;  %s952_s18 = scalar_lea.vmem %s987_s1, %s731_s15 }
  0x10   : > { %v285_v6 = vld [vmem:[%s269_s10] sm:$0xff]  ;;  %v286_v7 = vld [vmem:[%s269_s10 + $0x8] sm:$0xff]  ;;  %v287_v8 = vld [vmem:[%s269_s10 + $0x10] sm:$0xff]  ;;  %344 = vperm.xlu1 %829, %v314_v17   ;;  %s959_s23 = scalar_lea.vmem %s991_s5, %s731_s15  ;;  %s733_s26 = sshll.u32 %s994_s22, 4 }
  0x11   : > { %vm289_vm1 = vcmp.ge.f32.partialorder %v285_v6, 0.0  ;;  %vm290_vm2 = vcmp.ge.f32.partialorder %v286_v7, 0.0  ;;  %v293_v9 = vmul.f32 0.25, %v285_v6  ;;  %v294_v10 = vmul.f32 0.25, %v286_v7  ;;  %v288_v11 = vld [vmem:[%s269_s10 + $0x18] sm:$0xff]  ;;  %v496_v39 = vld [vmem:[%s952_s18 + $0x8] sm:$0xff]  ;;  %s284_s29 = scalar_lea.vmem %s992_s6, %s733_s26 }
  0x12   : > { %vm291_vm3 = vcmp.ge.f32.partialorder %v287_v8, 0.0  ;;  %vm292_vm4 = vcmp.ge.f32.partialorder %v288_v11, 0.0  ;;  %v295_v12 = vmul.f32 0.25, %v287_v8  ;;  %v296_v13 = vmul.f32 0.25, %v288_v11  ;;  %v495_v42 = vld [vmem:[%s952_s18] sm:$0xff]  ;;  %v498_v50 = vld [vmem:[%s952_s18 + $0x18] sm:$0xff] }
  0x13   : > { %v297_v15 = vsel %vm289_vm1, %v285_v6, %v293_v9  ;;  %v298_v16 = vsel %vm290_vm2, %v286_v7, %v294_v10  ;;  %349 = vperm.xlu0 %828, %v315_v22   ;;  %v497_v54 = vld [vmem:[%s952_s18 + $0x10] sm:$0xff]  ;;  %v500_v62 = vld [vmem:[%s952_s18 + $0x28] sm:$0xff]  ;;  %v499_v1 = vld [vmem:[%s952_s18 + $0x20] sm:$0xff] }
  0x14   : > { %v795_v18 = vpack.c.bf16 %v298_v16, %v297_v15  ;;  %v299_v19 = vsel %vm291_vm3, %v287_v8, %v295_v12  ;;  %v300_v20 = vsel %vm292_vm4, %v288_v11, %v296_v13  ;;  %354 = vperm.xlu1 %829, %v316_v23   ;;  %v502_v11 = vld [vmem:[%s952_s18 + $0x38] sm:$0xff]  ;;  %v501_v14 = vld [vmem:[%s952_s18 + $0x30] sm:$0xff] }
  0x15   : > { %v799_v21 = vpack.c.bf16 %v300_v20, %v299_v19  ;;  %v520_v20 = vld [vmem:[%s990_s4 + $0x8] sm:$0xff] }
  0x16   : > { %796 = vmatprep.subr.bf16.mxu0 %v795_v18 }
  0x17   : > { %798 = vmatpush3.bf16.msra.mxu0 %v795_v18 }
  0x18   : > { %800 = vmatprep.subr.bf16.mxu0 %v799_v21 }
  0x1b   : > { %802 = vmatpush3.bf16.msra.mxu0 %v799_v21 }
  0x1e   : > { %765 = vmatmul.mubr.msk.f32.vlgmr.msra.gmra.mrb[0].mxu0 %vm357_vm0, %v302_v24 }
  0x1f   : > { %767 = vmatprep.mubr.msk.f32.mxu0 %vm357_vm0, %v303_v25 }
  0x22   : > { %768 = vmatmul.mubr.msk.f32.gmra.mrb[2].mxu0 %vm357_vm0, %v304_v26 }
  0x23   : > { %770 = vmatprep.mubr.msk.f32.mxu0 %vm357_vm0, %v305_v27 }
  0x26   : > { %771 = vmatmul.mubr.msk.f32.gmra.mrb[4].mxu0 %vm357_vm0, %v306_v28 }
  0x27   : > { %773 = vmatprep.mubr.msk.f32.mxu0 %vm357_vm0, %v307_v29 }
  0x2a   : > { %774 = vmatmul.mubr.msk.f32.gmra.mrb[6].mxu0 %vm357_vm0, %v308_v30 }
  0x86   : > { %v320_v32 = vpop.permute.xlu0 %319 }
  0x87   : > { %v330_v33 = vpop.permute.xlu1 %329 }
  0x8a   : > { %v325_v34 = vpop.permute.xlu0 %324 }
  0x8b   : > { %v335_v35 = vpop.permute.xlu1 %334 }
  0x8e   : > { %v340_v52 = vpop.permute.xlu0 %339 }
  0x8f   : > { %v345_v48 = vpop.permute.xlu1 %344 }
  0x92   : > { %v350_v6 = vpop.permute.xlu0 %349 }
  0x93   : > { %v355_v2 = vpop.permute.xlu1 %354 }
  0xf1   : > { %v766_v36 = vpop.f32.mrb[0].mxu0 }
  0xf2   : > { %v454_v37 = vadd.f32 %v766_v36, %v325_v34  ;;  %v448_v38 = vpop.f32.mrb[1].mxu0 }
  0xf3   : > { %v449_v40 = vadd.f32 %v448_v38, %v320_v32 }
  0xf4   : > { %v488_v41 = vmax.f32 %v454_v37, 0.0 }
  0xf5   : > { %v487_v43 = vmax.f32 %v449_v40, 0.0  ;;  %v769_v44 = vpop.f32.mrb[2].mxu0 }
  0xf6   : > { %v504_v45 = vmul.f32 %v496_v39, %v488_v41  ;;  %v464_v46 = vadd.f32 %v769_v44, %v335_v35  ;;  %v458_v47 = vpop.f32.mrb[3].mxu0 }
  0xf7   : > { %v503_v49 = vmul.f32 %v495_v42, %v487_v43  ;;  %v459_v51 = vadd.f32 %v458_v47, %v330_v33 }
  0xf8   : > { %512 = vst [vmem:[%s959_s23 + $0x8] sm:$0xff] %v504_v45  ;;  %v490_v53 = vmax.f32 %v464_v46, 0.0 }
  0xf9   : > { %511 = vst [vmem:[%s959_s23] sm:$0xff] %v503_v49  ;;  %v489_v55 = vmax.f32 %v459_v51, 0.0  ;;  %v772_v56 = vpop.f32.mrb[4].mxu0  ;;  %v803_v57 = vpack.c.bf16 %v504_v45, %v503_v49 }
  0xfa   : > { %v506_v58 = vmul.f32 %v498_v50, %v490_v53  ;;  %v474_v59 = vadd.f32 %v772_v56, %v345_v48  ;;  %v468_v60 = vpop.f32.mrb[5].mxu0 }
  0xfb   : > { %v505_v61 = vmul.f32 %v497_v54, %v489_v55  ;;  %v469_v63 = vadd.f32 %v468_v60, %v340_v52  ;;  %804 = vmatprep.subr.bf16.mxu1 %v803_v57 }
  0xfc   : > { %514 = vst [vmem:[%s959_s23 + $0x18] sm:$0xff] %v506_v58  ;;  %v492_v0 = vmax.f32 %v474_v59, 0.0  ;;  %806 = vmatpush3.bf16.msra.mxu1 %v803_v57 }
  0xfd   : > { %513 = vst [vmem:[%s959_s23 + $0x10] sm:$0xff] %v505_v61  ;;  %v491_v3 = vmax.f32 %v469_v63, 0.0  ;;  %v775_v4 = vpop.f32.mrb[6].mxu0  ;;  %v807_v5 = vpack.c.bf16 %v506_v58, %v505_v61 }
  0xfe   : > { %v508_v7 = vmul.f32 %v500_v62, %v492_v0  ;;  %v484_v8 = vadd.f32 %v775_v4, %v355_v2  ;;  %v478_v9 = vpop.f32.mrb[7].mxu0 }
  0xff   : > { %v507_v10 = vmul.f32 %v499_v1, %v491_v3  ;;  %v479_v12 = vadd.f32 %v478_v9, %v350_v6  ;;  %808 = vmatprep.subr.bf16.mxu1 %v807_v5 }
 0x100   : > { %516 = vst [vmem:[%s959_s23 + $0x28] sm:$0xff] %v508_v7  ;;  %v494_v13 = vmax.f32 %v484_v8, 0.0  ;;  %810 = vmatpush3.bf16.msra.mxu1 %v807_v5 }
 0x101   : > { %515 = vst [vmem:[%s959_s23 + $0x20] sm:$0xff] %v507_v10  ;;  %v493_v15 = vmax.f32 %v479_v12, 0.0  ;;  %v811_v16 = vpack.c.bf16 %v508_v7, %v507_v10 }
 0x102   : > { %v510_v17 = vmul.f32 %v502_v11, %v494_v13 }
 0x103   : > { %v509_v18 = vmul.f32 %v501_v14, %v493_v15  ;;  %812 = vmatprep.subr.bf16.mxu1 %v811_v16 }
 0x104   : > { %518 = vst [vmem:[%s959_s23 + $0x38] sm:$0xff] %v510_v17  ;;  %814 = vmatpush3.bf16.msra.mxu1 %v811_v16 }
 0x105   : > { %517 = vst [vmem:[%s959_s23 + $0x30] sm:$0xff] %v509_v18  ;;  %v815_v19 = vpack.c.bf16 %v510_v17, %v509_v18 }
 0x107   : > { %816 = vmatprep.subr.bf16.mxu1 %v815_v19 }
 0x108   : > { %818 = vmatpush3.bf16.msra.mxu1 %v815_v19 }
 0x10b   : > { %793 = vmatmul.mubr.msk.f32.vlgmr.msra.gmra.mrb[0].mxu1 %vm521_vm5, %v520_v20 }
 0x1de   : > { %v794_v21 = vpop.f32.mrb[0].mxu1 }
 0x1df   : > { %604 = vst [vmem:[%s284_s29 + $0x8] sm:$0xff] %v794_v21  ;;  %v594_v22 = vpop.f32.mrb[1].mxu1 }
 0x1e0   : > { %603 = vst [vmem:[%s284_s29] sm:$0xff] %v594_v22 }
 0x1e1 PF: > { %s17_s21 = sadd.s32 1, %s836_s21  }
 0x1e2   : > { %p14_p4 = scmp.ge.s32.totalorder %s17_s21, 4  }
 0x1e4   :  { %16 = sbr.rel (!%p14_p4) target bundleno = 1 (0x1), region = 85 }

// kernel: conv_tasnet_forward.4
= control target key start
LH: loop header
LB: loop body
LE: loop exit
PB: predicated region body
PF: predicated region fallthrough
CT: control target
= control target key end

     0   :  { %s2755_s21 = smov 0   ;;  %s2757_s22 = smov 0   ;;  %s3578_s0 = inlined_call_operand.vmem [shape: f32[2,32,128], index: 0, kind: input, shape index: {}]   ;;  %s3579_s1 = inlined_call_operand.vmem [shape: f32[2,64,32], index: 1, kind: input, shape index: {}]   ;;  %s3580_s2 = inlined_call_operand.vmem [shape: f32[2,64,3], index: 2, kind: input, shape index: {}]   ;;  %s3581_s3 = inlined_call_operand.vmem [shape: f32[2,64,64], index: 3, kind: input, shape index: {}]   ;;  %s3582_s4 = inlined_call_operand.vmem [shape: f32[2,64,6], index: 4, kind: input, shape index: {}]   ;;  %s3583_s5 = inlined_call_operand.vmem [shape: f32[2,64,1], index: 5, kind: input, shape index: {}]   ;;  %s3584_s6 = inlined_call_operand.vmem [shape: f32[2,32,128], index: 6, kind: output, shape index: {}]  }
   0x1   :  { %s2759_s23 = smov 0   ;;  %s2761_s24 = smov 0  }
   0x2   :  { %s2763_s25 = smov 0  }
   0x3 LB: > { %s25_s26 = sadd.s32 1, %s2626_s23  ;;  %s28_s27 = sadd.s32 1, %s2630_s24  ;;  %s2634_s25 = sphi %s2763_s25, %s16_s25   ;;  %s2630_s24 = sphi %s2761_s24, %s3633_s24   ;;  %s2626_s23 = sphi %s2759_s23, %s3632_s23   ;;  %s2622_s22 = sphi %s2757_s22, %s3631_s22   ;;  %s2618_s21 = sphi %s2755_s21, %s3630_s21  }
   0x4   : > { %p26_p0 = scmp.ge.s32.totalorder %s25_s26, 2  ;;  %p2143_p1 = scmp.ge.s32.totalorder %s2634_s25, 1 }
   0x5   : > { %p274_p2 = scmp.lt.s32.totalorder %s2634_s25, 5 }
   0x6   : > { %s3635_s26 = smov (%p26_p0, %s25_s26), 0  ;;  %s3637_s27 = smov (!%p26_p0, %s28_s27), %s2630_s24 }
   0x7   : > { %p275_p3 = pnand %p2143_p1, %p274_p2  ;;  %p30_p4 = scmp.ge.s32.totalorder %s3637_s27, 2 }
   0x9   : > { %s3639_s27 = smov (%p30_p4, %s3637_s27), 0  ;;  %278 = sbr.rel (%p275_p3) target bundleno = 2295 (0x8f7), region = 44 }
  0x10   : > { %p329_p5 = scmp.lt.s32.totalorder %s2622_s22, 1  ;;  %p334_p6 = scmp.lt.s32.totalorder %s2618_s21, 1 }
  0x11   : > { %p2158_p7 = scmp.ne.s32.totalorder %s2618_s21, 0 }
  0x12   : > { %s3641_s22 = smov (!%p329_p5, %s2622_s22), 1  ;;  %vm381_vm0 = vcmask (!%p2158_p7), 31744   ;;  %v2700_v4 = vmov (!%p2158_p7), 0.0  }
  0x13   : > { %s335_s28 = scalar_select %p334_p6, %s2618_s21, 1 }
  0x14   : > { %s2182_s29 = sshll.u32 %s3641_s22, 5  ;;  %367 = sbr.rel (%p2158_p7) target bundleno = 33 (0x21), region = 48  ;;  %380 = vst [vmem:[#allocation3] sm:$0xff] (!%p2158_p7), %v2700_v4  ;;  %383 = vst [vmem:[#allocation3 + $0x10] sm:$0xff] (!%p2158_p7), %v2700_v4 }
  0x15   : > { %s333_s8 = scalar_lea.vmem %s3578_s0, %s2182_s29  ;;  %s2183_s9 = sshll.u32 %s335_s28, 6  ;;  %385 = vst [vmem:[#allocation3 + $0x20] sm:$0xff] (!%p2158_p7), %v2700_v4  ;;  %387 = vst [vmem:[#allocation3 + $0x30] sm:$0xff] (!%p2158_p7), %v2700_v4 }
  0x16   : > { %s2795_s12 = scalar_lea.vmem %s3579_s1, %s2183_s9  ;;  %s2800_s15 = scalar_lea.vmem %s3580_s2, %s2183_s9  ;;  %v368_v0 = vld [vmem:[%s333_s8] sm:$0xff] (!%p2158_p7)  ;;  %v369_v1 = vld [vmem:[%s333_s8 + $0x8] sm:$0xff] (!%p2158_p7)  ;;  %v370_v2 = vld [vmem:[%s333_s8 + $0x10] sm:$0xff] (!%p2158_p7)  ;;  %389 = vst [vmem:[#allocation3 + $0x40] sm:$0xff] (!%p2158_p7), %v2700_v4 }
  0x17   : > { %s2805_s18 = scalar_lea.vmem %s3581_s3, %s2183_s9  ;;  %s2810_s22 = scalar_lea.vmem %s3582_s4, %s2183_s9  ;;  %372 = vst [vmem:[#allocation2] sm:$0xff] (!%p2158_p7), %v368_v0  ;;  %373 = vst [vmem:[#allocation2 + $0x8] sm:$0xff] (!%p2158_p7), %v369_v1  ;;  %v371_v3 = vld [vmem:[%s333_s8 + $0x18] sm:$0xff] (!%p2158_p7) }
  0x18   : > { %s2815_s7 = scalar_lea.vmem %s3583_s5, %s2183_s9  ;;  %s2820_s13 = scalar_lea.vmem %s3584_s6, %s2182_s29  ;;  %374 = vst [vmem:[#allocation2 + $0x10] sm:$0xff] (!%p2158_p7), %v370_v2  ;;  %391 = vst [vmem:[#allocation3 + $0x50] sm:$0xff] (!%p2158_p7), %v2700_v4 }
  0x19   : > { %376 = vst [vmem:[%s2820_s13] sm:$0xff] (!%p2158_p7), %v2700_v4  ;;  %377 = vst [vmem:[%s2820_s13 + $0x8] sm:$0xff] (!%p2158_p7), %v2700_v4 }
  0x1a   : > { %378 = vst [vmem:[%s2820_s13 + $0x10] sm:$0xff] (!%p2158_p7), %v2700_v4  ;;  %379 = vst [vmem:[%s2820_s13 + $0x18] sm:$0xff] (!%p2158_p7), %v2700_v4 }
  0x1b   : > { %393 = vst [vmem:[#allocation3 + $0x60] sm:$0xff] %v2700_v4  ;;  %395 = vst [vmem:[#allocation3 + $0x70] sm:$0xff] %v2700_v4 }
  0x1c   : > { %382 = vst.msk [vmem:[#allocation3 + $0x8] sm:$0xff] %vm381_vm0, %v2700_v4  ;;  %384 = vst.msk [vmem:[#allocation3 + $0x18] sm:$0xff] %vm381_vm0, %v2700_v4 }
  0x1d   : > { %386 = vst.msk [vmem:[#allocation3 + $0x28] sm:$0xff] %vm381_vm0, %v2700_v4  ;;  %388 = vst.msk [vmem:[#allocation3 + $0x38] sm:$0xff] %vm381_vm0, %v2700_v4 }
  0x1e   : > { %390 = vst.msk [vmem:[#allocation3 + $0x48] sm:$0xff] %vm381_vm0, %v2700_v4  ;;  %392 = vst.msk [vmem:[#allocation3 + $0x58] sm:$0xff] %vm381_vm0, %v2700_v4 }
  0x1f   : > { %394 = vst.msk [vmem:[#allocation3 + $0x68] sm:$0xff] %vm381_vm0, %v2700_v4  ;;  %396 = vst.msk [vmem:[#allocation3 + $0x78] sm:$0xff] %vm381_vm0, %v2700_v4 }
  0x20   : > { %375 = vst [vmem:[#allocation2 + $0x18] sm:$0xff] %v371_v3 }
  0x21 PF: > { %vm462_vm1 = vcmask 261120   ;;  %v414_v10 = vld [vmem:[%s2795_s12] sm:$0xff]  ;;  %v3585_v11 = vmov 0   ;;  %v2855_v14 = vld [vmem:[%s2810_s22 + $0x10] sm:$0xff]  ;;  %v2860_v15 = vld [vmem:[%s2810_s22 + $0x8] sm:$0xff]  ;;  %v397_v28 = vlaneseq  ;;  %v2702_v38 = vmov 0.0  }
  0x22   : > { %2497 = vset.pattern.permute.xlu0 %v3585_v11  ;;  %2498 = vset.pattern.permute.xlu1 %v3585_v11  ;;  %v2852_v13 = vld [vmem:[%s2810_s22] sm:$0xff]  ;;  %3609 = vst [vmem:[#allocation8_spill] sm:$0xff] %v2860_v15  ;;  %v2863_v16 = vld [vmem:[%s2810_s22 + $0x18] sm:$0xff]  ;;  %v415_v17 = vld [vmem:[%s2795_s12 + $0x8] sm:$0xff]  ;;  %s2705_s17 = smov 0.0   ;;  %s2706_s28 = smov 2  }
  0x23   : > { %2225 = vmatprep.mubr.msk.f32.mxu0 %vm462_vm1, %v414_v10  ;;  %424 = vperm.xlu0 %2497, %v2852_v13   ;;  %3610 = vst [vmem:[#allocation9_spill] sm:$0xff] %v2863_v16  ;;  %v416_v18 = vld [vmem:[%s2795_s12 + $0x10] sm:$0xff]  ;;  %v2870_v19 = vld [vmem:[%s2810_s22 + $0x20] sm:$0xff]  ;;  %v2874_v20 = vld [vmem:[%s2810_s22 + $0x28] sm:$0xff]  ;;  %v398_v31 = vand.u32 127, %v397_v28  ;;  %s862_s30 = ssub.s32 0, %s2618_s21 }
  0x24   : > { %v2835_v5 = vld [vmem:[#allocation2] sm:$0xff]  ;;  %v2837_v6 = vld [vmem:[#allocation2 + $0x8] sm:$0xff]  ;;  %434 = vperm.xlu1 %2498, %v2855_v14   ;;  %3611 = vst [vmem:[#allocation10_spill] sm:$0xff] %v2870_v19  ;;  %3612 = vst [vmem:[#allocation11_spill] sm:$0xff] %v2874_v20  ;;  %s2168_s10 = smin.u32 %s2618_s21, %s862_s30  ;;  %p861_p8 = scmp.lt.s32.totalorder %s2618_s21, 0  ;;  %vm819_vm11 = vcmask 1047568  }
  0x25   : > { %3605 = vst [vmem:[#allocation4_spill] sm:$0xff] %v2835_v5  ;;  %3606 = vst [vmem:[#allocation5_spill] sm:$0xff] %v2837_v6  ;;  %v2839_v7 = vld [vmem:[#allocation2 + $0x10] sm:$0xff]  ;;  %v2265_v8 = vpack.c.bf16 %v2837_v6, %v2835_v5  ;;  %v417_v21 = vld [vmem:[%s2795_s12 + $0x18] sm:$0xff]  ;;  %vm399_vm2 = vcmp.lt.s32.totalorder %v398_v31, 16  ;;  %s864_s11 = sand.u32 1, %s2168_s10  }
  0x26   : > { %3607 = vst [vmem:[#allocation6_spill] sm:$0xff] %v2839_v7  ;;  %v418_v22 = vld [vmem:[%s2795_s12 + $0x20] sm:$0xff]  ;;  %v2882_v23 = vld [vmem:[%s2810_s22 + $0x30] sm:$0xff]  ;;  %v2886_v24 = vld [vmem:[%s2810_s22 + $0x38] sm:$0xff]  ;;  %v2897_v39 = vsel %vm399_vm2, 1.0, %v2702_v38  ;;  %vm821_vm12 = vcmask 15360  }
  0x27   : > { %v2843_v9 = vld [vmem:[#allocation2 + $0x18] sm:$0xff]  ;;  %2266 = vmatprep.subr.bf16.mxu0 %v2265_v8  ;;  %429 = vperm.xlu0 %2497, %v2860_v15   ;;  %3613 = vst [vmem:[#allocation12_spill] sm:$0xff] %v2882_v23  ;;  %3614 = vst [vmem:[#allocation13_spill] sm:$0xff] %v2886_v24  ;;  %v419_v25 = vld [vmem:[%s2795_s12 + $0x28] sm:$0xff] }
  0x28   : > { %3608 = vst [vmem:[#allocation7_spill] sm:$0xff] %v2843_v9  ;;  %v2269_v12 = vpack.c.bf16 %v2843_v9, %v2839_v7  ;;  %2268 = vmatpush3.bf16.msra.mxu0 %v2265_v8  ;;  %439 = vperm.xlu1 %2498, %v2863_v16   ;;  %v420_v26 = vld [vmem:[%s2795_s12 + $0x30] sm:$0xff]  ;;  %v421_v27 = vld [vmem:[%s2795_s12 + $0x38] sm:$0xff]  ;;  %3615 = vst [vmem:[#allocation14_spill] sm:$0xff] %v2897_v39 }
  0x2a   : > { %2270 = vmatprep.subr.bf16.mxu0 %v2269_v12 }
  0x2b   : > { %444 = vperm.xlu0 %2497, %v2870_v19  }
  0x2c   : > { %2272 = vmatpush3.bf16.msra.mxu0 %v2269_v12  ;;  %449 = vperm.xlu1 %2498, %v2874_v20  }
  0x2f   : > { %2226 = vmatmul.mubr.msk.f32.vlgmr.msra.gmra.mrb[0].mxu0 %vm462_vm1, %v415_v17  ;;  %454 = vperm.xlu0 %2497, %v2882_v23  }
  0x30   : > { %2228 = vmatprep.mubr.msk.f32.mxu0 %vm462_vm1, %v416_v18  ;;  %459 = vperm.xlu1 %2498, %v2886_v24  }
  0x33   : > { %2229 = vmatmul.mubr.msk.f32.gmra.mrb[2].mxu0 %vm462_vm1, %v417_v21 }
  0x34   : > { %2231 = vmatprep.mubr.msk.f32.mxu0 %vm462_vm1, %v418_v22 }
  0x37   : > { %2232 = vmatmul.mubr.msk.f32.gmra.mrb[4].mxu0 %vm462_vm1, %v419_v25 }
  0x38   : > { %2234 = vmatprep.mubr.msk.f32.mxu0 %vm462_vm1, %v420_v26 }
  0x3b   : > { %2235 = vmatmul.mubr.msk.f32.gmra.mrb[6].mxu0 %vm462_vm1, %v421_v27 }
  0xa2   : > { %v425_v29 = vpop.permute.xlu0 %424 }
  0xa3   : > { %v435_v30 = vpop.permute.xlu1 %434 }
  0xa6   : > { %v430_v32 = vpop.permute.xlu0 %429 }
  0xa7   : > { %v440_v33 = vpop.permute.xlu1 %439 }
  0xaa   : > { %v445_v50 = vpop.permute.xlu0 %444 }
  0xab   : > { %v450_v46 = vpop.permute.xlu1 %449 }
  0xae   : > { %v455_v10 = vpop.permute.xlu0 %454 }
  0xaf   : > { %v460_v3 = vpop.permute.xlu1 %459 }
 0x102   : > { %v2227_v34 = vpop.f32.mrb[0].mxu0 }
 0x103   : > { %v559_v35 = vadd.f32 %v2227_v34, %v430_v32  ;;  %v553_v36 = vpop.f32.mrb[1].mxu0 }
 0x104   : > { %v554_v37 = vadd.f32 %v553_v36, %v425_v29 }
 0x105   : > { %vm593_vm3 = vcmp.ge.f32.partialorder %v559_v35, 0.0  ;;  %v601_v40 = vmul.f32 0.25, %v559_v35 }
 0x106   : > { %vm592_vm4 = vcmp.ge.f32.partialorder %v554_v37, 0.0  ;;  %v600_v41 = vmul.f32 0.25, %v554_v37  ;;  %v2230_v42 = vpop.f32.mrb[2].mxu0 }
 0x107   : > { %v2899_v43 = vsel %vm593_vm3, %v559_v35, %v601_v40  ;;  %v569_v44 = vadd.f32 %v2230_v42, %v440_v33  ;;  %v563_v45 = vpop.f32.mrb[3].mxu0 }
 0x108   : > { %v617_v47 = vmul.f32 %v2897_v39, %v2899_v43  ;;  %v2903_v48 = vsel %vm592_vm4, %v554_v37, %v600_v41  ;;  %v564_v49 = vadd.f32 %v563_v45, %v435_v30 }
 0x109   : > { %v616_v51 = vmul.f32 %v2897_v39, %v2903_v48  ;;  %vm595_vm5 = vcmp.ge.f32.partialorder %v569_v44, 0.0  ;;  %v603_v52 = vmul.f32 0.25, %v569_v44 }
 0x10a   : > { %v642_v53 = vmul.f32 %v617_v47, %v617_v47  ;;  %vm594_vm6 = vcmp.ge.f32.partialorder %v564_v49, 0.0  ;;  %v602_v54 = vmul.f32 0.25, %v564_v49  ;;  %v2233_v55 = vpop.f32.mrb[4].mxu0 }
 0x10b   : > { %v641_v56 = vmul.f32 %v616_v51, %v616_v51  ;;  %v2907_v57 = vsel %vm595_vm5, %v569_v44, %v603_v52  ;;  %v579_v58 = vadd.f32 %v2233_v55, %v450_v46  ;;  %v573_v59 = vpop.f32.mrb[5].mxu0  ;;  %v624_v63 = vadd.f32 %v617_v47, %v616_v51 }
 0x10c   : > { %v619_v60 = vmul.f32 %v2897_v39, %v2907_v57  ;;  %v2911_v61 = vsel %vm594_vm6, %v564_v49, %v602_v54  ;;  %v574_v62 = vadd.f32 %v573_v59, %v445_v50  ;;  %v2703_v54 = vmov 2  }
 0x10d   : > { %v618_v0 = vmul.f32 %v2897_v39, %v2911_v61  ;;  %vm597_vm7 = vcmp.ge.f32.partialorder %v579_v58, 0.0  ;;  %v605_v1 = vmul.f32 0.25, %v579_v58  ;;  %v649_v2 = vadd.f32 %v642_v53, %v641_v56  ;;  %2500 = vset.pattern.permute.xlu1 %v2703_v54  ;;  %2499 = vset.pattern.permute.xlu0 %v2703_v54 }
 0x10e   : > { %vm596_vm8 = vcmp.ge.f32.partialorder %v574_v62, 0.0  ;;  %v604_v4 = vmul.f32 0.25, %v574_v62  ;;  %v2236_v8 = vpop.f32.mrb[6].mxu0  ;;  %v644_v25 = vmul.f32 %v619_v60, %v619_v60 }
 0x10f   : > { %v625_v12 = vadd.f32 %v624_v63, %v618_v0  ;;  %v643_v17 = vmul.f32 %v618_v0, %v618_v0  ;;  %v2915_v18 = vsel %vm597_vm7, %v579_v58, %v605_v1  ;;  %v589_v21 = vadd.f32 %v2236_v8, %v460_v3  ;;  %v583_v22 = vpop.f32.mrb[7].mxu0 }
 0x110   : > { %v621_v26 = vmul.f32 %v2897_v39, %v2915_v18  ;;  %v2919_v27 = vsel %vm596_vm8, %v574_v62, %v604_v4  ;;  %v584_v28 = vadd.f32 %v583_v22, %v455_v10 }
 0x111   : > { %v650_v29 = vadd.f32 %v649_v2, %v643_v17  ;;  %v620_v30 = vmul.f32 %v2897_v39, %v2919_v27  ;;  %vm599_vm9 = vcmp.ge.f32.partialorder %v589_v21, 0.0  ;;  %v607_v31 = vmul.f32 0.25, %v589_v21 }
 0x112   : > { %vm598_vm10 = vcmp.ge.f32.partialorder %v584_v28, 0.0  ;;  %v606_v32 = vmul.f32 0.25, %v584_v28  ;;  %v626_v33 = vadd.f32 %v625_v12, %v619_v60  ;;  %v646_v42 = vmul.f32 %v621_v26, %v621_v26 }
 0x113   : > { %v645_v34 = vmul.f32 %v620_v30, %v620_v30  ;;  %v2923_v35 = vsel %vm599_vm9, %v589_v21, %v607_v31  ;;  %v651_v36 = vadd.f32 %v650_v29, %v644_v25  ;;  %v2704_v2 = vmov 1  }
 0x114   : > { %v2925_v37 = vsel %vm598_vm10, %v584_v28, %v606_v32  ;;  %v627_v38 = vadd.f32 %v626_v33, %v620_v30  ;;  %v623_v41 = vmul.f32 %v2897_v39, %v2923_v35 }
 0x115   : > { %v622_v40 = vmul.f32 %v2897_v39, %v2925_v37  ;;  %v652_v44 = vadd.f32 %v651_v36, %v645_v34 }
 0x116   : > { %v628_v45 = vadd.f32 %v627_v38, %v621_v26  ;;  %v648_v50 = vmul.f32 %v623_v41, %v623_v41 }
 0x117   : > { %v647_v46 = vmul.f32 %v622_v40, %v622_v40  ;;  %v653_v47 = vadd.f32 %v652_v44, %v646_v42 }
 0x118   : > { %v629_v49 = vadd.f32 %v628_v45, %v622_v40 }
 0x119   : > { %v654_v51 = vadd.f32 %v653_v47, %v647_v46 }
 0x11a   : > { %v630_v52 = vadd.f32 %v629_v49, %v623_v41 }
 0x11b   : > { %v655_v53 = vadd.f32 %v654_v51, %v648_v50 }
 0x11c   : > { %631 = vadd.xlane.f32.xlu0 %v630_v52 }
 0x11d   : > { %656 = vadd.xlane.f32.xlu1 %v655_v53 }
 0x12e   : > { %744 = vperm.xlu1 %2500, %v2860_v15  }
 0x132   : > { %740 = vperm.xlu0 %2499, %v2852_v13   ;;  %748 = vperm.xlu1 %2500, %v2855_v14  }
 0x136   : > { %752 = vperm.xlu0 %2499, %v2863_v16   ;;  %756 = vperm.xlu1 %2500, %v2870_v19  }
 0x13a   : > { %760 = vperm.xlu0 %2499, %v2874_v20   ;;  %2502 = vset.pattern.permute.xlu1 %v2704_v2 }
 0x13e   : > { %2501 = vset.pattern.permute.xlu0 %v2704_v2 }
 0x1a9   : > { %v632_v55 = vpop.xlane.xlu0 %631 }
 0x1aa   : > { %v633_v56 = vrot.slane %v632_v55, 4  ;;  %v657_v58 = vpop.xlane.xlu1 %656 }
 0x1ab   : > { %v658_v59 = vrot.slane %v657_v58, 4 }
 0x1ac   : > { %v634_v60 = vadd.f32 %v633_v56, %v632_v55 }
 0x1ad   : > { %v659_v62 = vadd.f32 %v658_v59, %v657_v58 }
 0x1ae   : > { %v635_v63 = vrot.slane %v634_v60, 2  ;;  %v745_v36 = vpop.permute.xlu1 %744 }
 0x1af   : > { %v660_v0 = vrot.slane %v659_v62, 2 }
 0x1b0   : > { %v636_v1 = vadd.f32 %v635_v63, %v634_v60 }
 0x1b1   : > { %v661_v3 = vadd.f32 %v660_v0, %v659_v62  ;;  %v741_v34 = vpop.permute.xlu0 %740 }
 0x1b2   : > { %v637_v4 = vrot.slane %v636_v1, 1  ;;  %v749_v40 = vpop.permute.xlu1 %748 }
 0x1b3   : > { %v662_v8 = vrot.slane %v661_v3, 1 }
 0x1b4   : > { %v638_v10 = vadd.f32 %v637_v4, %v636_v1 }
 0x1b5   : > { %v663_v12 = vadd.f32 %v662_v8, %v661_v3  ;;  %v753_v38 = vpop.permute.xlu0 %752 }
 0x1b6   : > { %2297 = vpush %v638_v10  ;;  %v757_v44 = vpop.permute.xlu1 %756 }
 0x1b7   : > { %2299 = vpush %v663_v12 }
 0x1b9   : > { %v761_v41 = vpop.permute.xlu0 %760 }
 0x1e7   : > { %s2298_s29 = spop %2297 }
 0x1e8   : > { %s2937_s8 = smul.f32 0.0009765625, %s2298_s29  ;;  %s2300_s9 = spop %2299 }
 0x1e9   : > { %s665_s12 = smul.f32 0.0009765625, %s2300_s9  ;;  %s865_s29 = ssub.s32 0, %s864_s11 }
 0x1ea   : > { %s666_s14 = smul.f32 %s2937_s8, %s2937_s8  ;;  %v682_v42 = vstv %s2937_s8  ;;  %s3643_s29 = smov (!%p861_p8, %s865_s29), %s864_s11 }
 0x1eb   : > { %v684_v45 = vsub.f32 %v2899_v43, %v682_v42  ;;  %v683_v46 = vsub.f32 %v2903_v48, %v682_v42  ;;  %v686_v43 = vsub.f32 %v2907_v57, %v682_v42  ;;  %v687_v0 = vsub.f32 %v2919_v27, %v682_v42  ;;  %p2170_p9 = scmp.lt.s32.totalorder %s3643_s29, 0  ;;  %s871_s21 = sadd.s32 2, %s3643_s29 }
 0x1ec   : > { %s667_s16 = ssub.f32 %s665_s12, %s666_s14  ;;  %v688_v57 = vsub.f32 %v2915_v18, %v682_v42  ;;  %v690_v18 = vsub.f32 %v2923_v35, %v682_v42  ;;  %v2982_v35 = vld [vmem:[%s2800_s15 + $0x8] sm:$0xff] }
 0x1ed   : > { %s3645_s21 = smov (!%p2170_p9, %s871_s21), %s3643_s29 }
 0x1ee   : > { %s668_s19 = smax.f32 %s2705_s17, %s667_s16  ;;  %p873_p10 = scmp.eq.s32.totalorder %s3645_s21, 0 }
 0x1ef   : > { %s669_s20 = sadd.f32 1e-05, %s668_s19  ;;  %p2171_p11 = scmp.ne.s32.totalorder %s3645_s21, 0 }
 0x1f0   : > { %s2711_s8 = smov (!%p2171_p11), 126   ;;  %vm1029_vm13 = vcmask (!%p2171_p11), 1039360   ;;  %vm1166_vm14 = vcmask (!%p2171_p11), 1031168  }
 0x1f1   : > { %v670_v17 = vstv %s669_s20 }
 0x1f2   : > { %2505 = vrsqrt.f32 %v670_v17 }
 0x1fc   : > { %v2506_v21 = vpop.eup %2505 }
 0x1fd   : > { %2301 = vpush %v2506_v21 }
 0x22e   : > { %s2302_s22 = spop %2301 }
 0x22f   : > { %v673_v22 = vstv %s2302_s22 }
 0x230   : > { %v675_v25 = vmul.f32 %v673_v22, %v2860_v15  ;;  %v674_v26 = vmul.f32 %v673_v22, %v2852_v13  ;;  %v676_v28 = vmul.f32 %v673_v22, %v2855_v14  ;;  %v677_v29 = vmul.f32 %v673_v22, %v2863_v16 }
 0x231   : > { %v678_v30 = vmul.f32 %v673_v22, %v2870_v19  ;;  %v679_v31 = vmul.f32 %v673_v22, %v2874_v20  ;;  %v680_v32 = vmul.f32 %v673_v22, %v2882_v23  ;;  %v681_v33 = vmul.f32 %v673_v22, %v2886_v24 }
 0x232   : > { %698 = vperm.xlu1 %2502, %v675_v25   ;;  %693 = vperm.xlu0 %2501, %v674_v26  }
 0x236   : > { %703 = vperm.xlu1 %2502, %v676_v28   ;;  %2504 = vset.pattern.permute.xlu0 %v2703_v54  ;;  %v689_v28 = vsub.f32 %v2925_v37, %v682_v42  ;;  %v2995_v37 = vld [vmem:[%s2800_s15 + $0x28] sm:$0xff] }
 0x237   : > { %768 = vperm.xlu0 %2504, %v2886_v24  }
 0x23a   : > { %708 = vperm.xlu1 %2502, %v677_v29  }
 0x23e   : > { %713 = vperm.xlu1 %2502, %v678_v30  }
 0x242   : > { %718 = vperm.xlu1 %2502, %v679_v31   ;;  %v2979_v31 = vld [vmem:[%s2800_s15] sm:$0xff] }
 0x246   : > { %723 = vperm.xlu1 %2502, %v680_v32   ;;  %v2985_v32 = vld [vmem:[%s2800_s15 + $0x10] sm:$0xff] }
 0x24a   : > { %728 = vperm.xlu1 %2502, %v681_v33  }
 0x24e   : > { %2503 = vset.pattern.permute.xlu1 %v2703_v54  ;;  %v685_v54 = vsub.f32 %v2911_v61, %v682_v42  ;;  %v3002_v42 = vld [vmem:[%s2800_s15 + $0x38] sm:$0xff] }
 0x24f   : > { %764 = vperm.xlu1 %2503, %v2882_v23  }
 0x2b1   : > { %v699_v47 = vpop.permute.xlu1 %698  ;;  %v694_v49 = vpop.permute.xlu0 %693 }
 0x2b2   : > { %v732_v50 = vmul.f32 %v699_v47, %v684_v45  ;;  %v731_v51 = vmul.f32 %v694_v49, %v683_v46 }
 0x2b4   : > { %v772_v52 = vadd.f32 %v745_v36, %v732_v50  ;;  %v771_v53 = vadd.f32 %v741_v34, %v731_v51  ;;  %v2989_v36 = vld [vmem:[%s2800_s15 + $0x18] sm:$0xff] }
 0x2b5   : > { %v704_v55 = vpop.permute.xlu1 %703 }
 0x2b6   : > { %v733_v56 = vmul.f32 %v704_v55, %v685_v54  ;;  %v780_v58 = vmul.f32 %v2897_v39, %v772_v52  ;;  %v779_v59 = vmul.f32 %v2897_v39, %v771_v53  ;;  %v769_v25 = vpop.permute.xlu0 %768 }
 0x2b8   : > { %v773_v60 = vadd.f32 %v749_v40, %v733_v56  ;;  %797 = vrot.lane.b32.xlu0 %v780_v58, %s2706_s28  ;;  %795 = vrot.lane.b32.xlu1 %v779_v59, %s2706_s28 }
 0x2b9   : > { %v709_v48 = vpop.permute.xlu1 %708 }
 0x2ba   : > { %v734_v62 = vmul.f32 %v709_v48, %v686_v43  ;;  %v781_v63 = vmul.f32 %v2897_v39, %v773_v60 }
 0x2bc   : > { %v774_v61 = vadd.f32 %v753_v38, %v734_v62  ;;  %799 = vrot.lane.b32.xlu1 %v781_v63, %s2706_s28  ;;  %v2992_v38 = vld [vmem:[%s2800_s15 + $0x20] sm:$0xff] }
 0x2bd   : > { %v714_v1 = vpop.permute.xlu1 %713 }
 0x2be   : > { %v735_v2 = vmul.f32 %v714_v1, %v687_v0  ;;  %v782_v3 = vmul.f32 %v2897_v39, %v774_v61 }
 0x2c0   : > { %v775_v4 = vadd.f32 %v757_v44, %v735_v2  ;;  %801 = vrot.lane.b32.xlu0 %v782_v3, %s2706_s28 }
 0x2c1   : > { %v719_v8 = vpop.permute.xlu1 %718 }
 0x2c2   : > { %v736_v10 = vmul.f32 %v719_v8, %v688_v57  ;;  %v783_v12 = vmul.f32 %v2897_v39, %v775_v4  ;;  %v3056_v57 = vmov 0   ;;  %v3058_v8 = vmov 0  }
 0x2c4   : > { %v776_v17 = vadd.f32 %v761_v41, %v736_v10  ;;  %803 = vrot.lane.b32.xlu1 %v783_v12, %s2706_s28  ;;  %v2999_v41 = vld [vmem:[%s2800_s15 + $0x30] sm:$0xff]  ;;  %v3060_v10 = vmov 0   ;;  %v3062_v12 = vmov 0   ;;  %s2710_s15 = smov (!%p2171_p11), 127  }
 0x2c5   : > { %v724_v21 = vpop.permute.xlu1 %723 }
 0x2c6   : > { %v784_v27 = vmul.f32 %v2897_v39, %v776_v17  ;;  %v737_v30 = vmul.f32 %v724_v21, %v689_v28  ;;  %v3064_v17 = vmov 0   ;;  %v3066_v21 = vmov 0  }
 0x2c8   : > { %805 = vrot.lane.b32.xlu0 %v784_v27, %s2706_s28  ;;  %v3068_v27 = vmov 0  }
 0x2c9   : > { %v729_v22 = vpop.permute.xlu1 %728 }
 0x2ca   : > { %v738_v26 = vmul.f32 %v729_v22, %v690_v18  ;;  %v3070_v18 = vmov 0   ;;  %v2707_v22 = vmov (!%p2171_p11), 1  }
 0x2cb   : > { %2508 = vset.pattern.permute.xlu1 (!%p2171_p11), %v2707_v22  ;;  %2507 = vset.pattern.permute.xlu0 (!%p2171_p11), %v2707_v22 }
 0x2cc   : > { %v778_v29 = vadd.f32 %v769_v25, %v738_v26  ;;  %v2708_v25 = vmov (!%p2171_p11), 2   ;;  %v2709_v26 = vmov (!%p2171_p11), 0  }
 0x2ce   : > { %v786_v33 = vmul.f32 %v2897_v39, %v778_v29  ;;  %v765_v34 = vpop.permute.xlu1 %764 }
 0x2cf   : > { %v777_v40 = vadd.f32 %v765_v34, %v737_v30 }
 0x2d0   : > { %809 = vrot.lane.b32.xlu0 %v786_v33, %s2706_s28 }
 0x2d1   : > { %v785_v44 = vmul.f32 %v2897_v39, %v777_v40 }
 0x2d3   : > { %807 = vrot.lane.b32.xlu1 %v785_v44, %s2706_s28 }
 0x2d4   : > { %934 = vperm.xlu0 (!%p2171_p11), %2507, %v2979_v31  }
 0x2d7   : > { %942 = vperm.xlu1 (!%p2171_p11), %2508, %v2985_v32  }
 0x2d8   : > { %938 = vperm.xlu0 (!%p2171_p11), %2507, %v2982_v35  }
 0x2db   : > { %946 = vperm.xlu1 (!%p2171_p11), %2508, %v2989_v36  }
 0x2dc   : > { %950 = vperm.xlu0 (!%p2171_p11), %2507, %v2992_v38  }
 0x2df   : > { %954 = vperm.xlu1 (!%p2171_p11), %2508, %v2995_v37  }
 0x2e0   : > { %958 = vperm.xlu0 (!%p2171_p11), %2507, %v2999_v41  }
 0x2e3   : > { %962 = vperm.xlu1 (!%p2171_p11), %2508, %v3002_v42  }
 0x2e4   : > { %2509 = vset.pattern.permute.xlu0 (!%p2171_p11), %v2708_v25 }
 0x2e5   : > { %1071 = vperm.xlu0 (!%p2171_p11), %2509, %v2979_v31  }
 0x2e7   : > { %2510 = vset.pattern.permute.xlu1 (!%p2171_p11), %v2708_v25 }
 0x2e8   : > { %1075 = vperm.xlu1 (!%p2171_p11), %2510, %v2982_v35  }
 0x2e9   : > { %1083 = vperm.xlu0 (!%p2171_p11), %2509, %v2989_v36  }
 0x2ec   : > { %1079 = vperm.xlu1 (!%p2171_p11), %2510, %v2985_v32  }
 0x2ed   : > { %1091 = vperm.xlu0 (!%p2171_p11), %2509, %v2995_v37  }
 0x2f0   : > { %1087 = vperm.xlu1 (!%p2171_p11), %2510, %v2992_v38  }
 0x2f1   : > { %1099 = vperm.xlu0 (!%p2171_p11), %2509, %v3002_v42  }
 0x2f4   : > { %1095 = vperm.xlu1 (!%p2171_p11), %2510, %v2999_v41  }
 0x2f5   : > { %2512 = vset.pattern.permute.xlu0 (!%p2171_p11), %v2709_v26 }
 0x2f6   : > { %884 = vperm.xlu0 (!%p2171_p11), %2512, %v2982_v35  }
 0x2f8   : > { %2511 = vset.pattern.permute.xlu1 (!%p2171_p11), %v2709_v26 }
 0x2f9   : > { %879 = vperm.xlu1 (!%p2171_p11), %2511, %v2979_v31  }
 0x2fa   : > { %899 = vperm.xlu0 (!%p2171_p11), %2512, %v2992_v38  }
 0x2fd   : > { %889 = vperm.xlu1 (!%p2171_p11), %2511, %v2985_v32  }
 0x2fe   : > { %909 = vperm.xlu0 (!%p2171_p11), %2512, %v2999_v41  }
 0x301   : > { %894 = vperm.xlu1 (!%p2171_p11), %2511, %v2989_v36  }
 0x302   : > { %2513 = vset.pattern.permute.xlu0 (!%p2171_p11), %v2708_v25 }
 0x305   : > { %904 = vperm.xlu1 (!%p2171_p11), %2511, %v2995_v37  }
 0x309   : > { %914 = vperm.xlu1 (!%p2171_p11), %2511, %v3002_v42  }
 0x32a   : > { %v796_v45 = vpop.permute.xlu1 %795  ;;  %v798_v46 = vpop.permute.xlu0 %797 }
 0x32b   : > { %820 = vst.msk [vmem:[#allocation3] sm:$0xff] %vm819_vm11, %v796_v45  ;;  %823 = vst.msk [vmem:[#allocation3 + $0x10] sm:$0xff] %vm819_vm11, %v798_v46 }
 0x32c   : > { %822 = vst.msk [vmem:[#allocation3 + $0x8] sm:$0xff] %vm821_vm12, %v796_v45  ;;  %824 = vst.msk [vmem:[#allocation3 + $0x18] sm:$0xff] %vm821_vm12, %v798_v46 }
 0x32e   : > { %v800_v47 = vpop.permute.xlu1 %799 }
 0x32f   : > { %825 = vst.msk [vmem:[#allocation3 + $0x20] sm:$0xff] %vm819_vm11, %v800_v47 }
 0x330   : > { %826 = vst.msk [vmem:[#allocation3 + $0x28] sm:$0xff] %vm821_vm12, %v800_v47 }
 0x332   : > { %v3013_v49 = vld [vmem:[#allocation3] sm:$0xff]  ;;  %v3017_v51 = vld [vmem:[#allocation3 + $0x10] sm:$0xff]  ;;  %v802_v52 = vpop.permute.xlu0 %801 }
 0x333   : > { %v3015_v50 = vld [vmem:[#allocation3 + $0x8] sm:$0xff]  ;;  %v3019_v53 = vld [vmem:[#allocation3 + $0x18] sm:$0xff]  ;;  %827 = vst.msk [vmem:[#allocation3 + $0x30] sm:$0xff] %vm819_vm11, %v802_v52 }
 0x334   : > { %828 = vst.msk [vmem:[#allocation3 + $0x38] sm:$0xff] %vm821_vm12, %v802_v52 }
 0x336   : > { %v3023_v54 = vld [vmem:[#allocation3 + $0x20] sm:$0xff]  ;;  %v804_v56 = vpop.permute.xlu1 %803 }
 0x337   : > { %v3025_v55 = vld [vmem:[#allocation3 + $0x28] sm:$0xff]  ;;  %829 = vst.msk [vmem:[#allocation3 + $0x40] sm:$0xff] %vm819_vm11, %v804_v56 }
 0x338   : > { %830 = vst.msk [vmem:[#allocation3 + $0x48] sm:$0xff] %vm821_vm12, %v804_v56 }
 0x33a   : > { %v3029_v58 = vld [vmem:[#allocation3 + $0x30] sm:$0xff]  ;;  %v806_v60 = vpop.permute.xlu0 %805 }
 0x33b   : > { %v3031_v59 = vld [vmem:[#allocation3 + $0x38] sm:$0xff]  ;;  %831 = vst.msk [vmem:[#allocation3 + $0x50] sm:$0xff] %vm819_vm11, %v806_v60 }
 0x33c   : > { %832 = vst.msk [vmem:[#allocation3 + $0x58] sm:$0xff] %vm821_vm12, %v806_v60 }
 0x33e   : > { %v3035_v43 = vld [vmem:[#allocation3 + $0x40] sm:$0xff] }
 0x33f   : > { %v3037_v48 = vld [vmem:[#allocation3 + $0x48] sm:$0xff] }
 0x342   : > { %v3039_v62 = vld [vmem:[#allocation3 + $0x50] sm:$0xff]  ;;  %v810_v61 = vpop.permute.xlu0 %809 }
 0x343   : > { %v3041_v63 = vld [vmem:[#allocation3 + $0x58] sm:$0xff]  ;;  %835 = vst.msk [vmem:[#allocation3 + $0x70] sm:$0xff] %vm819_vm11, %v810_v61 }
 0x344   : > { %836 = vst.msk [vmem:[#allocation3 + $0x78] sm:$0xff] %vm821_vm12, %v810_v61 }
 0x345   : > { %v808_v0 = vpop.permute.xlu1 %807 }
 0x346   : > { %833 = vst.msk [vmem:[#allocation3 + $0x60] sm:$0xff] %vm819_vm11, %v808_v0 }
 0x347   : > { %834 = vst.msk [vmem:[#allocation3 + $0x68] sm:$0xff] %vm821_vm12, %v808_v0 }
 0x348   : > { %876 = sbr.rel (%p2171_p11) target bundleno = 1148 (0x47c), region = 52 }
 0x34a   : > { %v3047_v1 = vld [vmem:[#allocation3 + $0x70] sm:$0xff] }
 0x34b   : > { %v3049_v2 = vld [vmem:[#allocation3 + $0x78] sm:$0xff] }
 0x34d   : > { %v3051_v3 = vld [vmem:[#allocation3 + $0x60] sm:$0xff] }
 0x34e   : > { %v3053_v4 = vld [vmem:[#allocation3 + $0x68] sm:$0xff] }
 0x353   : > { %v935_v28 = vpop.permute.xlu0 %934 }
 0x354   : > { %v965_v29 = vmul.f32 %v935_v28, %v3013_v49  ;;  %v966_v30 = vmul.f32 %v935_v28, %v3015_v50 }
 0x356   : > { %997 = vrot.lane.b32.xlu0 %v965_v29, %s2710_s15  ;;  %999 = vrot.lane.b32.xlu1 %v966_v30, %s2710_s15  ;;  %v943_v44 = vpop.permute.xlu1 %942 }
 0x357   : > { %v939_v33 = vpop.permute.xlu0 %938  ;;  %v969_v45 = vmul.f32 %v943_v44, %v3023_v54  ;;  %v970_v46 = vmul.f32 %v943_v44, %v3025_v55 }
 0x358   : > { %v967_v34 = vmul.f32 %v939_v33, %v3017_v51  ;;  %v968_v40 = vmul.f32 %v939_v33, %v3019_v53 }
 0x35a   : > { %1001 = vrot.lane.b32.xlu0 %v967_v34, %s2710_s15  ;;  %1003 = vrot.lane.b32.xlu1 %v968_v40, %s2710_s15  ;;  %v947_v47 = vpop.permute.xlu1 %946 }
 0x35b   : > { %v971_v52 = vmul.f32 %v947_v47, %v3029_v58  ;;  %v972_v56 = vmul.f32 %v947_v47, %v3031_v59  ;;  %v951_v60 = vpop.permute.xlu0 %950 }
 0x35c   : > { %v973_v61 = vmul.f32 %v951_v60, %v3035_v43  ;;  %v974_v0 = vmul.f32 %v951_v60, %v3037_v48 }
 0x35e   : > { %1005 = vrot.lane.b32.xlu0 %v969_v45, %s2710_s15  ;;  %1007 = vrot.lane.b32.xlu1 %v970_v46, %s2710_s15  ;;  %v955_v57 = vpop.permute.xlu1 %954 }
 0x35f   : > { %v975_v8 = vmul.f32 %v955_v57, %v3039_v62  ;;  %v976_v10 = vmul.f32 %v955_v57, %v3041_v63  ;;  %v959_v12 = vpop.permute.xlu0 %958 }
 0x360   : > { %v977_v17 = vmul.f32 %v959_v12, %v3051_v3  ;;  %v978_v21 = vmul.f32 %v959_v12, %v3053_v4 }
 0x362   : > { %1009 = vrot.lane.b32.xlu0 %v971_v52, %s2710_s15  ;;  %1011 = vrot.lane.b32.xlu1 %v972_v56, %s2710_s15  ;;  %v963_v27 = vpop.permute.xlu1 %962 }
 0x363   : > { %v979_v18 = vmul.f32 %v963_v27, %v3047_v1  ;;  %v980_v22 = vmul.f32 %v963_v27, %v3049_v2 }
 0x364   : > { %v1072_v25 = vpop.permute.xlu0 %1071 }
 0x365   : > { %v1102_v26 = vmul.f32 %v1072_v25, %v3013_v49  ;;  %v1103_v28 = vmul.f32 %v1072_v25, %v3015_v50 }
 0x366   : > { %1013 = vrot.lane.b32.xlu0 %v973_v61, %s2710_s15  ;;  %1015 = vrot.lane.b32.xlu1 %v974_v0, %s2710_s15 }
 0x367   : > { %v1076_v29 = vpop.permute.xlu1 %1075 }
 0x368   : > { %v1104_v30 = vmul.f32 %v1076_v29, %v3017_v51  ;;  %v1105_v33 = vmul.f32 %v1076_v29, %v3019_v53  ;;  %v1084_v45 = vpop.permute.xlu0 %1083 }
 0x369   : > { %v1108_v46 = vmul.f32 %v1084_v45, %v3029_v58  ;;  %v1109_v47 = vmul.f32 %v1084_v45, %v3031_v59 }
 0x36a   : > { %1017 = vrot.lane.b32.xlu0 %v975_v8, %s2710_s15  ;;  %1019 = vrot.lane.b32.xlu1 %v976_v10, %s2710_s15 }
 0x36b   : > { %v1080_v34 = vpop.permute.xlu1 %1079 }
 0x36c   : > { %v1106_v40 = vmul.f32 %v1080_v34, %v3023_v54  ;;  %v1107_v44 = vmul.f32 %v1080_v34, %v3025_v55  ;;  %v1092_v61 = vpop.permute.xlu0 %1091 }
 0x36d   : > { %v1112_v0 = vmul.f32 %v1092_v61, %v3039_v62  ;;  %v1113_v57 = vmul.f32 %v1092_v61, %v3041_v63 }
 0x36e   : > { %1021 = vrot.lane.b32.xlu0 %v977_v17, %s2710_s15  ;;  %1023 = vrot.lane.b32.xlu1 %v978_v21, %s2710_s15 }
 0x36f   : > { %v1088_v52 = vpop.permute.xlu1 %1087 }
 0x370   : > { %v1110_v56 = vmul.f32 %v1088_v52, %v3035_v43  ;;  %v1111_v60 = vmul.f32 %v1088_v52, %v3037_v48  ;;  %v1100_v17 = vpop.permute.xlu0 %1099 }
 0x371   : > { %v1116_v21 = vmul.f32 %v1100_v17, %v3047_v1  ;;  %v1117_v27 = vmul.f32 %v1100_v17, %v3049_v2 }
 0x372   : > { %1025 = vrot.lane.b32.xlu0 %v979_v18, %s2710_s15  ;;  %1027 = vrot.lane.b32.xlu1 %v980_v22, %s2710_s15 }
 0x373   : > { %v1096_v8 = vpop.permute.xlu1 %1095 }
 0x374   : > { %v1114_v10 = vmul.f32 %v1096_v8, %v3051_v3  ;;  %v1115_v12 = vmul.f32 %v1096_v8, %v3053_v4 }
 0x376   : > { %1134 = vrot.lane.b32.xlu0 %v1102_v26, %s2711_s8  ;;  %1136 = vrot.lane.b32.xlu1 %v1103_v28, %s2711_s8  ;;  %v885_v26 = vpop.permute.xlu0 %884 }
 0x377   : > { %v920_v39 = vmul.f32 %v885_v26, %v3019_v53  ;;  %v919_v20 = vmul.f32 %v885_v26, %v3017_v51 }
 0x378   : > { %v880_v18 = vpop.permute.xlu1 %879 }
 0x379   : > { %v917_v11 = vmul.f32 %v880_v18, %v3013_v49 }
 0x37a   : > { %1138 = vrot.lane.b32.xlu0 %v1104_v30, %s2711_s8  ;;  %1140 = vrot.lane.b32.xlu1 %v1105_v33, %s2711_s8  ;;  %v3162_v29 = vpop.permute.xlu0 %899 }
 0x37c   : > { %v890_v22 = vpop.permute.xlu1 %889 }
 0x37e   : > { %1142 = vrot.lane.b32.xlu0 %v1106_v40, %s2711_s8  ;;  %1144 = vrot.lane.b32.xlu1 %v1107_v44, %s2711_s8  ;;  %v3166_v33 = vpop.permute.xlu0 %909 }
 0x380   : > { %v895_v25 = vpop.permute.xlu1 %894 }
 0x382   : > { %1146 = vrot.lane.b32.xlu0 %v1108_v46, %s2711_s8  ;;  %1148 = vrot.lane.b32.xlu1 %v1109_v47, %s2711_s8 }
 0x384   : > { %v3160_v28 = vpop.permute.xlu1 %904 }
 0x386   : > { %1150 = vrot.lane.b32.xlu0 %v1110_v56, %s2711_s8  ;;  %1152 = vrot.lane.b32.xlu1 %v1111_v60, %s2711_s8 }
 0x388   : > { %v3164_v30 = vpop.permute.xlu1 %914 }
 0x38a   : > { %1154 = vrot.lane.b32.xlu0 %v1112_v0, %s2711_s8  ;;  %1156 = vrot.lane.b32.xlu1 %v1113_v57, %s2711_s8 }
 0x38e   : > { %1158 = vrot.lane.b32.xlu0 %v1114_v10, %s2711_s8  ;;  %1160 = vrot.lane.b32.xlu1 %v1115_v12, %s2711_s8 }
 0x392   : > { %1162 = vrot.lane.b32.xlu0 %v1116_v21, %s2711_s8  ;;  %1164 = vrot.lane.b32.xlu1 %v1117_v27, %s2711_s8  ;;  %v918_v21 = vmul.f32 %v880_v18, %v3015_v50 }
 0x3c8   : > { %v998_v34 = vpop.permute.xlu0 %997  ;;  %v1000_v40 = vpop.permute.xlu1 %999 }
 0x3c9   : > { %v1030_v27 = vsel %vm1029_vm13, %v998_v34, %v1000_v40  ;;  %v1055_v7 = vadd.f32 %v1000_v40, %v918_v21  ;;  %v922_v40 = vmul.f32 %v890_v22, %v3025_v55 }
 0x3ca   : > { %v1054_v5 = vadd.f32 %v1030_v27, %v917_v11 }
 0x3cc   : > { %v1002_v44 = vpop.permute.xlu0 %1001  ;;  %v1004_v45 = vpop.permute.xlu1 %1003 }
 0x3cd   : > { %v1031_v23 = vsel %vm1029_vm13, %v1002_v44, %v1004_v45  ;;  %v1057_v16 = vadd.f32 %v1004_v45, %v920_v39 }
 0x3ce   : > { %v1056_v34 = vadd.f32 %v1031_v23, %v919_v20 }
 0x3d0   : > { %v1006_v46 = vpop.permute.xlu0 %1005  ;;  %v1008_v47 = vpop.permute.xlu1 %1007 }
 0x3d1   : > { %v1032_v21 = vsel %vm1029_vm13, %v1006_v46, %v1008_v47 }
 0x3d4   : > { %v1010_v52 = vpop.permute.xlu0 %1009  ;;  %v1012_v56 = vpop.permute.xlu1 %1011 }
 0x3d5   : > { %v1033_v23 = vsel %vm1029_vm13, %v1010_v52, %v1012_v56 }
 0x3d8   : > { %v1014_v60 = vpop.permute.xlu0 %1013  ;;  %v1016_v61 = vpop.permute.xlu1 %1015 }
 0x3dc   : > { %v3168_v0 = vpop.permute.xlu0 %1017  ;;  %v3170_v57 = vpop.permute.xlu1 %1019 }
 0x3e0   : > { %v3172_v8 = vpop.permute.xlu0 %1021  ;;  %v3174_v10 = vpop.permute.xlu1 %1023 }
 0x3e4   : > { %v3176_v12 = vpop.permute.xlu0 %1025  ;;  %v3178_v17 = vpop.permute.xlu1 %1027 }
 0x3e8   : > { %v1135_v9 = vpop.permute.xlu0 %1134  ;;  %v1137_v6 = vpop.permute.xlu1 %1136 }
 0x3e9   : > { %v1167_v24 = vsel %vm1166_vm14, %v1135_v9, %v1137_v6  ;;  %v1192_v19 = vadd.f32 %v1137_v6, %v1055_v7  ;;  %v921_v6 = vmul.f32 %v890_v22, %v3023_v54  ;;  %v1059_v9 = vadd.f32 %v1008_v47, %v922_v40 }
 0x3ea   : > { %v1191_v15 = vadd.f32 %v1167_v24, %v1054_v5 }
 0x3eb   : > { %1225 = vrot.lane.b32.xlu1 %v1192_v19, %s2710_s15  ;;  %v1058_v5 = vadd.f32 %v1032_v21, %v921_v6  ;;  %v928_v6 = vmul.f32 %v3160_v28, %v3041_v63 }
 0x3ec   : > { %v1139_v18 = vpop.permute.xlu0 %1138  ;;  %1223 = vrot.lane.b32.xlu0 %v1191_v15, %s2710_s15  ;;  %v1141_v11 = vpop.permute.xlu1 %1140  ;;  %v924_v15 = vmul.f32 %v895_v25, %v3031_v59 }
 0x3ed   : > { %v1168_v44 = vsel %vm1166_vm14, %v1139_v18, %v1141_v11  ;;  %v1194_v27 = vadd.f32 %v1141_v11, %v1057_v16  ;;  %v923_v16 = vmul.f32 %v895_v25, %v3029_v58  ;;  %v1034_v18 = vsel %vm1029_vm13, %v1014_v60, %v1016_v61 }
 0x3ee   : > { %v1193_v7 = vadd.f32 %v1168_v44, %v1056_v34  ;;  %v1061_v22 = vadd.f32 %v1012_v56, %v924_v15  ;;  %v926_v34 = vmul.f32 %v3162_v29, %v3037_v48  ;;  %v925_v25 = vmul.f32 %v3162_v29, %v3035_v43 }
 0x3ef   : > { %1229 = vrot.lane.b32.xlu1 %v1194_v27, %s2710_s15  ;;  %v1060_v45 = vadd.f32 %v1033_v23, %v923_v16  ;;  %v1035_v60 = vsel %vm1029_vm13, %v3168_v0, %v3170_v57  ;;  %v927_v29 = vmul.f32 %v3160_v28, %v3039_v62  ;;  %v930_v23 = vmul.f32 %v3166_v33, %v3053_v4 }
 0x3f0   : > { %v1143_v19 = vpop.permute.xlu0 %1142  ;;  %1227 = vrot.lane.b32.xlu0 %v1193_v7, %s2710_s15  ;;  %v1145_v20 = vpop.permute.xlu1 %1144  ;;  %v1063_v56 = vadd.f32 %v1016_v61, %v926_v34  ;;  %v1062_v21 = vadd.f32 %v1034_v18, %v925_v25  ;;  %v1036_v0 = vsel %vm1029_vm13, %v3172_v8, %v3174_v10  ;;  %v1037_v8 = vsel %vm1029_vm13, %v3176_v12, %v3178_v17 }
 0x3f1   : > { %v1169_v24 = vsel %vm1166_vm14, %v1143_v19, %v1145_v20  ;;  %v1196_v39 = vadd.f32 %v1145_v20, %v1059_v9  ;;  %v1064_v19 = vadd.f32 %v1035_v60, %v927_v29  ;;  %v1067_v16 = vadd.f32 %v3174_v10, %v930_v23 }
 0x3f2   : > { %v1195_v26 = vadd.f32 %v1169_v24, %v1058_v5  ;;  %v1065_v5 = vadd.f32 %v3170_v57, %v928_v6  ;;  %v929_v57 = vmul.f32 %v3166_v33, %v3051_v3  ;;  %v931_v10 = vmul.f32 %v3164_v30, %v3047_v1 }
 0x3f3   : > { %1233 = vrot.lane.b32.xlu1 %v1196_v39, %s2710_s15 }
 0x3f4   : > { %v1147_v46 = vpop.permute.xlu0 %1146  ;;  %1231 = vrot.lane.b32.xlu0 %v1195_v26, %s2710_s15  ;;  %v1149_v47 = vpop.permute.xlu1 %1148  ;;  %v1066_v26 = vadd.f32 %v1036_v0, %v929_v57 }
 0x3f5   : > { %v1170_v52 = vsel %vm1166_vm14, %v1147_v46, %v1149_v47  ;;  %v1198_v11 = vadd.f32 %v1149_v47, %v1061_v22  ;;  %v932_v46 = vmul.f32 %v3164_v30, %v3049_v2 }
 0x3f6   : > { %v1197_v40 = vadd.f32 %v1170_v52, %v1060_v45  ;;  %v1068_v52 = vadd.f32 %v1037_v8, %v931_v10 }
 0x3f7   : > { %1237 = vrot.lane.b32.xlu1 %v1198_v11, %s2710_s15  ;;  %v1069_v18 = vadd.f32 %v3178_v17, %v932_v46 }
 0x3f8   : > { %v1151_v44 = vpop.permute.xlu0 %1150  ;;  %1235 = vrot.lane.b32.xlu0 %v1197_v40, %s2710_s15  ;;  %v1153_v27 = vpop.permute.xlu1 %1152 }
 0x3f9   : > { %v1171_v7 = vsel %vm1166_vm14, %v1151_v44, %v1153_v27  ;;  %v1200_v9 = vadd.f32 %v1153_v27, %v1063_v56 }
 0x3fa   : > { %v1199_v61 = vadd.f32 %v1171_v7, %v1062_v21 }
 0x3fb   : > { %1241 = vrot.lane.b32.xlu1 %v1200_v9, %s2710_s15 }
 0x3fc   : > { %v1155_v20 = vpop.permute.xlu0 %1154  ;;  %1239 = vrot.lane.b32.xlu0 %v1199_v61, %s2710_s15  ;;  %v1157_v15 = vpop.permute.xlu1 %1156 }
 0x3fd   : > { %v1172_v24 = vsel %vm1166_vm14, %v1155_v20, %v1157_v15  ;;  %v1202_v28 = vadd.f32 %v1157_v15, %v1065_v5 }
 0x3fe   : > { %v1201_v39 = vadd.f32 %v1172_v24, %v1064_v19 }
 0x3ff   : > { %1245 = vrot.lane.b32.xlu1 %v1202_v28, %s2710_s15 }
 0x400   : > { %v1159_v22 = vpop.permute.xlu0 %1158  ;;  %1243 = vrot.lane.b32.xlu0 %v1201_v39, %s2710_s15  ;;  %v1161_v45 = vpop.permute.xlu1 %1160 }
 0x401   : > { %v1173_v47 = vsel %vm1166_vm14, %v1159_v22, %v1161_v45  ;;  %v1204_v33 = vadd.f32 %v1161_v45, %v1067_v16 }
 0x402   : > { %v1203_v34 = vadd.f32 %v1173_v47, %v1066_v26 }
 0x403   : > { %1249 = vrot.lane.b32.xlu1 %v1204_v33, %s2710_s15 }
 0x404   : > { %v1163_v11 = vpop.permute.xlu0 %1162  ;;  %1247 = vrot.lane.b32.xlu0 %v1203_v34, %s2710_s15  ;;  %v1165_v25 = vpop.permute.xlu1 %1164 }
 0x405   : > { %v1174_v40 = vsel %vm1166_vm14, %v1163_v11, %v1165_v25  ;;  %v1206_v56 = vadd.f32 %v1165_v25, %v1069_v18 }
 0x406   : > { %v1205_v12 = vadd.f32 %v1174_v40, %v1068_v52 }
 0x407   : > { %1253 = vrot.lane.b32.xlu1 %v1206_v56, %s2710_s15 }
 0x408   : > { %1251 = vrot.lane.b32.xlu0 %v1205_v12, %s2710_s15 }
 0x45d   : > { %v1226_v21 = vpop.permute.xlu1 %1225 }
 0x45e   : > { %v1224_v30 = vpop.permute.xlu0 %1223 }
 0x45f   : > { %v1255_v18 = vsel %vm1029_vm13, %v1224_v30, %v1226_v21  }
 0x461   : > { %v1230_v17 = vpop.permute.xlu1 %1229 }
 0x462   : > { %v1228_v44 = vpop.permute.xlu0 %1227 }
 0x463   : > { %v1256_v27 = vsel %vm1029_vm13, %v1228_v44, %v1230_v17  }
 0x465   : > { %v1234_v6 = vpop.permute.xlu1 %1233 }
 0x466   : > { %v1232_v60 = vpop.permute.xlu0 %1231 }
 0x467   : > { %v1257_v21 = vsel %vm1029_vm13, %v1232_v60, %v1234_v6  }
 0x469   : > { %v1238_v7 = vpop.permute.xlu1 %1237 }
 0x46a   : > { %v1236_v9 = vpop.permute.xlu0 %1235 }
 0x46b   : > { %v1258_v17 = vsel %vm1029_vm13, %v1236_v9, %v1238_v7  }
 0x46d   : > { %v1242_v29 = vpop.permute.xlu1 %1241 }
 0x46e   : > { %v1240_v61 = vpop.permute.xlu0 %1239 }
 0x46f   : > { %v1259_v12 = vsel %vm1029_vm13, %v1240_v61, %v1242_v29  }
 0x471   : > { %v1246_v5 = vpop.permute.xlu1 %1245 }
 0x472   : > { %v1244_v19 = vpop.permute.xlu0 %1243 }
 0x473   : > { %v1260_v10 = vsel %vm1029_vm13, %v1244_v19, %v1246_v5  }
 0x475   : > { %v1250_v20 = vpop.permute.xlu1 %1249 }
 0x476   : > { %v1248_v15 = vpop.permute.xlu0 %1247 }
 0x477   : > { %v1261_v8 = vsel %vm1029_vm13, %v1248_v15, %v1250_v20  }
 0x479   : > { %v1254_v23 = vpop.permute.xlu1 %1253 }
 0x47a   : > { %v1252_v0 = vpop.permute.xlu0 %1251 }
 0x47b   : > { %v1262_v57 = vsel %vm1029_vm13, %v1252_v0, %v1254_v23  }
 0x47c PF: > { %1281 = sbr.rel (%p873_p10) target bundleno = 1474 (0x5c2), region = 56  ;;  %v2712_v24 = vmov (!%p873_p10), 0   ;;  %v2713_v28 = vmov (!%p873_p10), 1   ;;  %v2714_v27 = vmov (!%p873_p10), 2   ;;  %s2715_s9 = smov (!%p873_p10), 126   ;;  %vm1426_vm15 = vcmask (!%p873_p10), 1031168   ;;  %v2666_v18 = vphi %v3070_v18, %v1255_v18   ;;  %v2662_v27 = vphi %v3068_v27, %v1256_v27   ;;  %v2658_v21 = vphi %v3066_v21, %v1257_v21   ;;  %v2654_v17 = vphi %v3064_v17, %v1258_v17   ;;  %v2650_v12 = vphi %v3062_v12, %v1259_v12   ;;  %v2646_v10 = vphi %v3060_v10, %v1260_v10   ;;  %v2642_v8 = vphi %v3058_v8, %v1261_v8   ;;  %v2638_v57 = vphi %v3056_v57, %v1262_v57  }
 0x47d   : > { %2515 = vset.pattern.permute.xlu1 (!%p873_p10), %v2712_v24  ;;  %2514 = vset.pattern.permute.xlu0 (!%p873_p10), %v2712_v24  ;;  %s2716_s12 = smov (!%p873_p10), 124   ;;  %vm1547_vm0 = vcmask (!%p873_p10), 1014784  }
 0x47e   : > { %1294 = vperm.xlu1 (!%p873_p10), %2515, %v2985_v32   ;;  %1284 = vperm.xlu0 (!%p873_p10), %2514, %v2979_v31  }
 0x482   : > { %1299 = vperm.xlu1 (!%p873_p10), %2515, %v2989_v36   ;;  %1289 = vperm.xlu0 (!%p873_p10), %2514, %v2982_v35  }
 0x486   : > { %1309 = vperm.xlu1 %2515, %v2995_v37   ;;  %1304 = vperm.xlu0 %2514, %v2992_v38  }
 0x48a   : > { %1319 = vperm.xlu1 %2515, %v3002_v42   ;;  %1314 = vperm.xlu0 %2514, %v2999_v41  }
 0x48e   : > { %2517 = vset.pattern.permute.xlu1 %v2713_v28  ;;  %2516 = vset.pattern.permute.xlu0 %v2713_v28 }
 0x48f   : > { %1335 = vperm.xlu1 %2517, %v2982_v35   ;;  %1331 = vperm.xlu0 %2516, %v2979_v31  }
 0x493   : > { %1339 = vperm.xlu1 %2517, %v2985_v32   ;;  %1343 = vperm.xlu0 %2516, %v2989_v36  }
 0x497   : > { %1347 = vperm.xlu1 %2517, %v2992_v38   ;;  %1351 = vperm.xlu0 %2516, %v2995_v37  }
 0x49b   : > { %1355 = vperm.xlu1 %2517, %v2999_v41   ;;  %1359 = vperm.xlu0 %2516, %v3002_v42  }
 0x49f   : > { %2518 = vset.pattern.permute.xlu1 %v2714_v27  ;;  %2519 = vset.pattern.permute.xlu0 %v2714_v27 }
 0x4a0   : > { %1452 = vperm.xlu1 %2518, %v2979_v31   ;;  %1456 = vperm.xlu0 %2519, %v2982_v35  }
 0x4a4   : > { %1460 = vperm.xlu1 %2518, %v2985_v32   ;;  %1468 = vperm.xlu0 %2519, %v2992_v38  }
 0x4a8   : > { %1464 = vperm.xlu1 %2518, %v2989_v36   ;;  %1476 = vperm.xlu0 %2519, %v2999_v41  }
 0x4ac   : > { %1472 = vperm.xlu1 %2518, %v2995_v37  }
 0x4b0   : > { %1480 = vperm.xlu1 %2518, %v3002_v42  }
 0x4fd   : > { %v3319_v57 = vpop.permute.xlu1 %1294  ;;  %v3321_v39 = vpop.permute.xlu0 %1284 }
 0x501   : > { %v3323_v16 = vpop.permute.xlu1 %1299  ;;  %v3325_v31 = vpop.permute.xlu0 %1289 }
 0x505   : > { %v3327_v35 = vpop.permute.xlu1 %1309  ;;  %v3329_v32 = vpop.permute.xlu0 %1304 }
 0x509   : > { %v3331_v38 = vpop.permute.xlu1 %1319  ;;  %v3333_v36 = vpop.permute.xlu0 %1314 }
 0x50e   : > { %v1336_v41 = vpop.permute.xlu1 %1335  ;;  %v1332_v37 = vpop.permute.xlu0 %1331 }
 0x50f   : > { %v1362_v42 = vmul.f32 %v1332_v37, %v3013_v49  ;;  %v1363_v26 = vmul.f32 %v1332_v37, %v3015_v50  ;;  %v1364_v22 = vmul.f32 %v1336_v41, %v3017_v51  ;;  %v1365_v45 = vmul.f32 %v1336_v41, %v3019_v53 }
 0x511   : > { %1396 = vrot.lane.b32.xlu1 %v1363_v26, %s2715_s9  ;;  %1394 = vrot.lane.b32.xlu0 %v1362_v42, %s2715_s9 }
 0x512   : > { %v1340_v46 = vpop.permute.xlu1 %1339  ;;  %v1344_v33 = vpop.permute.xlu0 %1343 }
 0x513   : > { %v1366_v8 = vmul.f32 %v1340_v46, %v3023_v54  ;;  %v1367_v47 = vmul.f32 %v1340_v46, %v3025_v55  ;;  %v1368_v10 = vmul.f32 %v1344_v33, %v3029_v58  ;;  %v1369_v34 = vmul.f32 %v1344_v33, %v3031_v59 }
 0x515   : > { %1400 = vrot.lane.b32.xlu1 %v1365_v45, %s2715_s9  ;;  %1398 = vrot.lane.b32.xlu0 %v1364_v22, %s2715_s9 }
 0x516   : > { %v1348_v18 = vpop.permute.xlu1 %1347  ;;  %v1352_v25 = vpop.permute.xlu0 %1351 }
 0x517   : > { %v1370_v52 = vmul.f32 %v1348_v18, %v3035_v43  ;;  %v1371_v11 = vmul.f32 %v1348_v18, %v3037_v48  ;;  %v1372_v40 = vmul.f32 %v1352_v25, %v3039_v62  ;;  %v1373_v56 = vmul.f32 %v1352_v25, %v3041_v63 }
 0x519   : > { %1404 = vrot.lane.b32.xlu1 %v1367_v47, %s2715_s9  ;;  %1402 = vrot.lane.b32.xlu0 %v1366_v8, %s2715_s9 }
 0x51a   : > { %v1356_v12 = vpop.permute.xlu1 %1355  ;;  %v1360_v17 = vpop.permute.xlu0 %1359 }
 0x51b   : > { %v1374_v21 = vmul.f32 %v1356_v12, %v3051_v3  ;;  %v1375_v30 = vmul.f32 %v1356_v12, %v3053_v4  ;;  %v1376_v44 = vmul.f32 %v1360_v17, %v3047_v1  ;;  %v1377_v6 = vmul.f32 %v1360_v17, %v3049_v2 }
 0x51d   : > { %1408 = vrot.lane.b32.xlu1 %v1369_v34, %s2715_s9  ;;  %1406 = vrot.lane.b32.xlu0 %v1368_v10, %s2715_s9 }
 0x51f   : > { %v1453_v60 = vpop.permute.xlu1 %1452  ;;  %v1457_v29 = vpop.permute.xlu0 %1456 }
 0x520   : > { %v1483_v7 = vmul.f32 %v1453_v60, %v3013_v49  ;;  %v1484_v9 = vmul.f32 %v1453_v60, %v3015_v50  ;;  %v1485_v61 = vmul.f32 %v1457_v29, %v3017_v51  ;;  %v1486_v5 = vmul.f32 %v1457_v29, %v3019_v53 }
 0x521   : > { %1412 = vrot.lane.b32.xlu1 %v1371_v11, %s2715_s9  ;;  %1410 = vrot.lane.b32.xlu0 %v1370_v52, %s2715_s9 }
 0x523   : > { %v1461_v19 = vpop.permute.xlu1 %1460  ;;  %v1469_v0 = vpop.permute.xlu0 %1468 }
 0x524   : > { %v1487_v50 = vmul.f32 %v1461_v19, %v3023_v54  ;;  %v1488_v20 = vmul.f32 %v1461_v19, %v3025_v55  ;;  %v1491_v24 = vmul.f32 %v1469_v0, %v3035_v43  ;;  %v1492_v28 = vmul.f32 %v1469_v0, %v3037_v48 }
 0x525   : > { %1416 = vrot.lane.b32.xlu1 %v1373_v56, %s2715_s9  ;;  %1414 = vrot.lane.b32.xlu0 %v1372_v40, %s2715_s9 }
 0x527   : > { %v1465_v15 = vpop.permute.xlu1 %1464  ;;  %v1477_v37 = vpop.permute.xlu0 %1476 }
 0x528   : > { %v1489_v53 = vmul.f32 %v1465_v15, %v3029_v58  ;;  %v1490_v23 = vmul.f32 %v1465_v15, %v3031_v59  ;;  %v1495_v59 = vmul.f32 %v1477_v37, %v3051_v3  ;;  %v1496_v42 = vmul.f32 %v1477_v37, %v3053_v4 }
 0x529   : > { %1420 = vrot.lane.b32.xlu1 %v1375_v30, %s2715_s9  ;;  %1418 = vrot.lane.b32.xlu0 %v1374_v21, %s2715_s9  ;;  %v1322_v21 = vmul.f32 %v3321_v39, %v3013_v49  ;;  %v1324_v49 = vmul.f32 %v3319_v57, %v3023_v54  ;;  %v1326_v54 = vmul.f32 %v3329_v32, %v3035_v43 }
 0x52a   : > { %v1328_v43 = vmul.f32 %v3333_v36, %v3051_v3 }
 0x52b   : > { %v1473_v55 = vpop.permute.xlu1 %1472 }
 0x52c   : > { %v1493_v27 = vmul.f32 %v1473_v55, %v3039_v62  ;;  %v1494_v41 = vmul.f32 %v1473_v55, %v3041_v63 }
 0x52d   : > { %1424 = vrot.lane.b32.xlu1 %v1377_v6, %s2715_s9  ;;  %1422 = vrot.lane.b32.xlu0 %v1376_v44, %s2715_s9 }
 0x52f   : > { %v1481_v26 = vpop.permute.xlu1 %1480 }
 0x530   : > { %v1497_v48 = vmul.f32 %v1481_v26, %v3047_v1  ;;  %v1498_v22 = vmul.f32 %v1481_v26, %v3049_v2 }
 0x531   : > { %1517 = vrot.lane.b32.xlu1 %v1484_v9, %s2716_s12  ;;  %1515 = vrot.lane.b32.xlu0 %v1483_v7, %s2716_s12  ;;  %v1323_v7 = vmul.f32 %v3325_v31, %v3017_v51  ;;  %v1325_v51 = vmul.f32 %v3323_v16, %v3029_v58  ;;  %v1327_v58 = vmul.f32 %v3327_v35, %v3039_v62 }
 0x532   : > { %v1329_v62 = vmul.f32 %v3331_v38, %v3047_v1 }
 0x535   : > { %1521 = vrot.lane.b32.xlu1 %v1486_v5, %s2716_s12  ;;  %1519 = vrot.lane.b32.xlu0 %v1485_v61, %s2716_s12 }
 0x539   : > { %1525 = vrot.lane.b32.xlu1 %v1488_v20, %s2716_s12  ;;  %1523 = vrot.lane.b32.xlu0 %v1487_v50, %s2716_s12 }
 0x53d   : > { %1529 = vrot.lane.b32.xlu1 %v1490_v23, %s2716_s12  ;;  %1527 = vrot.lane.b32.xlu0 %v1489_v53, %s2716_s12 }
 0x541   : > { %1533 = vrot.lane.b32.xlu1 %v1492_v28, %s2716_s12  ;;  %1531 = vrot.lane.b32.xlu0 %v1491_v24, %s2716_s12 }
 0x545   : > { %1537 = vrot.lane.b32.xlu1 %v1494_v41, %s2716_s12  ;;  %1535 = vrot.lane.b32.xlu0 %v1493_v27, %s2716_s12 }
 0x549   : > { %1541 = vrot.lane.b32.xlu1 %v1496_v42, %s2716_s12  ;;  %1539 = vrot.lane.b32.xlu0 %v1495_v59, %s2716_s12 }
 0x54d   : > { %1545 = vrot.lane.b32.xlu1 %v1498_v22, %s2716_s12  ;;  %1543 = vrot.lane.b32.xlu0 %v1497_v48, %s2716_s12 }
 0x583   : > { %v1397_v63 = vpop.permute.xlu1 %1396  ;;  %v1395_v45 = vpop.permute.xlu0 %1394 }
 0x584   : > { %v1427_v12 = vsel %vm1426_vm15, %v1395_v45, %v1397_v63 }
 0x585   : > { %v1443_v30 = vadd.f32 %v1427_v12, %v1322_v21 }
 0x587   : > { %v1401_v46 = vpop.permute.xlu1 %1400  ;;  %v1399_v8 = vpop.permute.xlu0 %1398 }
 0x588   : > { %v1428_v6 = vsel %vm1426_vm15, %v1399_v8, %v1401_v46 }
 0x589   : > { %v1444_v29 = vadd.f32 %v1428_v6, %v1323_v7 }
 0x58b   : > { %v1405_v47 = vpop.permute.xlu1 %1404  ;;  %v1403_v33 = vpop.permute.xlu0 %1402 }
 0x58c   : > { %v1429_v19 = vsel %vm1426_vm15, %v1403_v33, %v1405_v47 }
 0x58d   : > { %v1445_v39 = vadd.f32 %v1429_v19, %v1324_v49 }
 0x58f   : > { %v1409_v4 = vpop.permute.xlu1 %1408  ;;  %v1407_v10 = vpop.permute.xlu0 %1406 }
 0x590   : > { %v1430_v53 = vsel %vm1426_vm15, %v1407_v10, %v1409_v4 }
 0x591   : > { %v1446_v31 = vadd.f32 %v1430_v53, %v1325_v51 }
 0x593   : > { %v1413_v34 = vpop.permute.xlu1 %1412  ;;  %v1411_v18 = vpop.permute.xlu0 %1410 }
 0x594   : > { %v1431_v28 = vsel %vm1426_vm15, %v1411_v18, %v1413_v34 }
 0x595   : > { %v1447_v57 = vadd.f32 %v1431_v28, %v1326_v54 }
 0x597   : > { %v1417_v52 = vpop.permute.xlu1 %1416  ;;  %v1415_v11 = vpop.permute.xlu0 %1414 }
 0x598   : > { %v1432_v59 = vsel %vm1426_vm15, %v1415_v11, %v1417_v52 }
 0x599   : > { %v1448_v16 = vadd.f32 %v1432_v59, %v1327_v58 }
 0x59b   : > { %v1421_v25 = vpop.permute.xlu1 %1420  ;;  %v1419_v40 = vpop.permute.xlu0 %1418 }
 0x59c   : > { %v1433_v22 = vsel %vm1426_vm15, %v1419_v40, %v1421_v25 }
 0x59d   : > { %v1449_v32 = vadd.f32 %v1433_v22, %v1328_v43 }
 0x59f   : > { %v1425_v2 = vpop.permute.xlu1 %1424  ;;  %v1423_v56 = vpop.permute.xlu0 %1422 }
 0x5a0   : > { %v1434_v8 = vsel %vm1426_vm15, %v1423_v56, %v1425_v2 }
 0x5a1   : > { %v1450_v33 = vadd.f32 %v1434_v8, %v1329_v62 }
 0x5a3   : > { %v1518_v17 = vpop.permute.xlu1 %1517  ;;  %v1516_v44 = vpop.permute.xlu0 %1515 }
 0x5a4   : > { %v1548_v60 = vsel %vm1547_vm0, %v1516_v44, %v1518_v17 }
 0x5a5   : > { %v1564_v9 = vadd.f32 %v1548_v60, %v1443_v30  }
 0x5a7   : > { %v1522_v61 = vpop.permute.xlu1 %1521  ;;  %v1520_v5 = vpop.permute.xlu0 %1519 }
 0x5a8   : > { %v1549_v50 = vsel %vm1547_vm0, %v1520_v5, %v1522_v61 }
 0x5a9   : > { %v1565_v27 = vadd.f32 %v1549_v50, %v1444_v29  }
 0x5ab   : > { %v1526_v20 = vpop.permute.xlu1 %1525  ;;  %v1524_v15 = vpop.permute.xlu0 %1523 }
 0x5ac   : > { %v1550_v23 = vsel %vm1547_vm0, %v1524_v15, %v1526_v20 }
 0x5ad   : > { %v1566_v21 = vadd.f32 %v1550_v23, %v1445_v39  }
 0x5af   : > { %v1530_v0 = vpop.permute.xlu1 %1529  ;;  %v1528_v24 = vpop.permute.xlu0 %1527 }
 0x5b0   : > { %v1551_v55 = vsel %vm1547_vm0, %v1528_v24, %v1530_v0 }
 0x5b1   : > { %v1567_v17 = vadd.f32 %v1551_v55, %v1446_v31  }
 0x5b3   : > { %v1534_v41 = vpop.permute.xlu1 %1533  ;;  %v1532_v37 = vpop.permute.xlu0 %1531 }
 0x5b4   : > { %v1552_v42 = vsel %vm1547_vm0, %v1532_v37, %v1534_v41 }
 0x5b5   : > { %v1568_v12 = vadd.f32 %v1552_v42, %v1447_v57  }
 0x5b7   : > { %v1538_v26 = vpop.permute.xlu1 %1537  ;;  %v1536_v48 = vpop.permute.xlu0 %1535 }
 0x5b8   : > { %v1553_v63 = vsel %vm1547_vm0, %v1536_v48, %v1538_v26 }
 0x5b9   : > { %v1569_v10 = vadd.f32 %v1553_v63, %v1448_v16  }
 0x5bb   : > { %v1542_v45 = vpop.permute.xlu1 %1541  ;;  %v1540_v46 = vpop.permute.xlu0 %1539 }
 0x5bc   : > { %v1554_v47 = vsel %vm1547_vm0, %v1540_v46, %v1542_v45 }
 0x5bd   : > { %v1570_v35 = vadd.f32 %v1554_v47, %v1449_v32  }
 0x5bf   : > { %v1546_v4 = vpop.permute.xlu1 %1545  ;;  %v1544_v34 = vpop.permute.xlu0 %1543  ;;  %v3616_v8 = vmov %v1570_v35 }
 0x5c0   : > { %v1555_v18 = vsel %vm1547_vm0, %v1544_v34, %v1546_v4 }
 0x5c1   : > { %v1571_v57 = vadd.f32 %v1555_v18, %v1450_v33   ;;  %v3617_v18 = vmov %v1564_v9 }
 0x5c2 PF: > { %v2717_v1 = vmov 3   ;;  %v3618_v3 = vld [vmem:[#allocation9_spill] sm:$0xff]  ;;  %v3619_v38 = vld [vmem:[#allocation8_spill] sm:$0xff]  ;;  %v3620_v36 = vld [vmem:[#allocation11_spill] sm:$0xff]  ;;  %vm1863_vm9 = vcmask 523264   ;;  %v2698_v18 = vphi %v2666_v18, %v3617_v18   ;;  %v2694_v27 = vphi %v2662_v27, %v1565_v27   ;;  %v2690_v21 = vphi %v2658_v21, %v1566_v21   ;;  %v2686_v17 = vphi %v2654_v17, %v1567_v17   ;;  %v2682_v12 = vphi %v2650_v12, %v1568_v12   ;;  %v2678_v10 = vphi %v2646_v10, %v1569_v10   ;;  %v2674_v8 = vphi %v2642_v8, %v3616_v8   ;;  %v2670_v57 = vphi %v2638_v57, %v1571_v57  }
 0x5c3   : > { %2521 = vset.pattern.permute.xlu1 %v2717_v1  ;;  %2520 = vset.pattern.permute.xlu0 %v2717_v1  ;;  %v3621_v52 = vld [vmem:[#allocation10_spill] sm:$0xff]  ;;  %v3622_v11 = vld [vmem:[#allocation13_spill] sm:$0xff]  ;;  %v3623_v25 = vld [vmem:[#allocation12_spill] sm:$0xff] }
 0x5c4   : > { %1589 = vperm.xlu1 %2521, %v2855_v14   ;;  %1581 = vperm.xlu0 %2520, %v2852_v13   ;;  %v3624_v49 = vld [vmem:[#allocation14_spill] sm:$0xff] }
 0x5c8   : > { %1593 = vperm.xlu1 %2521, %v3618_v3   ;;  %1585 = vperm.xlu0 %2520, %v3619_v38  }
 0x5cc   : > { %1601 = vperm.xlu1 %2521, %v3620_v36   ;;  %1597 = vperm.xlu0 %2520, %v3621_v52  }
 0x5d0   : > { %1609 = vperm.xlu1 %2521, %v3622_v11   ;;  %1605 = vperm.xlu0 %2520, %v3623_v25  }
 0x643   : > { %v1590_v40 = vpop.permute.xlu1 %1589  ;;  %v1582_v2 = vpop.permute.xlu0 %1581 }
 0x644   : > { %v1614_v56 = vadd.f32 %v2690_v21, %v1590_v40  ;;  %v1612_v30 = vadd.f32 %v2698_v18, %v1582_v2 }
 0x646   : > { %vm1622_vm1 = vcmp.ge.f32.partialorder %v1614_v56, 0.0  ;;  %v1630_v44 = vmul.f32 0.25, %v1614_v56  ;;  %vm1620_vm2 = vcmp.ge.f32.partialorder %v1612_v30, 0.0  ;;  %v1628_v6 = vmul.f32 0.25, %v1612_v30 }
 0x647   : > { %v1594_v60 = vpop.permute.xlu1 %1593  ;;  %v1586_v7 = vpop.permute.xlu0 %1585 }
 0x648   : > { %v3463_v9 = vsel %vm1620_vm2, %v1612_v30, %v1628_v6  ;;  %v1615_v29 = vadd.f32 %v2686_v17, %v1594_v60  ;;  %v1613_v61 = vadd.f32 %v2694_v27, %v1586_v7  ;;  %v3465_v5 = vsel %vm1622_vm1, %v1614_v56, %v1630_v44 }
 0x649   : > { %v1644_v21 = vmul.f32 %v3624_v49, %v3463_v9  ;;  %v1646_v27 = vmul.f32 %v3624_v49, %v3465_v5  ;;  %v2718_v7 = vmov 5  }
 0x64a   : > { %vm1623_vm3 = vcmp.ge.f32.partialorder %v1615_v29, 0.0  ;;  %v1631_v19 = vmul.f32 0.25, %v1615_v29  ;;  %vm1621_vm4 = vcmp.ge.f32.partialorder %v1613_v61, 0.0  ;;  %v1629_v50 = vmul.f32 0.25, %v1613_v61  ;;  %2522 = vset.pattern.permute.xlu1 %v2718_v7 }
 0x64b   : > { %v1602_v39 = vpop.permute.xlu1 %1601  ;;  %v1598_v20 = vpop.permute.xlu0 %1597  ;;  %v1669_v24 = vmul.f32 %v1644_v21, %v1644_v21  ;;  %v1671_v58 = vmul.f32 %v1646_v27, %v1646_v27 }
 0x64c   : > { %v3469_v15 = vsel %vm1623_vm3, %v1615_v29, %v1631_v19  ;;  %v3471_v53 = vsel %vm1621_vm4, %v1613_v61, %v1629_v50  ;;  %v1617_v23 = vadd.f32 %v2678_v10, %v1602_v39  ;;  %v1616_v51 = vadd.f32 %v2682_v12, %v1598_v20 }
 0x64d   : > { %v1645_v17 = vmul.f32 %v3624_v49, %v3471_v53  ;;  %v1647_v28 = vmul.f32 %v3624_v49, %v3469_v15 }
 0x64e   : > { %vm1625_vm5 = vcmp.ge.f32.partialorder %v1617_v23, 0.0  ;;  %v1633_v31 = vmul.f32 0.25, %v1617_v23  ;;  %vm1624_vm6 = vcmp.ge.f32.partialorder %v1616_v51, 0.0  ;;  %v1632_v0 = vmul.f32 0.25, %v1616_v51 }
 0x64f   : > { %v1652_v55 = vadd.f32 %v1645_v17, %v1644_v21  ;;  %v1670_v54 = vmul.f32 %v1645_v17, %v1645_v17  ;;  %v1610_v41 = vpop.permute.xlu1 %1609  ;;  %v1606_v37 = vpop.permute.xlu0 %1605  ;;  %v1672_v43 = vmul.f32 %v1647_v28, %v1647_v28 }
 0x650   : > { %v3479_v10 = vsel %vm1625_vm5, %v1617_v23, %v1633_v31  ;;  %v3481_v12 = vsel %vm1624_vm6, %v1616_v51, %v1632_v0  ;;  %v1619_v59 = vadd.f32 %v2670_v57, %v1610_v41  ;;  %v1618_v42 = vadd.f32 %v2674_v8, %v1606_v37 }
 0x651   : > { %v1653_v16 = vadd.f32 %v1652_v55, %v1646_v27  ;;  %v1677_v26 = vadd.f32 %v1670_v54, %v1669_v24  ;;  %v1648_v48 = vmul.f32 %v3624_v49, %v3481_v12  ;;  %v1649_v32 = vmul.f32 %v3624_v49, %v3479_v10 }
 0x652   : > { %vm1627_vm7 = vcmp.ge.f32.partialorder %v1619_v59, 0.0  ;;  %v1635_v22 = vmul.f32 0.25, %v1619_v59  ;;  %vm1626_vm8 = vcmp.ge.f32.partialorder %v1618_v42, 0.0  ;;  %v1634_v63 = vmul.f32 0.25, %v1618_v42 }
 0x653   : > { %v1654_v45 = vadd.f32 %v1653_v16, %v1647_v28  ;;  %v1678_v46 = vadd.f32 %v1677_v26, %v1671_v58  ;;  %v1673_v8 = vmul.f32 %v1648_v48, %v1648_v48  ;;  %v1674_v18 = vmul.f32 %v1649_v32, %v1649_v32  ;;  %v1816_v16 = vld [vmem:[%s2815_s7 + $0x8] sm:$0xff]  ;;  %v1815_v26 = vld [vmem:[%s2815_s7] sm:$0xff] }
 0x654   : > { %v3487_v47 = vsel %vm1626_vm8, %v1618_v42, %v1634_v63  ;;  %v3489_v57 = vsel %vm1627_vm7, %v1619_v59, %v1635_v22  ;;  %v2719_v51 = vmov 4   ;;  %v1820_v22 = vld [vmem:[%s2815_s7 + $0x28] sm:$0xff]  ;;  %v1821_v63 = vld [vmem:[%s2815_s7 + $0x30] sm:$0xff] }
 0x655   : > { %v1650_v62 = vmul.f32 %v3624_v49, %v3487_v47  ;;  %v1655_v35 = vadd.f32 %v1654_v45, %v1648_v48  ;;  %v1679_v33 = vadd.f32 %v1678_v46, %v1672_v43  ;;  %v1651_v4 = vmul.f32 %v3624_v49, %v3489_v57  ;;  %2523 = vset.pattern.permute.xlu0 %v2719_v51  ;;  %v1818_v48 = vld [vmem:[%s2815_s7 + $0x18] sm:$0xff] }
 0x656   : > { %v1822_v43 = vld [vmem:[%s2815_s7 + $0x38] sm:$0xff] }
 0x657   : > { %v1656_v34 = vadd.f32 %v1655_v35, %v1649_v32  ;;  %v1680_v1 = vadd.f32 %v1679_v33, %v1673_v8  ;;  %v1675_v2 = vmul.f32 %v1650_v62, %v1650_v62  ;;  %v1676_v44 = vmul.f32 %v1651_v4, %v1651_v4 }
 0x659   : > { %v1657_v40 = vadd.f32 %v1656_v34, %v1650_v62  ;;  %v1681_v56 = vadd.f32 %v1680_v1, %v1674_v18 }
 0x65b   : > { %v1658_v30 = vadd.f32 %v1657_v40, %v1651_v4  ;;  %v1682_v6 = vadd.f32 %v1681_v56, %v1675_v2 }
 0x65d   : > { %1659 = vadd.xlane.f32.xlu0 %v1658_v30  ;;  %v1683_v60 = vadd.f32 %v1682_v6, %v1676_v44 }
 0x65f   : > { %1684 = vadd.xlane.f32.xlu1 %v1683_v60 }
 0x670   : > { %1768 = vperm.xlu1 %2522, %v2852_v13  }
 0x674   : > { %1772 = vperm.xlu1 %2522, %v3619_v38  }
 0x678   : > { %1776 = vperm.xlu1 %2522, %v2855_v14  }
 0x67c   : > { %1780 = vperm.xlu1 %2522, %v3618_v3  }
 0x680   : > { %1788 = vperm.xlu1 %2522, %v3620_v36  }
 0x684   : > { %2525 = vset.pattern.permute.xlu1 %v2719_v51 }
 0x6ea   : > { %v1660_v29 = vpop.xlane.xlu0 %1659 }
 0x6eb   : > { %v1661_v61 = vrot.slane %v1660_v29, 4 }
 0x6ec   : > { %v1685_v19 = vpop.xlane.xlu1 %1684 }
 0x6ed   : > { %v1662_v50 = vadd.f32 %v1661_v61, %v1660_v29  ;;  %v1686_v49 = vrot.slane %v1685_v19, 4 }
 0x6ef   : > { %v1663_v21 = vrot.slane %v1662_v50, 2  ;;  %v1687_v39 = vadd.f32 %v1686_v49, %v1685_v19 }
 0x6f0   : > { %v1769_v32 = vpop.permute.xlu1 %1768 }
 0x6f1   : > { %v1688_v20 = vrot.slane %v1687_v39, 2  ;;  %v1664_v23 = vadd.f32 %v1663_v21, %v1662_v50 }
 0x6f3   : > { %v1665_v27 = vrot.slane %v1664_v23, 1  ;;  %v1689_v17 = vadd.f32 %v1688_v20, %v1687_v39 }
 0x6f4   : > { %v1773_v45 = vpop.permute.xlu1 %1772 }
 0x6f5   : > { %v1666_v31 = vadd.f32 %v1665_v27, %v1664_v23  ;;  %v1690_v0 = vrot.slane %v1689_v17, 1 }
 0x6f7   : > { %2303 = vpush %v1666_v31  ;;  %v1691_v24 = vadd.f32 %v1690_v0, %v1689_v17 }
 0x6f8   : > { %v1777_v46 = vpop.permute.xlu1 %1776 }
 0x6f9   : > { %2305 = vpush %v1691_v24 }
 0x6fc   : > { %v1781_v8 = vpop.permute.xlu1 %1780 }
 0x700   : > { %v1789_v35 = vpop.permute.xlu1 %1788 }
 0x728   : > { %s2304_s14 = spop %2303 }
 0x729   : > { %s3500_s16 = smul.f32 0.0009765625, %s2304_s14 }
 0x72a   : > { %s2306_s19 = spop %2305 }
 0x72b   : > { %s1694_s20 = smul.f32 %s3500_s16, %s3500_s16  ;;  %v1710_v62 = vstv %s3500_s16 }
 0x72c   : > { %s1693_s22 = smul.f32 0.0009765625, %s2306_s19  ;;  %v1712_v33 = vsub.f32 %v3471_v53, %v1710_v62  ;;  %v1711_v4 = vsub.f32 %v3463_v9, %v1710_v62  ;;  %v1713_v6 = vsub.f32 %v3465_v5, %v1710_v62  ;;  %v1714_v29 = vsub.f32 %v3469_v15, %v1710_v62 }
 0x72d   : > { %v1715_v53 = vsub.f32 %v3481_v12, %v1710_v62  ;;  %v1716_v39 = vsub.f32 %v3479_v10, %v1710_v62  ;;  %v1718_v31 = vsub.f32 %v3489_v57, %v1710_v62  ;;  %v1717_v0 = vsub.f32 %v3487_v47, %v1710_v62  ;;  %v1812_v47 = vld [vmem:[%s2805_s18 + $0x28] sm:$0xff]  ;;  %v1813_v57 = vld [vmem:[%s2805_s18 + $0x30] sm:$0xff] }
 0x72e   : > { %s1695_s28 = ssub.f32 %s1693_s22, %s1694_s20 }
 0x730   : > { %s1696_s30 = smax.f32 %s2705_s17, %s1695_s28 }
 0x731   : > { %s1697_s10 = sadd.f32 1e-05, %s1696_s30 }
 0x733   : > { %v1698_v28 = vstv %s1697_s10 }
 0x734   : > { %2530 = vrsqrt.f32 %v1698_v28 }
 0x73e   : > { %v2531_v55 = vpop.eup %2530 }
 0x73f   : > { %2307 = vpush %v2531_v55 }
 0x770   : > { %s2308_s11 = spop %2307 }
 0x771   : > { %v1701_v54 = vstv %s2308_s11 }
 0x772   : > { %v1703_v41 = vmul.f32 %v1701_v54, %v3619_v38  ;;  %v1702_v37 = vmul.f32 %v1701_v54, %v2852_v13  ;;  %v1704_v59 = vmul.f32 %v1701_v54, %v2855_v14  ;;  %v1705_v42 = vmul.f32 %v1701_v54, %v3618_v3 }
 0x773   : > { %v1706_v58 = vmul.f32 %v1701_v54, %v3621_v52  ;;  %v1707_v38 = vmul.f32 %v1701_v54, %v3620_v36  ;;  %v1709_v13 = vmul.f32 %v1701_v54, %v3622_v11  ;;  %v1708_v14 = vmul.f32 %v1701_v54, %v3623_v25  ;;  %v1807_v36 = vld [vmem:[%s2805_s18] sm:$0xff] }
 0x774   : > { %1726 = vperm.xlu1 %2525, %v1703_v41   ;;  %1721 = vperm.xlu0 %2523, %v1702_v37   ;;  %v3625_v3 = vmov 0  }
 0x775   : > { %2253 = vmatprep.mubr.msk.f32.mxu0 %vm1863_vm9, %v1807_v36 }
 0x778   : > { %1731 = vperm.xlu1 %2525, %v1704_v59   ;;  %2524 = vset.pattern.permute.xlu0 %v2718_v7  ;;  %v1808_v59 = vld [vmem:[%s2805_s18 + $0x8] sm:$0xff] }
 0x779   : > { %1784 = vperm.xlu0 %2524, %v3621_v52   ;;  %v1809_v52 = vld [vmem:[%s2805_s18 + $0x10] sm:$0xff] }
 0x77a   : > { %2256 = vmatprep.mubr.msk.f32.mxu1 %vm1863_vm9, %v1809_v52 }
 0x77c   : > { %1736 = vperm.xlu1 %2525, %v1705_v42   ;;  %v1810_v42 = vld [vmem:[%s2805_s18 + $0x18] sm:$0xff] }
 0x77d   : > { %2526 = vset.pattern.permute.xlu0 %v2719_v51 }
 0x77e   : > { %1741 = vperm.xlu0 %2526, %v1706_v58   ;;  %v1811_v58 = vld [vmem:[%s2805_s18 + $0x20] sm:$0xff] }
 0x780   : > { %1746 = vperm.xlu1 %2525, %v1707_v38   ;;  %v1814_v38 = vld [vmem:[%s2805_s18 + $0x38] sm:$0xff] }
 0x782   : > { %1756 = vperm.xlu0 %2526, %v1709_v13  }
 0x784   : > { %1751 = vperm.xlu1 %2525, %v1708_v14  }
 0x786   : > { %2528 = vset.pattern.permute.xlu0 %v3625_v3 }
 0x787   : > { %1825 = vperm.xlu0 %2528, %v1815_v26  }
 0x788   : > { %2527 = vset.pattern.permute.xlu1 %v2718_v7 }
 0x789   : > { %1792 = vperm.xlu1 %2527, %v3623_v25   ;;  %v1817_v25 = vld [vmem:[%s2815_s7 + $0x10] sm:$0xff] }
 0x78b   : > { %1840 = vperm.xlu0 %2528, %v1818_v48  }
 0x78d   : > { %1796 = vperm.xlu1 %2527, %v3622_v11   ;;  %v1819_v11 = vld [vmem:[%s2815_s7 + $0x20] sm:$0xff] }
 0x78f   : > { %1850 = vperm.xlu0 %2528, %v1820_v22  }
 0x791   : > { %2529 = vset.pattern.permute.xlu1 %v3625_v3 }
 0x792   : > { %1830 = vperm.xlu1 %2529, %v1816_v16  }
 0x793   : > { %1860 = vperm.xlu0 %2528, %v1822_v43  }
 0x796   : > { %1835 = vperm.xlu1 %2529, %v1817_v25  }
 0x79a   : > { %1845 = vperm.xlu1 %2529, %v1819_v11  }
 0x79e   : > { %1855 = vperm.xlu1 %2529, %v1821_v63  }
 0x7f3   : > { %v1727_v34 = vpop.permute.xlu1 %1726  ;;  %v1722_v18 = vpop.permute.xlu0 %1721 }
 0x7f4   : > { %v1760_v1 = vmul.f32 %v1727_v34, %v1712_v33  ;;  %v1759_v40 = vmul.f32 %v1722_v18, %v1711_v4  ;;  %v3629_v4 = vld [vmem:[#allocation6_spill] sm:$0xff] }
 0x7f6   : > { %v1800_v2 = vadd.f32 %v1773_v45, %v1760_v1  ;;  %v1799_v56 = vadd.f32 %v1769_v32, %v1759_v40  ;;  %v3626_v45 = vld [vmem:[#allocation5_spill] sm:$0xff] }
 0x7f7   : > { %v1732_v30 = vpop.permute.xlu1 %1731  ;;  %v2002_v1 = vld [vmem:[%s2820_s13 + $0x8] sm:$0xff] }
 0x7f8   : > { %v2273_v44 = vpack.c.bf16 %v1800_v2, %v1799_v56  ;;  %v1785_v60 = vpop.permute.xlu0 %1784  ;;  %v1761_v7 = vmul.f32 %v1732_v30, %v1713_v6  ;;  %v2001_v56 = vld [vmem:[%s2820_s13] sm:$0xff] }
 0x7fa   : > { %2274 = vmatprep.subr.bf16.mxu0 %v2273_v44  ;;  %2289 = vmatprep.subr.bf16.mxu1 %v2273_v44  ;;  %v1801_v50 = vadd.f32 %v1777_v46, %v1761_v7 }
 0x7fb   : > { %v1737_v61 = vpop.permute.xlu1 %1736  ;;  %2276 = vmatpush3.bf16.msra.mxu0 %v2273_v44  ;;  %2293 = vmatpush3.bf16.msra.mxu1 %v2273_v44 }
 0x7fc   : > { %v1762_v9 = vmul.f32 %v1737_v61, %v1714_v29  ;;  %v2004_v29 = vld [vmem:[%s2820_s13 + $0x18] sm:$0xff] }
 0x7fd   : > { %v1742_v19 = vpop.permute.xlu0 %1741 }
 0x7fe   : > { %v1802_v49 = vadd.f32 %v1781_v8, %v1762_v9  ;;  %v1763_v21 = vmul.f32 %v1742_v19, %v1715_v53  ;;  %v3627_v8 = vld [vmem:[#allocation7_spill] sm:$0xff]  ;;  %v2003_v19 = vld [vmem:[%s2820_s13 + $0x10] sm:$0xff] }
 0x7ff   : > { %v1747_v20 = vpop.permute.xlu1 %1746 }
 0x800   : > { %v2277_v5 = vpack.c.bf16 %v1802_v49, %v1801_v50  ;;  %v1764_v23 = vmul.f32 %v1747_v20, %v1716_v39  ;;  %v1803_v51 = vadd.f32 %v1785_v60, %v1763_v21 }
 0x801   : > { %v1757_v12 = vpop.permute.xlu0 %1756 }
 0x802   : > { %v1804_v27 = vadd.f32 %v1789_v35, %v1764_v23  ;;  %2278 = vmatprep.subr.bf16.mxu0 %v2277_v5  ;;  %2290 = vmatprep.subr.bf16.mxu1 %v2277_v5  ;;  %v1766_v24 = vmul.f32 %v1757_v12, %v1718_v31  ;;  %v3628_v35 = vld [vmem:[#allocation4_spill] sm:$0xff] }
 0x803   : > { %v1752_v15 = vpop.permute.xlu1 %1751  ;;  %2280 = vmatpush3.bf16.msra.mxu0 %v2277_v5  ;;  %2294 = vmatpush3.bf16.msra.mxu1 %v2277_v5 }
 0x804   : > { %v2281_v17 = vpack.c.bf16 %v1804_v27, %v1803_v51  ;;  %v1765_v28 = vmul.f32 %v1752_v15, %v1717_v0 }
 0x806   : > { %2282 = vmatprep.subr.bf16.mxu0 %v2281_v17  ;;  %2291 = vmatprep.subr.bf16.mxu1 %v2281_v17  ;;  %v1826_v13 = vpop.permute.xlu0 %1825 }
 0x807   : > { %2284 = vmatpush3.bf16.msra.mxu0 %v2281_v17  ;;  %2295 = vmatpush3.bf16.msra.mxu1 %v2281_v17 }
 0x808   : > { %v1793_v10 = vpop.permute.xlu1 %1792 }
 0x809   : > { %v1805_v54 = vadd.f32 %v1793_v10, %v1765_v28 }
 0x80a   : > { %v1841_v3 = vpop.permute.xlu0 %1840 }
 0x80c   : > { %v1797_v55 = vpop.permute.xlu1 %1796 }
 0x80d   : > { %v1806_v41 = vadd.f32 %v1797_v55, %v1766_v24 }
 0x80e   : > { %v1851_v22 = vpop.permute.xlu0 %1850 }
 0x80f   : > { %v2285_v37 = vpack.c.bf16 %v1806_v41, %v1805_v54 }
 0x811   : > { %2286 = vmatprep.subr.bf16.mxu0 %v2285_v37  ;;  %2292 = vmatprep.subr.bf16.mxu1 %v2285_v37  ;;  %v1831_v14 = vpop.permute.xlu1 %1830 }
 0x812   : > { %2288 = vmatpush3.bf16.msra.mxu0 %v2285_v37  ;;  %2296 = vmatpush3.bf16.msra.mxu1 %v2285_v37  ;;  %v1861_v6 = vpop.permute.xlu0 %1860 }
 0x815   : > { %2254 = vmatmul.mubr.msk.f32.vlgmr.msra.gmra.mrb[8].mxu0 %vm1863_vm9, %v1808_v59  ;;  %2257 = vmatmul.mubr.msk.f32.vlgmr.msra.gmra.mrb[0].mxu1 %vm1863_vm9, %v1810_v42  ;;  %v1836_v36 = vpop.permute.xlu1 %1835 }
 0x816   : > { %2259 = vmatprep.mubr.msk.f32.mxu1 %vm1863_vm9, %v1811_v58 }
 0x819   : > { %2260 = vmatmul.mubr.msk.f32.gmra.mrb[2].mxu1 %vm1863_vm9, %v1812_v47  ;;  %v1846_v32 = vpop.permute.xlu1 %1845 }
 0x81a   : > { %2262 = vmatprep.mubr.msk.f32.mxu1 %vm1863_vm9, %v1813_v57 }
 0x81d   : > { %2263 = vmatmul.mubr.msk.f32.gmra.mrb[4].mxu1 %vm1863_vm9, %v1814_v38  ;;  %v1856_v61 = vpop.permute.xlu1 %1855 }
 0x8e8   : > { %v2255_v52 = vpop.f32.mrb[8].mxu0  ;;  %v2258_v16 = vpop.f32.mrb[0].mxu1 }
 0x8e9   : > { %v1960_v26 = vadd.f32 %v2255_v52, %v1831_v14  ;;  %v1970_v25 = vadd.f32 %v2258_v16, %v1841_v3  ;;  %v1954_v48 = vpop.f32.mrb[9].mxu0  ;;  %v1964_v11 = vpop.f32.mrb[1].mxu1 }
 0x8ea   : > { %v1955_v63 = vadd.f32 %v1954_v48, %v1826_v13  ;;  %v1965_v43 = vadd.f32 %v1964_v11, %v1836_v36 }
 0x8eb   : > { %v1994_v46 = vadd.f32 %v1960_v26, %v3626_v45  ;;  %v1996_v62 = vadd.f32 %v1970_v25, %v3627_v8 }
 0x8ec   : > { %v1993_v33 = vadd.f32 %v1955_v63, %v3628_v35  ;;  %v1995_v34 = vadd.f32 %v1965_v43, %v3629_v4  ;;  %v2261_v18 = vpop.f32.mrb[2].mxu1 }
 0x8ed   : > { %1998 = vst [vmem:[#allocation2 + $0x8] sm:$0xff] %v1994_v46  ;;  %2000 = vst [vmem:[#allocation2 + $0x18] sm:$0xff] %v1996_v62  ;;  %v1980_v40 = vadd.f32 %v2261_v18, %v1851_v22  ;;  %v1974_v2 = vpop.f32.mrb[3].mxu1 }
 0x8ee   : > { %1997 = vst [vmem:[#allocation2] sm:$0xff] %v1993_v33  ;;  %1999 = vst [vmem:[#allocation2 + $0x10] sm:$0xff] %v1995_v34  ;;  %v1975_v30 = vadd.f32 %v1974_v2, %v1846_v32 }
 0x8ef   : > { %v2006_v44 = vadd.f32 %v2002_v1, %v1980_v40 }
 0x8f0   : > { %v2005_v60 = vadd.f32 %v2001_v56, %v1975_v30  ;;  %v2264_v7 = vpop.f32.mrb[4].mxu1 }
 0x8f1   : > { %2010 = vst [vmem:[%s2820_s13 + $0x8] sm:$0xff] %v2006_v44  ;;  %v1990_v9 = vadd.f32 %v2264_v7, %v1861_v6  ;;  %v1984_v53 = vpop.f32.mrb[5].mxu1 }
 0x8f2   : > { %2009 = vst [vmem:[%s2820_s13] sm:$0xff] %v2005_v60  ;;  %v1985_v50 = vadd.f32 %v1984_v53, %v1856_v61 }
 0x8f3   : > { %v2008_v49 = vadd.f32 %v2004_v29, %v1990_v9 }
 0x8f4   : > { %v2007_v21 = vadd.f32 %v2003_v19, %v1985_v50 }
 0x8f5   : > { %2012 = vst [vmem:[%s2820_s13 + $0x18] sm:$0xff] %v2008_v49 }
 0x8f6   : > { %2011 = vst [vmem:[%s2820_s13 + $0x10] sm:$0xff] %v2007_v21 }
 0x8f7 PF: > { %s16_s25 = sadd.s32 1, %s2634_s25   ;;  %s3630_s21 = smov %s2626_s23 }
 0x8f8   : > { %p13_p12 = scmp.ge.s32.totalorder %s16_s25, 6   ;;  %s3631_s22 = smov %s2630_s24 }
 0x8f9   : > { %s3632_s23 = smov %s3635_s26  ;;  %s3633_s24 = smov %s3639_s27 }
 0x8fa   :  { %15 = sbr.rel (!%p13_p12) target bundleno = 3 (0x3), region = 101 }

</bundles_post_ra>
